<compile_context>
chip_gen: v7x
topology: tpu7x:2x2x1
jax: 0.10.0
libtpu: 0.0.40
codegen_flags: <defaults>
</compile_context>

<pallas_src>
import jax
import jax.numpy as jnp
import numpy as np
from jax.experimental import pallas as pl
from jax.experimental.pallas import tpu as pltpu


# ----------------------------------------------------------------------------- constants
# Specialised to Unet(layers=[4, 8], output_channels=3) with a (N, 3, 16, 16) input.
H0, W0, C0 = 16, 16, 3            # input spatial / channels
C1, C2 = 4, 8                     # layers=[4, 8]
COUT = 3                          # output_channels
H1, W1 = H0 // 2, W0 // 2         # 8, 8  (down1 spatial == output spatial)
H2, W2 = H1 // 2, W1 // 2         # 4, 4  (down2 spatial)
WP1 = W1 + 2                      # padded width at 8x8 resolution -> 10
WP2 = W2 + 2                      # padded width at 4x4 resolution -> 6
L1 = H1 * WP1                     # flat conv-output length at 8x8 (incl. junk cols) -> 80
L2 = H2 * WP2                     # -> 24
FLAT1 = (H1 + 3) * WP1            # padded flat length at 8x8 (+1 spare zero row) -> 110
FLAT2 = (H2 + 3) * WP2            # -> 42
VM0 = H0 * W0 - W0 - 1            # 239: #positions of the 2x2 window-max vector over the raw input
VM1 = FLAT1 - WP1 - 1             # 99 : ... over the padded 8x8 skip feature
# TODO(synk): fused kernel assumes even H/W (F.pad amounts in UpBlock are 0 for a 16x16 input).


# ----------------------------------------------------------------------------- constant matrices
def _build_constants():
    """0/1 selection matrices: maxpool placement (+zero-pad), 'same'-pad re-embedding and
    ConvTranspose zero-dilation, all expressed as tiny MXU matmuls (no scatters/stores)."""
    s1 = np.zeros((VM0, FLAT1), np.float32)      # pool1 anchors (raw 16x16 flat) -> padded 8x8 flat
    for i in range(H1):
        for j in range(W1):
            s1[2 * i * W0 + 2 * j, (i + 1) * WP1 + (j + 1)] = 1.0
    s2 = np.zeros((VM1, FLAT2), np.float32)      # pool2 anchors (padded 8x8 flat) -> padded 4x4 flat
    for i in range(H2):
        for j in range(W2):
            s2[(1 + 2 * i) * WP1 + (1 + 2 * j), (i + 1) * WP2 + (j + 1)] = 1.0
    p1 = np.zeros((L1, FLAT1), np.float32)       # drop junk cols + re-embed 8x8 conv out into padded flat
    for h in range(H1):
        for w in range(W1):
            p1[h * WP1 + w, (h + 1) * WP1 + (w + 1)] = 1.0
    p2 = np.zeros((L2, FLAT2), np.float32)       # same at the 4x4 level
    for h in range(H2):
        for w in range(W2):
            p2[h * WP2 + w, (h + 1) * WP2 + (w + 1)] = 1.0
    dil = np.zeros((L2, FLAT1), np.float32)      # ConvTranspose stride-2 zero-dilation of u2 (4x4 -> padded 10x10)
    for i in range(H2):
        for j in range(W2):
            dil[i * WP2 + j, (1 + 2 * i) * WP1 + (1 + 2 * j)] = 1.0
    return dict(s1=jnp.asarray(s1), s2=jnp.asarray(s2),
                p1=jnp.asarray(p1), p2=jnp.asarray(p2), dil=jnp.asarray(dil))


# ----------------------------------------------------------------------------- fused Unet kernel
def _unet_kernel(x_ref, s1, s2, dil, p1m, p2m,
                 w11, b11, w12, b12, w21, b21, w22, b22,
                 wup, bup, wc1, bc1, wc2, bc2, wfin, bfin,
                 o_ref):
    f32 = jnp.float32
    hi = jax.lax.Precision.HIGHEST

    def mm(a, b):
        return jnp.dot(a, b, preferred_element_type=f32, precision=hi)

    def conv3x3(pf, w_ref, b_ref, wp, length, relu=True):
        """3x3 'same' conv over a zero-padded, row-flattened (Cin, FLAT) image value.
        Builds an im2col stack from 9 contiguous lane-window slices and does ONE deep-K
        matmul (Cout, 9*Cin) x (9*Cin, L); bias broadcast over lanes.  The trailing
        (wp - w) columns of every output row are junk and are dropped by the P matrices."""
        offs = [dr * wp + dc for dr in range(3) for dc in range(3)]
        stack = jnp.concatenate([pf[:, o:o + length] for o in offs], axis=0)
        out = mm(w_ref[...], stack) + b_ref[...]
        return jnp.maximum(out, 0.0) if relu else out

    def pool_windows(pf, row_stride, n):
        """2x2 window max at every flat position (kept for all anchors; the S matrices
        pick out the stride-2 anchors and place them into the next padded flat layout)."""
        hm = jnp.maximum(pf[:, :-1], pf[:, 1:])
        return jnp.maximum(hm[:, :n], hm[:, row_stride:row_stride + n])

    x = x_ref[...]                                              # (C0, H0*W0), one image

    # ---- down1: MaxPool2x2 (16x16 -> 8x8), placed zero-padded & row-flattened via S1
    pf = mm(pool_windows(x, W0, VM0), s1[...])                  # (C0, FLAT1)

    # ---- down1 convs: 3x3(3->4)+ReLU, 3x3(4->4)+ReLU  (x1_pf = padded skip feature)
    a = conv3x3(pf, w11, b11, WP1, L1)
    x1 = conv3x3(mm(a, p1m[...]), w12, b12, WP1, L1)
    x1_pf = mm(x1, p1m[...])                                    # (C1, FLAT1)

    # ---- down2: MaxPool2x2 on the skip feature (8x8x4 -> 4x4x4), padded flat via S2
    pf2 = mm(pool_windows(x1_pf, WP1, VM1), s2[...])            # (C1, FLAT2)

    # ---- down2 convs: 3x3(4->8)+ReLU, 3x3(8->8)+ReLU -> u2
    bb = conv3x3(pf2, w21, b21, WP2, L2)
    u2 = conv3x3(mm(bb, p2m[...]), w22, b22, WP2, L2)           # (C2, L2)

    # ---- up1.upconv: ConvTranspose2d(8->8,k3,s2,p1,op1) == zero-dilation (D matmul into
    #      the padded 10x10 flat layout) + ordinary valid 3x3 conv; no ReLU on the upconv.
    t = conv3x3(mm(u2, dil[...]), wup, bup, WP1, L1, relu=False)
    # F.pad(u, [W1 % 2, 0, H1 % 2, 0]) is a no-op for even spatial dims.

    # ---- up1 convs: cat(x1, t) is a sublane-axis concat; then two 3x3+ReLU
    cat_pf = jnp.concatenate([x1_pf, mm(t, p1m[...])], axis=0)  # (C1 + C2, FLAT1)
    hh = conv3x3(cat_pf, wc1, bc1, WP1, L1)
    u1 = conv3x3(mm(hh, p1m[...]), wc2, bc2, WP1, L1)           # (C1, L1)

    # ---- final 1x1 conv + sigmoid; one lane-dense (COUT, L1) store (wrapper crops junk cols)
    res = mm(wfin[...], u1) + bfin[...]
    o_ref[...] = 1.0 / (1.0 + jnp.exp(-res))


# ----------------------------------------------------------------------------- wrapper
_PARAM_ORDER = ["s1", "s2", "dil", "p1", "p2",
                "w11", "b11", "w12", "b12", "w21", "b21", "w22", "b22",
                "wup", "bup", "wc1", "bc1", "wc2", "bc2", "wfin", "bfin"]


def unet_pallas(x_nchw, kp):
    """Fused Unet forward. x_nchw: (N, 3, 16, 16) f32 -> (N, 3, 8, 8) f32."""
    N = x_nchw.shape[0]
    x_flat = x_nchw.reshape(N, C0, H0 * W0)          # row-major flatten of (H, W); metadata only
    args = [kp[k] for k in _PARAM_ORDER]

    def const_spec(a):
        return pl.BlockSpec(a.shape, lambda n, _nd=a.ndim: (0,) * _nd)

    out = pl.pallas_call(
        _unet_kernel,
        out_shape=jax.ShapeDtypeStruct((N, COUT, L1), jnp.float32),
        grid=(N,),
        in_specs=[pl.BlockSpec((None, C0, H0 * W0), lambda n: (n, 0, 0))]
                 + [const_spec(a) for a in args],
        out_specs=pl.BlockSpec((None, COUT, L1), lambda n: (n, 0, 0)),
        compiler_params=pltpu.CompilerParams(
            dimension_semantics=("parallel",)),      # batch axis feeds both TensorCores
    )(x_flat, *args)
    # crop the flat (H1, WP1) rows back to (H1, W1) and return NCHW
    return out.reshape(N, COUT, H1, WP1)[:, :, :, :W1]


def pack_kernel_params(params):
    """Repack the HWIO parameter pytree into the kernel's (Cout, 9*Cin) im2col layout and
    add the constant selection matrices."""
    d1, d2 = params["downs"]
    up = params["ups"][0]

    def wim(w):                                      # (3,3,Cin,Cout) -> (Cout, 9*Cin), tap-major
        return jnp.transpose(w.reshape(-1, w.shape[-1]))

    def bcol(b):
        return b.reshape(-1, 1)

    # TODO(synk): real PyTorch ConvTranspose2d weights ((Cin,Cout,kH,kW)) would need a spatial
    # flip + in/out transpose here; this script uses the HWIO forward-conv-over-dilated-input
    # convention consistently in both the kernel and the in-file reference.
    kp = dict(
        w11=wim(d1["w1"]), b11=bcol(d1["b1"]), w12=wim(d1["w2"]), b12=bcol(d1["b2"]),
        w21=wim(d2["w1"]), b21=bcol(d2["b1"]), w22=wim(d2["w2"]), b22=bcol(d2["b2"]),
        wup=wim(up["up_w"]), bup=bcol(up["up_b"]),
        wc1=wim(up["c1_w"]), bc1=bcol(up["c1_b"]),          # cin order = [skip(4) | t(8)]
        wc2=wim(up["c2_w"]), bc2=bcol(up["c2_b"]),
        wfin=jnp.transpose(params["fin_w"].reshape(C1, COUT)), bfin=bcol(params["fin_b"]),
    )
    kp.update(_build_constants())
    return kp


# ----------------------------------------------------------------------------- pure-JAX reference
def conv2d_ref(x, w, b, *, pad, activation=None):
    out = jax.lax.conv_general_dilated(
        x, w, window_strides=(1, 1), padding=[(pad, pad), (pad, pad)],
        dimension_numbers=("NHWC", "HWIO", "NHWC"),
        precision=jax.lax.Precision.HIGHEST)
    out = out + b
    if activation == "relu":
        out = jnp.maximum(out, 0.0)
    elif activation == "sigmoid":
        out = 1.0 / (1.0 + jnp.exp(-out))
    return out


def maxpool2x2_ref(x):
    N, H, W, C = x.shape
    return x.reshape(N, H // 2, 2, W // 2, 2, C).max(axis=(2, 4))


def conv_transpose2d_ref(x, w_eq, b, *, stride=2, k=3, padding=1, output_padding=1):
    N, H, W, Cin = x.shape
    xd = jnp.zeros((N, (H - 1) * stride + 1, (W - 1) * stride + 1, Cin), x.dtype)
    xd = xd.at[:, ::stride, ::stride, :].set(x)
    lo = k - 1 - padding
    hi = k - 1 - padding + output_padding
    xd = jnp.pad(xd, ((0, 0), (lo, hi), (lo, hi), (0, 0)))
    return conv2d_ref(xd, w_eq, b, pad=0, activation=None)


def unet_forward_ref(params, x_nchw):
    x = jnp.transpose(x_nchw, (0, 2, 3, 1))
    feats, h = [], x
    for d in params["downs"]:
        if d["maxpool"]:
            h = maxpool2x2_ref(h)
        h = conv2d_ref(h, d["w1"], d["b1"], pad=1, activation="relu")
        h = conv2d_ref(h, d["w2"], d["b2"], pad=1, activation="relu")
        feats.append(h)
    u = feats[-1]
    ups = params["ups"]
    for i in range(len(ups), 0, -1):
        skip, up = feats[i - 1], ups[i - 1]
        t = conv_transpose2d_ref(u, up["up_w"], up["up_b"])
        ph, pw = skip.shape[1] % 2, skip.shape[2] % 2
        t = jnp.pad(t, ((0, 0), (ph, 0), (pw, 0), (0, 0)))
        cat = jnp.concatenate([skip, t], axis=-1)                  # SkipType.SKIP
        h2 = conv2d_ref(cat, up["c1_w"], up["c1_b"], pad=1, activation="relu")
        u = conv2d_ref(h2, up["c2_w"], up["c2_b"], pad=1, activation="relu")
    # TODO(synk): dropout branch of UpBlock not implemented (constructor default dropout=None).
    out = conv2d_ref(u, params["fin_w"], params["fin_b"], pad=0, activation="sigmoid")
    return jnp.transpose(out, (0, 3, 1, 2))


# ----------------------------------------------------------------------------- deterministic params
def init_params(key, layers, in_ch=3, out_ch=3):
    keys = iter(jax.random.split(key, 64))

    def rnd(shape, scale=0.1):
        return jax.random.normal(next(keys), shape, jnp.float32) * scale

    downs, prev = [], in_ch
    for layer in layers:
        downs.append(dict(
            maxpool=(prev != 1),
            w1=rnd((3, 3, prev, layer)), b1=rnd((layer,)),
            w2=rnd((3, 3, layer, layer)), b2=rnd((layer,)),
        ))
        prev = layer
    ups = []
    for layer in layers[:-1]:
        ups.append(dict(
            up_w=rnd((3, 3, layer * 2, layer * 2)), up_b=rnd((layer * 2,)),
            c1_w=rnd((3, 3, layer * 3, layer)), c1_b=rnd((layer,)),   # SKIP -> 3*ch_out inputs
            c2_w=rnd((3, 3, layer, layer)), c2_b=rnd((layer,)),
        ))
    return dict(downs=downs, ups=ups,
                fin_w=rnd((1, 1, layers[0], out_ch)), fin_b=rnd((out_ch,)))


# ----------------------------------------------------------------------------- main
if __name__ == "__main__":
    LAYERS = [4, 8]                                   # Unet(layers=[4, 8], output_channels=3)
    key = jax.random.PRNGKey(0)
    pkey, xkey = jax.random.split(key)
    params = init_params(pkey, LAYERS, in_ch=3, out_ch=3)
    x = jax.random.normal(xkey, (2, 3, 16, 16), jnp.float32)      # NCHW, like PyTorch

    kp = pack_kernel_params(params)
    fwd = jax.jit(lambda xx: unet_pallas(xx, kp))
    out = jax.block_until_ready(fwd(x))

    ref = jax.block_until_ready(unet_forward_ref(params, x))

    assert out.shape == (2, 3, 8, 8), out.shape
    max_err = float(jnp.max(jnp.abs(out - ref)))
    # 2e-3 headroom covers any reduced-precision matmul path; layout/offset bugs are >1e-1.
    assert max_err < 2e-3, f"max abs err vs reference: {max_err}"
    print("KERNEL_OK")
</pallas_src>

<mosaic_0001>
module attributes {stable_mosaic.version = 11 : i64} {
  func.func @_unet_kernel(%arg0: i32, %arg1: memref<1x3x256xf32, #tpu.memory_space<vmem>>, %arg2: memref<239x110xf32, #tpu.memory_space<vmem>>, %arg3: memref<99x42xf32, #tpu.memory_space<vmem>>, %arg4: memref<24x110xf32, #tpu.memory_space<vmem>>, %arg5: memref<80x110xf32, #tpu.memory_space<vmem>>, %arg6: memref<24x42xf32, #tpu.memory_space<vmem>>, %arg7: memref<4x27xf32, #tpu.memory_space<vmem>>, %arg8: memref<4x1xf32, #tpu.memory_space<vmem>>, %arg9: memref<4x36xf32, #tpu.memory_space<vmem>>, %arg10: memref<4x1xf32, #tpu.memory_space<vmem>>, %arg11: memref<8x36xf32, #tpu.memory_space<vmem>>, %arg12: memref<8x1xf32, #tpu.memory_space<vmem>>, %arg13: memref<8x72xf32, #tpu.memory_space<vmem>>, %arg14: memref<8x1xf32, #tpu.memory_space<vmem>>, %arg15: memref<8x72xf32, #tpu.memory_space<vmem>>, %arg16: memref<8x1xf32, #tpu.memory_space<vmem>>, %arg17: memref<4x108xf32, #tpu.memory_space<vmem>>, %arg18: memref<4x1xf32, #tpu.memory_space<vmem>>, %arg19: memref<4x36xf32, #tpu.memory_space<vmem>>, %arg20: memref<4x1xf32, #tpu.memory_space<vmem>>, %arg21: memref<3x4xf32, #tpu.memory_space<vmem>>, %arg22: memref<3x1xf32, #tpu.memory_space<vmem>>, %arg23: memref<1x3x80xf32, #tpu.memory_space<vmem>>) attributes {dimension_semantics = [#tpu.dimension_semantics<parallel>], iteration_bounds = array<i64: 2>, scalar_prefetch = 0 : i64, scratch_operands = 0 : i64, tpu.core_type = #tpu.core_type<tc>, window_params = [{transform_indices = @transform_0, window_bounds = array<i64: 1, 3, 256>}, {pipeline_mode = #tpu.pipeline_mode<synchronous>, transform_indices = @transform_1, window_bounds = array<i64: 239, 110>}, {pipeline_mode = #tpu.pipeline_mode<synchronous>, transform_indices = @transform_2, window_bounds = array<i64: 99, 42>}, {pipeline_mode = #tpu.pipeline_mode<synchronous>, transform_indices = @transform_3, window_bounds = array<i64: 24, 110>}, {pipeline_mode = #tpu.pipeline_mode<synchronous>, transform_indices = @transform_4, window_bounds = array<i64: 80, 110>}, {pipeline_mode = #tpu.pipeline_mode<synchronous>, transform_indices = @transform_5, window_bounds = array<i64: 24, 42>}, {pipeline_mode = #tpu.pipeline_mode<synchronous>, transform_indices = @transform_6, window_bounds = array<i64: 4, 27>}, {pipeline_mode = #tpu.pipeline_mode<synchronous>, transform_indices = @transform_7, window_bounds = array<i64: 4, 1>}, {pipeline_mode = #tpu.pipeline_mode<synchronous>, transform_indices = @transform_8, window_bounds = array<i64: 4, 36>}, {pipeline_mode = #tpu.pipeline_mode<synchronous>, transform_indices = @transform_9, window_bounds = array<i64: 4, 1>}, {pipeline_mode = #tpu.pipeline_mode<synchronous>, transform_indices = @transform_10, window_bounds = array<i64: 8, 36>}, {pipeline_mode = #tpu.pipeline_mode<synchronous>, transform_indices = @transform_11, window_bounds = array<i64: 8, 1>}, {pipeline_mode = #tpu.pipeline_mode<synchronous>, transform_indices = @transform_12, window_bounds = array<i64: 8, 72>}, {pipeline_mode = #tpu.pipeline_mode<synchronous>, transform_indices = @transform_13, window_bounds = array<i64: 8, 1>}, {pipeline_mode = #tpu.pipeline_mode<synchronous>, transform_indices = @transform_14, window_bounds = array<i64: 8, 72>}, {pipeline_mode = #tpu.pipeline_mode<synchronous>, transform_indices = @transform_15, window_bounds = array<i64: 8, 1>}, {pipeline_mode = #tpu.pipeline_mode<synchronous>, transform_indices = @transform_16, window_bounds = array<i64: 4, 108>}, {pipeline_mode = #tpu.pipeline_mode<synchronous>, transform_indices = @transform_17, window_bounds = array<i64: 4, 1>}, {pipeline_mode = #tpu.pipeline_mode<synchronous>, transform_indices = @transform_18, window_bounds = array<i64: 4, 36>}, {pipeline_mode = #tpu.pipeline_mode<synchronous>, transform_indices = @transform_19, window_bounds = array<i64: 4, 1>}, {pipeline_mode = #tpu.pipeline_mode<synchronous>, transform_indices = @transform_20, window_bounds = array<i64: 3, 4>}, {pipeline_mode = #tpu.pipeline_mode<synchronous>, transform_indices = @transform_21, window_bounds = array<i64: 3, 1>}, {transform_indices = @transform_22, window_bounds = array<i64: 1, 3, 80>}]} {
    %c0 = arith.constant 0 : index
    %c0_0 = arith.constant 0 : index
    %c0_1 = arith.constant 0 : index
    %0 = vector.load %arg1[%c0, %c0_0, %c0_1] : memref<1x3x256xf32, #tpu.memory_space<vmem>>, vector<1x3x256xf32>
    %1 = vector.shape_cast %0 : vector<1x3x256xf32> to vector<3x256xf32>
    %2 = vector.extract_strided_slice %1 {offsets = [0, 0], sizes = [3, 255], strides = [1, 1]} : vector<3x256xf32> to vector<3x255xf32>
    %3 = vector.extract_strided_slice %1 {offsets = [0, 1], sizes = [3, 255], strides = [1, 1]} : vector<3x256xf32> to vector<3x255xf32>
    %4 = arith.maximumf %2, %3 : vector<3x255xf32>
    %5 = vector.extract_strided_slice %4 {offsets = [0, 0], sizes = [3, 239], strides = [1, 1]} : vector<3x255xf32> to vector<3x239xf32>
    %6 = vector.extract_strided_slice %4 {offsets = [0, 16], sizes = [3, 239], strides = [1, 1]} : vector<3x255xf32> to vector<3x239xf32>
    %7 = arith.maximumf %5, %6 : vector<3x239xf32>
    %c0_2 = arith.constant 0 : index
    %c0_3 = arith.constant 0 : index
    %8 = vector.load %arg2[%c0_2, %c0_3] : memref<239x110xf32, #tpu.memory_space<vmem>>, vector<239x110xf32>
    %cst = arith.constant dense<0.000000e+00> : vector<3x110xf32>
    %9 = tpu.matmul %7, %8, %cst {dimension_numbers = #tpu.dot_dimension_numbers<[1], [0], [0], [1], [0, 0, 1, 1], [], []>, precision = #tpu.contract_precision<fp32>} : vector<3x239xf32>, vector<239x110xf32>, vector<3x110xf32> -> vector<3x110xf32>
    %10 = vector.extract_strided_slice %9 {offsets = [0, 0], sizes = [3, 80], strides = [1, 1]} : vector<3x110xf32> to vector<3x80xf32>
    %11 = vector.extract_strided_slice %9 {offsets = [0, 1], sizes = [3, 80], strides = [1, 1]} : vector<3x110xf32> to vector<3x80xf32>
    %12 = vector.extract_strided_slice %9 {offsets = [0, 2], sizes = [3, 80], strides = [1, 1]} : vector<3x110xf32> to vector<3x80xf32>
    %13 = vector.extract_strided_slice %9 {offsets = [0, 10], sizes = [3, 80], strides = [1, 1]} : vector<3x110xf32> to vector<3x80xf32>
    %14 = vector.extract_strided_slice %9 {offsets = [0, 11], sizes = [3, 80], strides = [1, 1]} : vector<3x110xf32> to vector<3x80xf32>
    %15 = vector.extract_strided_slice %9 {offsets = [0, 12], sizes = [3, 80], strides = [1, 1]} : vector<3x110xf32> to vector<3x80xf32>
    %16 = vector.extract_strided_slice %9 {offsets = [0, 20], sizes = [3, 80], strides = [1, 1]} : vector<3x110xf32> to vector<3x80xf32>
    %17 = vector.extract_strided_slice %9 {offsets = [0, 21], sizes = [3, 80], strides = [1, 1]} : vector<3x110xf32> to vector<3x80xf32>
    %18 = vector.extract_strided_slice %9 {offsets = [0, 22], sizes = [3, 80], strides = [1, 1]} : vector<3x110xf32> to vector<3x80xf32>
    %19 = tpu.concatenate %10, %11, %12, %13, %14, %15, %16, %17, %18 in 0 : vector<3x80xf32>, vector<3x80xf32>, vector<3x80xf32>, vector<3x80xf32>, vector<3x80xf32>, vector<3x80xf32>, vector<3x80xf32>, vector<3x80xf32>, vector<3x80xf32> -> vector<27x80xf32>
    %c0_4 = arith.constant 0 : index
    %c0_5 = arith.constant 0 : index
    %20 = vector.load %arg7[%c0_4, %c0_5] : memref<4x27xf32, #tpu.memory_space<vmem>>, vector<4x27xf32>
    %cst_6 = arith.constant dense<0.000000e+00> : vector<4x80xf32>
    %21 = tpu.matmul %20, %19, %cst_6 {dimension_numbers = #tpu.dot_dimension_numbers<[1], [0], [0], [1], [0, 0, 1, 1], [], []>, precision = #tpu.contract_precision<fp32>} : vector<4x27xf32>, vector<27x80xf32>, vector<4x80xf32> -> vector<4x80xf32>
    %c0_7 = arith.constant 0 : index
    %c0_8 = arith.constant 0 : index
    %22 = vector.load %arg8[%c0_7, %c0_8] : memref<4x1xf32, #tpu.memory_space<vmem>>, vector<4x1xf32>
    %23 = vector.broadcast %22 : vector<4x1xf32> to vector<4x80xf32>
    %24 = arith.addf %21, %23 : vector<4x80xf32>
    %cst_9 = arith.constant 0.000000e+00 : f32
    %25 = vector.broadcast %cst_9 : f32 to vector<4x80xf32>
    %26 = arith.maximumf %24, %25 : vector<4x80xf32>
    %c0_10 = arith.constant 0 : index
    %c0_11 = arith.constant 0 : index
    %27 = vector.load %arg5[%c0_10, %c0_11] : memref<80x110xf32, #tpu.memory_space<vmem>>, vector<80x110xf32>
    %cst_12 = arith.constant dense<0.000000e+00> : vector<4x110xf32>
    %28 = tpu.matmul %26, %27, %cst_12 {dimension_numbers = #tpu.dot_dimension_numbers<[1], [0], [0], [1], [0, 0, 1, 1], [], []>, precision = #tpu.contract_precision<fp32>} : vector<4x80xf32>, vector<80x110xf32>, vector<4x110xf32> -> vector<4x110xf32>
    %29 = vector.extract_strided_slice %28 {offsets = [0, 0], sizes = [4, 80], strides = [1, 1]} : vector<4x110xf32> to vector<4x80xf32>
    %30 = vector.extract_strided_slice %28 {offsets = [0, 1], sizes = [4, 80], strides = [1, 1]} : vector<4x110xf32> to vector<4x80xf32>
    %31 = vector.extract_strided_slice %28 {offsets = [0, 2], sizes = [4, 80], strides = [1, 1]} : vector<4x110xf32> to vector<4x80xf32>
    %32 = vector.extract_strided_slice %28 {offsets = [0, 10], sizes = [4, 80], strides = [1, 1]} : vector<4x110xf32> to vector<4x80xf32>
    %33 = vector.extract_strided_slice %28 {offsets = [0, 11], sizes = [4, 80], strides = [1, 1]} : vector<4x110xf32> to vector<4x80xf32>
    %34 = vector.extract_strided_slice %28 {offsets = [0, 12], sizes = [4, 80], strides = [1, 1]} : vector<4x110xf32> to vector<4x80xf32>
    %35 = vector.extract_strided_slice %28 {offsets = [0, 20], sizes = [4, 80], strides = [1, 1]} : vector<4x110xf32> to vector<4x80xf32>
    %36 = vector.extract_strided_slice %28 {offsets = [0, 21], sizes = [4, 80], strides = [1, 1]} : vector<4x110xf32> to vector<4x80xf32>
    %37 = vector.extract_strided_slice %28 {offsets = [0, 22], sizes = [4, 80], strides = [1, 1]} : vector<4x110xf32> to vector<4x80xf32>
    %38 = tpu.concatenate %29, %30, %31, %32, %33, %34, %35, %36, %37 in 0 : vector<4x80xf32>, vector<4x80xf32>, vector<4x80xf32>, vector<4x80xf32>, vector<4x80xf32>, vector<4x80xf32>, vector<4x80xf32>, vector<4x80xf32>, vector<4x80xf32> -> vector<36x80xf32>
    %c0_13 = arith.constant 0 : index
    %c0_14 = arith.constant 0 : index
    %39 = vector.load %arg9[%c0_13, %c0_14] : memref<4x36xf32, #tpu.memory_space<vmem>>, vector<4x36xf32>
    %cst_15 = arith.constant dense<0.000000e+00> : vector<4x80xf32>
    %40 = tpu.matmul %39, %38, %cst_15 {dimension_numbers = #tpu.dot_dimension_numbers<[1], [0], [0], [1], [0, 0, 1, 1], [], []>, precision = #tpu.contract_precision<fp32>} : vector<4x36xf32>, vector<36x80xf32>, vector<4x80xf32> -> vector<4x80xf32>
    %c0_16 = arith.constant 0 : index
    %c0_17 = arith.constant 0 : index
    %41 = vector.load %arg10[%c0_16, %c0_17] : memref<4x1xf32, #tpu.memory_space<vmem>>, vector<4x1xf32>
    %42 = vector.broadcast %41 : vector<4x1xf32> to vector<4x80xf32>
    %43 = arith.addf %40, %42 : vector<4x80xf32>
    %cst_18 = arith.constant 0.000000e+00 : f32
    %44 = vector.broadcast %cst_18 : f32 to vector<4x80xf32>
    %45 = arith.maximumf %43, %44 : vector<4x80xf32>
    %c0_19 = arith.constant 0 : index
    %c0_20 = arith.constant 0 : index
    %46 = vector.load %arg5[%c0_19, %c0_20] : memref<80x110xf32, #tpu.memory_space<vmem>>, vector<80x110xf32>
    %cst_21 = arith.constant dense<0.000000e+00> : vector<4x110xf32>
    %47 = tpu.matmul %45, %46, %cst_21 {dimension_numbers = #tpu.dot_dimension_numbers<[1], [0], [0], [1], [0, 0, 1, 1], [], []>, precision = #tpu.contract_precision<fp32>} : vector<4x80xf32>, vector<80x110xf32>, vector<4x110xf32> -> vector<4x110xf32>
    %48 = vector.extract_strided_slice %47 {offsets = [0, 0], sizes = [4, 109], strides = [1, 1]} : vector<4x110xf32> to vector<4x109xf32>
    %49 = vector.extract_strided_slice %47 {offsets = [0, 1], sizes = [4, 109], strides = [1, 1]} : vector<4x110xf32> to vector<4x109xf32>
    %50 = arith.maximumf %48, %49 : vector<4x109xf32>
    %51 = vector.extract_strided_slice %50 {offsets = [0, 0], sizes = [4, 99], strides = [1, 1]} : vector<4x109xf32> to vector<4x99xf32>
    %52 = vector.extract_strided_slice %50 {offsets = [0, 10], sizes = [4, 99], strides = [1, 1]} : vector<4x109xf32> to vector<4x99xf32>
    %53 = arith.maximumf %51, %52 : vector<4x99xf32>
    %c0_22 = arith.constant 0 : index
    %c0_23 = arith.constant 0 : index
    %54 = vector.load %arg3[%c0_22, %c0_23] : memref<99x42xf32, #tpu.memory_space<vmem>>, vector<99x42xf32>
    %cst_24 = arith.constant dense<0.000000e+00> : vector<4x42xf32>
    %55 = tpu.matmul %53, %54, %cst_24 {dimension_numbers = #tpu.dot_dimension_numbers<[1], [0], [0], [1], [0, 0, 1, 1], [], []>, precision = #tpu.contract_precision<fp32>} : vector<4x99xf32>, vector<99x42xf32>, vector<4x42xf32> -> vector<4x42xf32>
    %56 = vector.extract_strided_slice %55 {offsets = [0, 0], sizes = [4, 24], strides = [1, 1]} : vector<4x42xf32> to vector<4x24xf32>
    %57 = vector.extract_strided_slice %55 {offsets = [0, 1], sizes = [4, 24], strides = [1, 1]} : vector<4x42xf32> to vector<4x24xf32>
    %58 = vector.extract_strided_slice %55 {offsets = [0, 2], sizes = [4, 24], strides = [1, 1]} : vector<4x42xf32> to vector<4x24xf32>
    %59 = vector.extract_strided_slice %55 {offsets = [0, 6], sizes = [4, 24], strides = [1, 1]} : vector<4x42xf32> to vector<4x24xf32>
    %60 = vector.extract_strided_slice %55 {offsets = [0, 7], sizes = [4, 24], strides = [1, 1]} : vector<4x42xf32> to vector<4x24xf32>
    %61 = vector.extract_strided_slice %55 {offsets = [0, 8], sizes = [4, 24], strides = [1, 1]} : vector<4x42xf32> to vector<4x24xf32>
    %62 = vector.extract_strided_slice %55 {offsets = [0, 12], sizes = [4, 24], strides = [1, 1]} : vector<4x42xf32> to vector<4x24xf32>
    %63 = vector.extract_strided_slice %55 {offsets = [0, 13], sizes = [4, 24], strides = [1, 1]} : vector<4x42xf32> to vector<4x24xf32>
    %64 = vector.extract_strided_slice %55 {offsets = [0, 14], sizes = [4, 24], strides = [1, 1]} : vector<4x42xf32> to vector<4x24xf32>
    %65 = tpu.concatenate %56, %57, %58, %59, %60, %61, %62, %63, %64 in 0 : vector<4x24xf32>, vector<4x24xf32>, vector<4x24xf32>, vector<4x24xf32>, vector<4x24xf32>, vector<4x24xf32>, vector<4x24xf32>, vector<4x24xf32>, vector<4x24xf32> -> vector<36x24xf32>
    %c0_25 = arith.constant 0 : index
    %c0_26 = arith.constant 0 : index
    %66 = vector.load %arg11[%c0_25, %c0_26] : memref<8x36xf32, #tpu.memory_space<vmem>>, vector<8x36xf32>
    %cst_27 = arith.constant dense<0.000000e+00> : vector<8x24xf32>
    %67 = tpu.matmul %66, %65, %cst_27 {dimension_numbers = #tpu.dot_dimension_numbers<[1], [0], [0], [1], [0, 0, 1, 1], [], []>, precision = #tpu.contract_precision<fp32>} : vector<8x36xf32>, vector<36x24xf32>, vector<8x24xf32> -> vector<8x24xf32>
    %c0_28 = arith.constant 0 : index
    %c0_29 = arith.constant 0 : index
    %68 = vector.load %arg12[%c0_28, %c0_29] : memref<8x1xf32, #tpu.memory_space<vmem>>, vector<8x1xf32>
    %69 = vector.broadcast %68 : vector<8x1xf32> to vector<8x24xf32>
    %70 = arith.addf %67, %69 : vector<8x24xf32>
    %cst_30 = arith.constant 0.000000e+00 : f32
    %71 = vector.broadcast %cst_30 : f32 to vector<8x24xf32>
    %72 = arith.maximumf %70, %71 : vector<8x24xf32>
    %c0_31 = arith.constant 0 : index
    %c0_32 = arith.constant 0 : index
    %73 = vector.load %arg6[%c0_31, %c0_32] : memref<24x42xf32, #tpu.memory_space<vmem>>, vector<24x42xf32>
    %cst_33 = arith.constant dense<0.000000e+00> : vector<8x42xf32>
    %74 = tpu.matmul %72, %73, %cst_33 {dimension_numbers = #tpu.dot_dimension_numbers<[1], [0], [0], [1], [0, 0, 1, 1], [], []>, precision = #tpu.contract_precision<fp32>} : vector<8x24xf32>, vector<24x42xf32>, vector<8x42xf32> -> vector<8x42xf32>
    %75 = vector.extract_strided_slice %74 {offsets = [0, 0], sizes = [8, 24], strides = [1, 1]} : vector<8x42xf32> to vector<8x24xf32>
    %76 = vector.extract_strided_slice %74 {offsets = [0, 1], sizes = [8, 24], strides = [1, 1]} : vector<8x42xf32> to vector<8x24xf32>
    %77 = vector.extract_strided_slice %74 {offsets = [0, 2], sizes = [8, 24], strides = [1, 1]} : vector<8x42xf32> to vector<8x24xf32>
    %78 = vector.extract_strided_slice %74 {offsets = [0, 6], sizes = [8, 24], strides = [1, 1]} : vector<8x42xf32> to vector<8x24xf32>
    %79 = vector.extract_strided_slice %74 {offsets = [0, 7], sizes = [8, 24], strides = [1, 1]} : vector<8x42xf32> to vector<8x24xf32>
    %80 = vector.extract_strided_slice %74 {offsets = [0, 8], sizes = [8, 24], strides = [1, 1]} : vector<8x42xf32> to vector<8x24xf32>
    %81 = vector.extract_strided_slice %74 {offsets = [0, 12], sizes = [8, 24], strides = [1, 1]} : vector<8x42xf32> to vector<8x24xf32>
    %82 = vector.extract_strided_slice %74 {offsets = [0, 13], sizes = [8, 24], strides = [1, 1]} : vector<8x42xf32> to vector<8x24xf32>
    %83 = vector.extract_strided_slice %74 {offsets = [0, 14], sizes = [8, 24], strides = [1, 1]} : vector<8x42xf32> to vector<8x24xf32>
    %84 = tpu.concatenate %75, %76, %77, %78, %79, %80, %81, %82, %83 in 0 : vector<8x24xf32>, vector<8x24xf32>, vector<8x24xf32>, vector<8x24xf32>, vector<8x24xf32>, vector<8x24xf32>, vector<8x24xf32>, vector<8x24xf32>, vector<8x24xf32> -> vector<72x24xf32>
    %c0_34 = arith.constant 0 : index
    %c0_35 = arith.constant 0 : index
    %85 = vector.load %arg13[%c0_34, %c0_35] : memref<8x72xf32, #tpu.memory_space<vmem>>, vector<8x72xf32>
    %cst_36 = arith.constant dense<0.000000e+00> : vector<8x24xf32>
    %86 = tpu.matmul %85, %84, %cst_36 {dimension_numbers = #tpu.dot_dimension_numbers<[1], [0], [0], [1], [0, 0, 1, 1], [], []>, precision = #tpu.contract_precision<fp32>} : vector<8x72xf32>, vector<72x24xf32>, vector<8x24xf32> -> vector<8x24xf32>
    %c0_37 = arith.constant 0 : index
    %c0_38 = arith.constant 0 : index
    %87 = vector.load %arg14[%c0_37, %c0_38] : memref<8x1xf32, #tpu.memory_space<vmem>>, vector<8x1xf32>
    %88 = vector.broadcast %87 : vector<8x1xf32> to vector<8x24xf32>
    %89 = arith.addf %86, %88 : vector<8x24xf32>
    %cst_39 = arith.constant 0.000000e+00 : f32
    %90 = vector.broadcast %cst_39 : f32 to vector<8x24xf32>
    %91 = arith.maximumf %89, %90 : vector<8x24xf32>
    %c0_40 = arith.constant 0 : index
    %c0_41 = arith.constant 0 : index
    %92 = vector.load %arg4[%c0_40, %c0_41] : memref<24x110xf32, #tpu.memory_space<vmem>>, vector<24x110xf32>
    %cst_42 = arith.constant dense<0.000000e+00> : vector<8x110xf32>
    %93 = tpu.matmul %91, %92, %cst_42 {dimension_numbers = #tpu.dot_dimension_numbers<[1], [0], [0], [1], [0, 0, 1, 1], [], []>, precision = #tpu.contract_precision<fp32>} : vector<8x24xf32>, vector<24x110xf32>, vector<8x110xf32> -> vector<8x110xf32>
    %94 = vector.extract_strided_slice %93 {offsets = [0, 0], sizes = [8, 80], strides = [1, 1]} : vector<8x110xf32> to vector<8x80xf32>
    %95 = vector.extract_strided_slice %93 {offsets = [0, 1], sizes = [8, 80], strides = [1, 1]} : vector<8x110xf32> to vector<8x80xf32>
    %96 = vector.extract_strided_slice %93 {offsets = [0, 2], sizes = [8, 80], strides = [1, 1]} : vector<8x110xf32> to vector<8x80xf32>
    %97 = vector.extract_strided_slice %93 {offsets = [0, 10], sizes = [8, 80], strides = [1, 1]} : vector<8x110xf32> to vector<8x80xf32>
    %98 = vector.extract_strided_slice %93 {offsets = [0, 11], sizes = [8, 80], strides = [1, 1]} : vector<8x110xf32> to vector<8x80xf32>
    %99 = vector.extract_strided_slice %93 {offsets = [0, 12], sizes = [8, 80], strides = [1, 1]} : vector<8x110xf32> to vector<8x80xf32>
    %100 = vector.extract_strided_slice %93 {offsets = [0, 20], sizes = [8, 80], strides = [1, 1]} : vector<8x110xf32> to vector<8x80xf32>
    %101 = vector.extract_strided_slice %93 {offsets = [0, 21], sizes = [8, 80], strides = [1, 1]} : vector<8x110xf32> to vector<8x80xf32>
    %102 = vector.extract_strided_slice %93 {offsets = [0, 22], sizes = [8, 80], strides = [1, 1]} : vector<8x110xf32> to vector<8x80xf32>
    %103 = tpu.concatenate %94, %95, %96, %97, %98, %99, %100, %101, %102 in 0 : vector<8x80xf32>, vector<8x80xf32>, vector<8x80xf32>, vector<8x80xf32>, vector<8x80xf32>, vector<8x80xf32>, vector<8x80xf32>, vector<8x80xf32>, vector<8x80xf32> -> vector<72x80xf32>
    %c0_43 = arith.constant 0 : index
    %c0_44 = arith.constant 0 : index
    %104 = vector.load %arg15[%c0_43, %c0_44] : memref<8x72xf32, #tpu.memory_space<vmem>>, vector<8x72xf32>
    %cst_45 = arith.constant dense<0.000000e+00> : vector<8x80xf32>
    %105 = tpu.matmul %104, %103, %cst_45 {dimension_numbers = #tpu.dot_dimension_numbers<[1], [0], [0], [1], [0, 0, 1, 1], [], []>, precision = #tpu.contract_precision<fp32>} : vector<8x72xf32>, vector<72x80xf32>, vector<8x80xf32> -> vector<8x80xf32>
    %c0_46 = arith.constant 0 : index
    %c0_47 = arith.constant 0 : index
    %106 = vector.load %arg16[%c0_46, %c0_47] : memref<8x1xf32, #tpu.memory_space<vmem>>, vector<8x1xf32>
    %107 = vector.broadcast %106 : vector<8x1xf32> to vector<8x80xf32>
    %108 = arith.addf %105, %107 : vector<8x80xf32>
    %c0_48 = arith.constant 0 : index
    %c0_49 = arith.constant 0 : index
    %109 = vector.load %arg5[%c0_48, %c0_49] : memref<80x110xf32, #tpu.memory_space<vmem>>, vector<80x110xf32>
    %cst_50 = arith.constant dense<0.000000e+00> : vector<8x110xf32>
    %110 = tpu.matmul %108, %109, %cst_50 {dimension_numbers = #tpu.dot_dimension_numbers<[1], [0], [0], [1], [0, 0, 1, 1], [], []>, precision = #tpu.contract_precision<fp32>} : vector<8x80xf32>, vector<80x110xf32>, vector<8x110xf32> -> vector<8x110xf32>
    %111 = tpu.concatenate %47, %110 in 0 : vector<4x110xf32>, vector<8x110xf32> -> vector<12x110xf32>
    %112 = vector.extract_strided_slice %111 {offsets = [0, 0], sizes = [12, 80], strides = [1, 1]} : vector<12x110xf32> to vector<12x80xf32>
    %113 = vector.extract_strided_slice %111 {offsets = [0, 1], sizes = [12, 80], strides = [1, 1]} : vector<12x110xf32> to vector<12x80xf32>
    %114 = vector.extract_strided_slice %111 {offsets = [0, 2], sizes = [12, 80], strides = [1, 1]} : vector<12x110xf32> to vector<12x80xf32>
    %115 = vector.extract_strided_slice %111 {offsets = [0, 10], sizes = [12, 80], strides = [1, 1]} : vector<12x110xf32> to vector<12x80xf32>
    %116 = vector.extract_strided_slice %111 {offsets = [0, 11], sizes = [12, 80], strides = [1, 1]} : vector<12x110xf32> to vector<12x80xf32>
    %117 = vector.extract_strided_slice %111 {offsets = [0, 12], sizes = [12, 80], strides = [1, 1]} : vector<12x110xf32> to vector<12x80xf32>
    %118 = vector.extract_strided_slice %111 {offsets = [0, 20], sizes = [12, 80], strides = [1, 1]} : vector<12x110xf32> to vector<12x80xf32>
    %119 = vector.extract_strided_slice %111 {offsets = [0, 21], sizes = [12, 80], strides = [1, 1]} : vector<12x110xf32> to vector<12x80xf32>
    %120 = vector.extract_strided_slice %111 {offsets = [0, 22], sizes = [12, 80], strides = [1, 1]} : vector<12x110xf32> to vector<12x80xf32>
    %121 = tpu.concatenate %112, %113, %114, %115, %116, %117, %118, %119, %120 in 0 : vector<12x80xf32>, vector<12x80xf32>, vector<12x80xf32>, vector<12x80xf32>, vector<12x80xf32>, vector<12x80xf32>, vector<12x80xf32>, vector<12x80xf32>, vector<12x80xf32> -> vector<108x80xf32>
    %c0_51 = arith.constant 0 : index
    %c0_52 = arith.constant 0 : index
    %122 = vector.load %arg17[%c0_51, %c0_52] : memref<4x108xf32, #tpu.memory_space<vmem>>, vector<4x108xf32>
    %cst_53 = arith.constant dense<0.000000e+00> : vector<4x80xf32>
    %123 = tpu.matmul %122, %121, %cst_53 {dimension_numbers = #tpu.dot_dimension_numbers<[1], [0], [0], [1], [0, 0, 1, 1], [], []>, precision = #tpu.contract_precision<fp32>} : vector<4x108xf32>, vector<108x80xf32>, vector<4x80xf32> -> vector<4x80xf32>
    %c0_54 = arith.constant 0 : index
    %c0_55 = arith.constant 0 : index
    %124 = vector.load %arg18[%c0_54, %c0_55] : memref<4x1xf32, #tpu.memory_space<vmem>>, vector<4x1xf32>
    %125 = vector.broadcast %124 : vector<4x1xf32> to vector<4x80xf32>
    %126 = arith.addf %123, %125 : vector<4x80xf32>
    %cst_56 = arith.constant 0.000000e+00 : f32
    %127 = vector.broadcast %cst_56 : f32 to vector<4x80xf32>
    %128 = arith.maximumf %126, %127 : vector<4x80xf32>
    %c0_57 = arith.constant 0 : index
    %c0_58 = arith.constant 0 : index
    %129 = vector.load %arg5[%c0_57, %c0_58] : memref<80x110xf32, #tpu.memory_space<vmem>>, vector<80x110xf32>
    %cst_59 = arith.constant dense<0.000000e+00> : vector<4x110xf32>
    %130 = tpu.matmul %128, %129, %cst_59 {dimension_numbers = #tpu.dot_dimension_numbers<[1], [0], [0], [1], [0, 0, 1, 1], [], []>, precision = #tpu.contract_precision<fp32>} : vector<4x80xf32>, vector<80x110xf32>, vector<4x110xf32> -> vector<4x110xf32>
    %131 = vector.extract_strided_slice %130 {offsets = [0, 0], sizes = [4, 80], strides = [1, 1]} : vector<4x110xf32> to vector<4x80xf32>
    %132 = vector.extract_strided_slice %130 {offsets = [0, 1], sizes = [4, 80], strides = [1, 1]} : vector<4x110xf32> to vector<4x80xf32>
    %133 = vector.extract_strided_slice %130 {offsets = [0, 2], sizes = [4, 80], strides = [1, 1]} : vector<4x110xf32> to vector<4x80xf32>
    %134 = vector.extract_strided_slice %130 {offsets = [0, 10], sizes = [4, 80], strides = [1, 1]} : vector<4x110xf32> to vector<4x80xf32>
    %135 = vector.extract_strided_slice %130 {offsets = [0, 11], sizes = [4, 80], strides = [1, 1]} : vector<4x110xf32> to vector<4x80xf32>
    %136 = vector.extract_strided_slice %130 {offsets = [0, 12], sizes = [4, 80], strides = [1, 1]} : vector<4x110xf32> to vector<4x80xf32>
    %137 = vector.extract_strided_slice %130 {offsets = [0, 20], sizes = [4, 80], strides = [1, 1]} : vector<4x110xf32> to vector<4x80xf32>
    %138 = vector.extract_strided_slice %130 {offsets = [0, 21], sizes = [4, 80], strides = [1, 1]} : vector<4x110xf32> to vector<4x80xf32>
    %139 = vector.extract_strided_slice %130 {offsets = [0, 22], sizes = [4, 80], strides = [1, 1]} : vector<4x110xf32> to vector<4x80xf32>
    %140 = tpu.concatenate %131, %132, %133, %134, %135, %136, %137, %138, %139 in 0 : vector<4x80xf32>, vector<4x80xf32>, vector<4x80xf32>, vector<4x80xf32>, vector<4x80xf32>, vector<4x80xf32>, vector<4x80xf32>, vector<4x80xf32>, vector<4x80xf32> -> vector<36x80xf32>
    %c0_60 = arith.constant 0 : index
    %c0_61 = arith.constant 0 : index
    %141 = vector.load %arg19[%c0_60, %c0_61] : memref<4x36xf32, #tpu.memory_space<vmem>>, vector<4x36xf32>
    %cst_62 = arith.constant dense<0.000000e+00> : vector<4x80xf32>
    %142 = tpu.matmul %141, %140, %cst_62 {dimension_numbers = #tpu.dot_dimension_numbers<[1], [0], [0], [1], [0, 0, 1, 1], [], []>, precision = #tpu.contract_precision<fp32>} : vector<4x36xf32>, vector<36x80xf32>, vector<4x80xf32> -> vector<4x80xf32>
    %c0_63 = arith.constant 0 : index
    %c0_64 = arith.constant 0 : index
    %143 = vector.load %arg20[%c0_63, %c0_64] : memref<4x1xf32, #tpu.memory_space<vmem>>, vector<4x1xf32>
    %144 = vector.broadcast %143 : vector<4x1xf32> to vector<4x80xf32>
    %145 = arith.addf %142, %144 : vector<4x80xf32>
    %cst_65 = arith.constant 0.000000e+00 : f32
    %146 = vector.broadcast %cst_65 : f32 to vector<4x80xf32>
    %147 = arith.maximumf %145, %146 : vector<4x80xf32>
    %c0_66 = arith.constant 0 : index
    %c0_67 = arith.constant 0 : index
    %148 = vector.load %arg21[%c0_66, %c0_67] : memref<3x4xf32, #tpu.memory_space<vmem>>, vector<3x4xf32>
    %cst_68 = arith.constant dense<0.000000e+00> : vector<3x80xf32>
    %149 = tpu.matmul %148, %147, %cst_68 {dimension_numbers = #tpu.dot_dimension_numbers<[1], [0], [0], [1], [0, 0, 1, 1], [], []>, precision = #tpu.contract_precision<fp32>} : vector<3x4xf32>, vector<4x80xf32>, vector<3x80xf32> -> vector<3x80xf32>
    %c0_69 = arith.constant 0 : index
    %c0_70 = arith.constant 0 : index
    %150 = vector.load %arg22[%c0_69, %c0_70] : memref<3x1xf32, #tpu.memory_space<vmem>>, vector<3x1xf32>
    %151 = vector.broadcast %150 : vector<3x1xf32> to vector<3x80xf32>
    %152 = arith.addf %149, %151 : vector<3x80xf32>
    %cst_71 = arith.constant 0.000000e+00 : f32
    %153 = vector.broadcast %cst_71 : f32 to vector<3x80xf32>
    %154 = arith.subf %153, %152 : vector<3x80xf32>
    %155 = math.exp %154 : vector<3x80xf32>
    %cst_72 = arith.constant 1.000000e+00 : f32
    %156 = vector.broadcast %cst_72 : f32 to vector<3x80xf32>
    %157 = arith.addf %156, %155 : vector<3x80xf32>
    %cst_73 = arith.constant 1.000000e+00 : f32
    %158 = vector.broadcast %cst_73 : f32 to vector<3x80xf32>
    %159 = arith.divf %158, %157 : vector<3x80xf32>
    %c0_74 = arith.constant 0 : index
    %c0_75 = arith.constant 0 : index
    %c0_76 = arith.constant 0 : index
    %160 = vector.load %arg23[%c0_74, %c0_75, %c0_76] : memref<1x3x80xf32, #tpu.memory_space<vmem>>, vector<1x3x80xf32>
    %161 = vector.shape_cast %160 : vector<1x3x80xf32> to vector<3x80xf32>
    %162 = vector.shape_cast %159 : vector<3x80xf32> to vector<1x3x80xf32>
    tpu.vector_store %arg23[%c0_74, %c0_75, %c0_76], %162 {strides = array<i32>} : memref<1x3x80xf32, #tpu.memory_space<vmem>>, vector<1x3x80xf32>,
    return
  }
  func.func @transform_0(%arg0: i32) -> (i32, i32, i32) {
    %c0_i32 = arith.constant 0 : i32
    %c0_i32_0 = arith.constant 0 : i32
    %c0_i32_1 = arith.constant 0 : i32
    return %arg0, %c0_i32, %c0_i32_0 : i32, i32, i32
  }
  func.func @transform_1(%arg0: i32) -> (i32, i32) {
    %c0_i32 = arith.constant 0 : i32
    %c0_i32_0 = arith.constant 0 : i32
    %c0_i32_1 = arith.constant 0 : i32
    return %c0_i32, %c0_i32_0 : i32, i32
  }
  func.func @transform_2(%arg0: i32) -> (i32, i32) {
    %c0_i32 = arith.constant 0 : i32
    %c0_i32_0 = arith.constant 0 : i32
    %c0_i32_1 = arith.constant 0 : i32
    return %c0_i32, %c0_i32_0 : i32, i32
  }
  func.func @transform_3(%arg0: i32) -> (i32, i32) {
    %c0_i32 = arith.constant 0 : i32
    %c0_i32_0 = arith.constant 0 : i32
    %c0_i32_1 = arith.constant 0 : i32
    return %c0_i32, %c0_i32_0 : i32, i32
  }
  func.func @transform_4(%arg0: i32) -> (i32, i32) {
    %c0_i32 = arith.constant 0 : i32
    %c0_i32_0 = arith.constant 0 : i32
    %c0_i32_1 = arith.constant 0 : i32
    return %c0_i32, %c0_i32_0 : i32, i32
  }
  func.func @transform_5(%arg0: i32) -> (i32, i32) {
    %c0_i32 = arith.constant 0 : i32
    %c0_i32_0 = arith.constant 0 : i32
    %c0_i32_1 = arith.constant 0 : i32
    return %c0_i32, %c0_i32_0 : i32, i32
  }
  func.func @transform_6(%arg0: i32) -> (i32, i32) {
    %c0_i32 = arith.constant 0 : i32
    %c0_i32_0 = arith.constant 0 : i32
    %c0_i32_1 = arith.constant 0 : i32
    return %c0_i32, %c0_i32_0 : i32, i32
  }
  func.func @transform_7(%arg0: i32) -> (i32, i32) {
    %c0_i32 = arith.constant 0 : i32
    %c0_i32_0 = arith.constant 0 : i32
    %c0_i32_1 = arith.constant 0 : i32
    return %c0_i32, %c0_i32_0 : i32, i32
  }
  func.func @transform_8(%arg0: i32) -> (i32, i32) {
    %c0_i32 = arith.constant 0 : i32
    %c0_i32_0 = arith.constant 0 : i32
    %c0_i32_1 = arith.constant 0 : i32
    return %c0_i32, %c0_i32_0 : i32, i32
  }
  func.func @transform_9(%arg0: i32) -> (i32, i32) {
    %c0_i32 = arith.constant 0 : i32
    %c0_i32_0 = arith.constant 0 : i32
    %c0_i32_1 = arith.constant 0 : i32
    return %c0_i32, %c0_i32_0 : i32, i32
  }
  func.func @transform_10(%arg0: i32) -> (i32, i32) {
    %c0_i32 = arith.constant 0 : i32
    %c0_i32_0 = arith.constant 0 : i32
    %c0_i32_1 = arith.constant 0 : i32
    return %c0_i32, %c0_i32_0 : i32, i32
  }
  func.func @transform_11(%arg0: i32) -> (i32, i32) {
    %c0_i32 = arith.constant 0 : i32
    %c0_i32_0 = arith.constant 0 : i32
    %c0_i32_1 = arith.constant 0 : i32
    return %c0_i32, %c0_i32_0 : i32, i32
  }
  func.func @transform_12(%arg0: i32) -> (i32, i32) {
    %c0_i32 = arith.constant 0 : i32
    %c0_i32_0 = arith.constant 0 : i32
    %c0_i32_1 = arith.constant 0 : i32
    return %c0_i32, %c0_i32_0 : i32, i32
  }
  func.func @transform_13(%arg0: i32) -> (i32, i32) {
    %c0_i32 = arith.constant 0 : i32
    %c0_i32_0 = arith.constant 0 : i32
    %c0_i32_1 = arith.constant 0 : i32
    return %c0_i32, %c0_i32_0 : i32, i32
  }
  func.func @transform_14(%arg0: i32) -> (i32, i32) {
    %c0_i32 = arith.constant 0 : i32
    %c0_i32_0 = arith.constant 0 : i32
    %c0_i32_1 = arith.constant 0 : i32
    return %c0_i32, %c0_i32_0 : i32, i32
  }
  func.func @transform_15(%arg0: i32) -> (i32, i32) {
    %c0_i32 = arith.constant 0 : i32
    %c0_i32_0 = arith.constant 0 : i32
    %c0_i32_1 = arith.constant 0 : i32
    return %c0_i32, %c0_i32_0 : i32, i32
  }
  func.func @transform_16(%arg0: i32) -> (i32, i32) {
    %c0_i32 = arith.constant 0 : i32
    %c0_i32_0 = arith.constant 0 : i32
    %c0_i32_1 = arith.constant 0 : i32
    return %c0_i32, %c0_i32_0 : i32, i32
  }
  func.func @transform_17(%arg0: i32) -> (i32, i32) {
    %c0_i32 = arith.constant 0 : i32
    %c0_i32_0 = arith.constant 0 : i32
    %c0_i32_1 = arith.constant 0 : i32
    return %c0_i32, %c0_i32_0 : i32, i32
  }
  func.func @transform_18(%arg0: i32) -> (i32, i32) {
    %c0_i32 = arith.constant 0 : i32
    %c0_i32_0 = arith.constant 0 : i32
    %c0_i32_1 = arith.constant 0 : i32
    return %c0_i32, %c0_i32_0 : i32, i32
  }
  func.func @transform_19(%arg0: i32) -> (i32, i32) {
    %c0_i32 = arith.constant 0 : i32
    %c0_i32_0 = arith.constant 0 : i32
    %c0_i32_1 = arith.constant 0 : i32
    return %c0_i32, %c0_i32_0 : i32, i32
  }
  func.func @transform_20(%arg0: i32) -> (i32, i32) {
    %c0_i32 = arith.constant 0 : i32
    %c0_i32_0 = arith.constant 0 : i32
    %c0_i32_1 = arith.constant 0 : i32
    return %c0_i32, %c0_i32_0 : i32, i32
  }
  func.func @transform_21(%arg0: i32) -> (i32, i32) {
    %c0_i32 = arith.constant 0 : i32
    %c0_i32_0 = arith.constant 0 : i32
    %c0_i32_1 = arith.constant 0 : i32
    return %c0_i32, %c0_i32_0 : i32, i32
  }
  func.func @transform_22(%arg0: i32) -> (i32, i32, i32) {
    %c0_i32 = arith.constant 0 : i32
    %c0_i32_0 = arith.constant 0 : i32
    %c0_i32_1 = arith.constant 0 : i32
    return %arg0, %c0_i32, %c0_i32_0 : i32, i32, i32
  }
}

</mosaic_0001>

<bundles_post_ra>
// kernel: _lambda_.1
= control target key start
LH: loop header
LB: loop body
LE: loop exit
PB: predicated region body
PF: predicated region fallthrough
CT: control target
= control target key end

     0   :  { %s16969_s0 = inlined_call_operand.vmem [shape: f32[2,3,256], index: 0, kind: input, shape index: {}]   ;;  %s16970_s1 = inlined_call_operand.hbm [shape: f32[239,110], index: 1, kind: input, shape index: {}]   ;;  %s16971_s2 = inlined_call_operand.vmem [shape: f32[99,42], index: 2, kind: input, shape index: {}]   ;;  %s16972_s3 = inlined_call_operand.hbm [shape: f32[24,110], index: 3, kind: input, shape index: {}]   ;;  %s16973_s4 = inlined_call_operand.hbm [shape: f32[80,110], index: 4, kind: input, shape index: {}]   ;;  %s16974_s5 = inlined_call_operand.vmem [shape: f32[24,42], index: 5, kind: input, shape index: {}]   ;;  %s16975_s6 = inlined_call_operand.hbm [shape: f32[4,27], index: 6, kind: input, shape index: {}]   ;;  %s16976_s7 = inlined_call_operand.hbm [shape: f32[4,1], index: 7, kind: input, shape index: {}]   ;;  %s16977_s8 = inlined_call_operand.hbm [shape: f32[4,36], index: 8, kind: input, shape index: {}]   ;;  %s16978_s9 = inlined_call_operand.hbm [shape: f32[4,1], index: 9, kind: input, shape index: {}]   ;;  %s16979_s10 = inlined_call_operand.hbm [shape: f32[8,36], index: 10, kind: input, shape index: {}]   ;;  %s16980_s11 = inlined_call_operand.hbm [shape: f32[8,1], index: 11, kind: input, shape index: {}]   ;;  %s16981_s12 = inlined_call_operand.hbm [shape: f32[8,72], index: 12, kind: input, shape index: {}]   ;;  %s16982_s13 = inlined_call_operand.vmem [shape: f32[8,1], index: 13, kind: input, shape index: {}]   ;;  %s16983_s14 = inlined_call_operand.vmem [shape: f32[8,72], index: 14, kind: input, shape index: {}]   ;;  %s16984_s15 = inlined_call_operand.vmem [shape: f32[8,1], index: 15, kind: input, shape index: {}]   ;;  %s16985_s16 = inlined_call_operand.hbm [shape: f32[4,108], index: 16, kind: input, shape index: {}]   ;;  %s16986_s17 = inlined_call_operand.vmem [shape: f32[4,1], index: 17, kind: input, shape index: {}]   ;;  %s16987_s18 = inlined_call_operand.vmem [shape: f32[4,36], index: 18, kind: input, shape index: {}]   ;;  %s16988_s19 = inlined_call_operand.vmem [shape: f32[4,1], index: 19, kind: input, shape index: {}]   ;;  %s16989_s20 = inlined_call_operand.vmem [shape: f32[3,4], index: 20, kind: input, shape index: {}]   ;;  %s16990_s21 = inlined_call_operand.vmem [shape: f32[3,1], index: 21, kind: input, shape index: {}]   ;;  %s16991_s22 = inlined_call_operand.vmem [shape: f32[2,3,80], index: 22, kind: output, shape index: {}]  }
   0x1   :  { %17075 = sst [smem:[#allocation35_spill]] %s16969_s0 }
   0x2   :  { %17076 = sst [smem:[#allocation36_spill]] %s16970_s1 }
   0x3   :  { %17077 = sst [smem:[#allocation37_spill]] %s16971_s2 }
   0x4   :  { %17078 = sst [smem:[#allocation38_spill]] %s16972_s3 }
   0x5   :  { %17079 = sst [smem:[#allocation39_spill]] %s16973_s4 }
   0x6   :  { %17080 = sst [smem:[#allocation40_spill]] %s16974_s5 }
   0x7   :  { %17081 = sst [smem:[#allocation41_spill]] %s16975_s6 }
   0x8   :  { %17082 = sst [smem:[#allocation42_spill]] %s16977_s8 }
   0x9   :  { %17083 = sst [smem:[#allocation43_spill]] %s16979_s10 }
   0xa   :  { %17084 = sst [smem:[#allocation44_spill]] %s16981_s12 }
   0xb   :  { %17085 = sst [smem:[#allocation45_spill]] %s16986_s17 }
   0xc   :  { %17086 = sst [smem:[#allocation46_spill]] %s16987_s18 }
   0xd   :  { %17087 = sst [smem:[#allocation47_spill]] %s16988_s19 }
   0xe   :  { %17088 = sst [smem:[#allocation48_spill]] %s16989_s20 }
   0xf   :  { %17089 = sst [smem:[#allocation49_spill]] %s16990_s21 }
  0x10   :  { %17090 = sst [smem:[#allocation50_spill]] %s16991_s22 }
  0x11   :  { %27 = vsyncpa [#allocation3], 0 }
  0x12   :  { %28 = vsyncpa [#allocation5], 0 }
  0x13   :  { %29 = vsyncpa [#allocation8], 0 }
  0x14   :  { %30 = vsyncpa [#allocation11], 0 }
  0x15   :  { %31 = vsyncpa [#allocation14], 0 }
  0x16   :  { %32 = vsyncpa [#allocation17], 0  ;;  %s14611_s3 = smov 0  }
  0x17 LB: > { %17091 = sst [smem:[#allocation25_spill]] %s14463_s3  ;;  %s14617_s28 = sadd.s32 4294967295, %s14463_s3   ;;  %s14463_s3 = sphi %s14611_s3, %s38_s3  }
  0x18   : > { %p10236_p0 = scmp.ge.s32.totalorder %s14463_s3, 1  ;;  %p536_p1 = scmp.lt.s32.totalorder %s14463_s3, 3 }
  0x19   : > { %p16999_p2 = scmp.eq.s32.totalorder %s14617_s28, 0  ;;  %s14465_s30 = smov [#allocation4]  }
  0x1a   : > { %p14622_p3 = pnand %p10236_p0, %p536_p1  ;;  %s564_s4 = sshll.u32 %s14465_s30, 4  ;;  %s14626_s4 = int_to_ptr.vmem [resolvable:$true] %s564_s4 }
  0x1b   : > { %s14466_s0 = smov [#allocation7]   ;;  %s14467_s5 = smov [#allocation10]  }
  0x1c   : > { %s17092_s29 = scalar_select %p14622_p3, 1, 0 }
  0x1d   : > { %p14024_p4 = pneg %p14622_p3  ;;  %s594_s23 = sshll.u32 %s14466_s0, 4  ;;  %s14630_s23 = int_to_ptr.vmem [resolvable:$true] %s594_s23 }
  0x1e   : > { %s616_s24 = sshll.u32 %s14467_s5, 4  ;;  %s14468_s6 = smov [#allocation13]   ;;  %s14638_s24 = int_to_ptr.vmem [resolvable:$true] %s616_s24 }
  0x1f   : > { %p14634_p5 = pnand %p16999_p2, %p14024_p4  ;;  %s14640_s25 = sshll.u32 %s14468_s6, 4  ;;  %s639_s25 = int_to_ptr.vmem [resolvable:$true] %s14640_s25 }
  0x20   : > { %s17094_s27 = sld [smem:[#allocation38_spill]] }
  0x21   : > { %p14650_p7 = pneg %p14634_p5 }
  0x26   : > { %s14125_s30 = scalar_lea.hbm %s17094_s27, 384 }
  0x27   : > { %p14126_p6 = scmp.ne.s32.totalorder %s17094_s27, %s14125_s30  ;;  %p14132_p10 = scmp.lt.u32.totalorder %s14125_s30, %s17094_s27 }
  0x29   : > { %p14128_p8 = pnand %p14650_p7, %p14126_p6 }
  0x2b   : > { %p14129_p9 = pneg %p14128_p8 }
  0x2d   : > { %p14134_p11 = pnand %p14132_p10, %p14129_p9 }
  0x2f   : > { %14137 = shalt.err (!%p14134_p11)
}
  0x30   : > { %s14138_s3 = scalar_lea.vmem %s14626_s4, 384  ;;  %p14146_p1 = scmp.lt.s32.totalorder %s14626_s4, %s14626_s4 }
  0x31   : > { %p14139_p12 = scmp.ne.s32.totalorder %s14626_s4, %s14138_s3  ;;  %p14147_p4 = scmp.lt.s32.totalorder %s14138_s3, %s14138_s3 }
  0x33   : > { %p14141_p13 = pnand %p14139_p12, %p14650_p7  ;;  %p14148_p6 = por %p14147_p4, %p14146_p1 }
  0x35   : > { %p14142_p0 = pneg %p14141_p13 }
  0x37   : > { %p14149_p8 = pnand %p14148_p6, %p14142_p0 }
  0x39   : > { %14152 = shalt.err (!%p14149_p8)
}
  0x3a   : > { %s14469_s26 = smov 128   ;;  %s14470_s2 = smov 8  }
  0x3b   : > { %14030 = dma.hbm_to_vmem [thread:$0]  (!%p14634_p5), %s17094_s27, 384, %s14626_s4, [#allocation5], %s14469_s26, %s14469_s26, %s14470_s2  }
  0x3c   : > { %s17096_s20 = sld [smem:[#allocation41_spill]] }
  0x42   : > { %s14153_s3 = scalar_lea.hbm %s17096_s20, 64 }
  0x43   : > { %p14154_p9 = scmp.ne.s32.totalorder %s17096_s20, %s14153_s3  ;;  %p14160_p12 = scmp.lt.u32.totalorder %s14153_s3, %s17096_s20 }
  0x45   : > { %p14156_p10 = pnand %p14154_p9, %p14650_p7 }
  0x47   : > { %p14157_p11 = pneg %p14156_p10 }
  0x49   : > { %p14162_p13 = pnand %p14160_p12, %p14157_p11 }
  0x4b   : > { %14165 = shalt.err (!%p14162_p13)
}
  0x4c   : > { %s14166_s4 = scalar_lea.vmem %s14630_s23, 64  ;;  %p14174_p6 = scmp.lt.s32.totalorder %s14630_s23, %s14630_s23 }
  0x4d   : > { %p14167_p0 = scmp.ne.s32.totalorder %s14630_s23, %s14166_s4  ;;  %p14175_p8 = scmp.lt.s32.totalorder %s14166_s4, %s14166_s4 }
  0x4f   : > { %p14169_p1 = pnand %p14167_p0, %p14650_p7  ;;  %p14176_p9 = por %p14175_p8, %p14174_p6 }
  0x51   : > { %p14170_p4 = pneg %p14169_p1 }
  0x53   : > { %p14177_p10 = pnand %p14176_p9, %p14170_p4 }
  0x55   : > { %14180 = shalt.err (!%p14177_p10)
}
  0x56   : > { %14036 = dma.hbm_to_vmem [thread:$0]  (!%p14634_p5), %s17096_s20, 64, %s14630_s23, [#allocation8]  }
  0x57   : > { %s17097_s8 = sld [smem:[#allocation42_spill]] }
  0x5d   : > { %s14181_s30 = scalar_lea.hbm %s17097_s8, 64 }
  0x5e   : > { %p14182_p11 = scmp.ne.s32.totalorder %s17097_s8, %s14181_s30  ;;  %p14188_p0 = scmp.lt.u32.totalorder %s14181_s30, %s17097_s8 }
  0x60   : > { %p14184_p12 = pnand %p14182_p11, %p14650_p7 }
  0x62   : > { %p14185_p13 = pneg %p14184_p12 }
  0x64   : > { %p14190_p1 = pnand %p14188_p0, %p14185_p13 }
  0x66   : > { %14193 = shalt.err (!%p14190_p1)
}
  0x67   : > { %s14194_s23 = scalar_lea.vmem %s14638_s24, 64  ;;  %p14202_p9 = scmp.lt.s32.totalorder %s14638_s24, %s14638_s24 }
  0x68   : > { %p14195_p4 = scmp.ne.s32.totalorder %s14638_s24, %s14194_s23  ;;  %p14203_p10 = scmp.lt.s32.totalorder %s14194_s23, %s14194_s23 }
  0x6a   : > { %p14197_p6 = pnand %p14195_p4, %p14650_p7  ;;  %p14204_p11 = por %p14203_p10, %p14202_p9 }
  0x6c   : > { %p14198_p8 = pneg %p14197_p6 }
  0x6e   : > { %p14205_p12 = pnand %p14204_p11, %p14198_p8 }
  0x70   : > { %14208 = shalt.err (!%p14205_p12)
}
  0x71   : > { %14042 = dma.hbm_to_vmem [thread:$0]  (!%p14634_p5), %s17097_s8, 64, %s14638_s24, [#allocation11]  }
  0x72   : > { %s17098_s10 = sld [smem:[#allocation43_spill]] }
  0x78   : > { %s14209_s21 = scalar_lea.hbm %s17098_s10, 128 }
  0x79   : > { %p14210_p13 = scmp.ne.s32.totalorder %s17098_s10, %s14209_s21  ;;  %p14216_p4 = scmp.lt.u32.totalorder %s14209_s21, %s17098_s10 }
  0x7b   : > { %p14212_p0 = pnand %p14210_p13, %p14650_p7 }
  0x7d   : > { %p14213_p1 = pneg %p14212_p0 }
  0x7f   : > { %p14218_p6 = pnand %p14216_p4, %p14213_p1 }
  0x81   : > { %14221 = shalt.err (!%p14218_p6)
}
  0x82   : > { %s14222_s3 = scalar_lea.vmem %s639_s25, 128  ;;  %p14230_p11 = scmp.lt.s32.totalorder %s639_s25, %s639_s25 }
  0x83   : > { %p14223_p8 = scmp.ne.s32.totalorder %s639_s25, %s14222_s3  ;;  %p14231_p12 = scmp.lt.s32.totalorder %s14222_s3, %s14222_s3 }
  0x85   : > { %p14225_p9 = pnand %p14223_p8, %p14650_p7  ;;  %p14232_p2 = por %p14231_p12, %p14230_p11 }
  0x87   : > { %p14226_p10 = pneg %p14225_p9 }
  0x89   : > { %p14233_p3 = pnand %p14232_p2, %p14226_p10 }
  0x8b   : > { %14236 = shalt.err (!%p14233_p3)
}
  0x8c   : > { %14048 = dma.hbm_to_vmem [thread:$0]  (!%p14634_p5), %s17098_s10, 128, %s639_s25, [#allocation14]  }
  0x8d   : > { %s14471_s4 = smov [#allocation16]   ;;  %s14472_s18 = smov [#allocation2]  }
  0x8e   : > { %s660_s17 = sshll.u32 %s14471_s4, 4  ;;  %s548_s19 = sshll.u32 %s14472_s18, 4  ;;  %s661_s17 = int_to_ptr.vmem [resolvable:$true] %s660_s17  ;;  %s549_s19 = int_to_ptr.vmem [resolvable:$true] %s548_s19 }
  0x8f   : > { %s17099_s12 = sld [smem:[#allocation44_spill]] }
  0x95   : > { %s14237_s0 = scalar_lea.hbm %s17099_s12, 128 }
  0x96   : > { %p14238_p2 = scmp.ne.s32.totalorder %s17099_s12, %s14237_s0  ;;  %p14244_p0 = scmp.lt.u32.totalorder %s14237_s0, %s17099_s12 }
  0x98   : > { %p14240_p3 = pnand %p14238_p2, %p14650_p7 }
  0x9a   : > { %p14241_p13 = pneg %p14240_p3 }
  0x9c   : > { %p14246_p1 = pnand %p14244_p0, %p14241_p13 }
  0x9e   : > { %14249 = shalt.err (!%p14246_p1)
}
  0x9f   : > { %s14250_s25 = scalar_lea.vmem %s661_s17, 128  ;;  %p14258_p9 = scmp.lt.s32.totalorder %s661_s17, %s661_s17 }
  0xa0   : > { %p14251_p4 = scmp.ne.s32.totalorder %s661_s17, %s14250_s25  ;;  %p14259_p10 = scmp.lt.s32.totalorder %s14250_s25, %s14250_s25 }
  0xa2   : > { %p14253_p6 = pnand %p14251_p4, %p14650_p7  ;;  %p14260_p11 = por %p14259_p10, %p14258_p9 }
  0xa4   : > { %p14254_p8 = pneg %p14253_p6 }
  0xa6   : > { %p14261_p12 = pnand %p14260_p11, %p14254_p8 }
  0xa8   : > { %14264 = shalt.err (!%p14261_p12)
}
  0xa9   : > { %14054 = dma.hbm_to_vmem [thread:$0]  (!%p14634_p5), %s17099_s12, 128, %s661_s17, [#allocation17]  }
  0xaa   : > { %s17100_s30 = sld [smem:[#allocation36_spill]] }
  0xb0   : > { %s14265_s0 = scalar_lea.hbm %s17100_s30, 3840 }
  0xb1   : > { %p14266_p2 = scmp.ne.s32.totalorder %s17100_s30, %s14265_s0  ;;  %p14272_p0 = scmp.lt.u32.totalorder %s14265_s0, %s17100_s30 }
  0xb3   : > { %p14268_p3 = pnand %p14266_p2, %p14650_p7 }
  0xb5   : > { %p14269_p13 = pneg %p14268_p3 }
  0xb7   : > { %p14274_p1 = pnand %p14272_p0, %p14269_p13 }
  0xb9   : > { %14277 = shalt.err (!%p14274_p1)
}
  0xba   : > { %s14278_s25 = scalar_lea.vmem %s549_s19, 3840  ;;  %p14286_p9 = scmp.lt.s32.totalorder %s549_s19, %s549_s19 }
  0xbb   : > { %p14279_p4 = scmp.ne.s32.totalorder %s549_s19, %s14278_s25  ;;  %p14287_p10 = scmp.lt.s32.totalorder %s14278_s25, %s14278_s25 }
  0xbd   : > { %p14281_p6 = pnand %p14279_p4, %p14650_p7  ;;  %p14288_p11 = por %p14287_p10, %p14286_p9 }
  0xbf   : > { %p14282_p8 = pneg %p14281_p6 }
  0xc1   : > { %p14289_p12 = pnand %p14288_p11, %p14282_p8 }
  0xc3   : > { %14292 = shalt.err (!%p14289_p12)
}
  0xc4   : > { %14027 = dma.hbm_to_vmem [thread:$0]  (!%p14634_p5), %s17100_s30, 3840, %s549_s19, [#allocation3], %s14469_s26, %s14469_s26, %s14470_s2  }
  0xc5   : > { %s14473_s4 = smov [#allocation6]   ;;  %s14474_s21 = smov [#allocation9]  }
  0xc6   : > { %s577_s18 = sshll.u32 %s14473_s4, 4  ;;  %s605_s0 = sshll.u32 %s14474_s21, 4  ;;  %s578_s18 = int_to_ptr.vmem [resolvable:$true] %s577_s18  ;;  %s606_s0 = int_to_ptr.vmem [resolvable:$true] %s605_s0 }
  0xc7   : > { %s17101_s3 = sld [smem:[#allocation39_spill]] }
  0xcd   : > { %s17102_s24 = smov %s17101_s3  ;;  %s14293_s25 = scalar_lea.hbm %s17101_s3, 1280 }
  0xce   : > { %p14294_p2 = scmp.ne.s32.totalorder %s17102_s24, %s14293_s25  ;;  %p14300_p0 = scmp.lt.u32.totalorder %s14293_s25, %s17102_s24 }
  0xd0   : > { %p14296_p3 = pnand %p14294_p2, %p14650_p7 }
  0xd2   : > { %p14297_p13 = pneg %p14296_p3 }
  0xd4   : > { %p14302_p1 = pnand %p14300_p0, %p14297_p13 }
  0xd6   : > { %14305 = shalt.err (!%p14302_p1)
}
  0xd7   : > { %s14306_s19 = scalar_lea.vmem %s578_s18, 1280  ;;  %p14314_p9 = scmp.lt.s32.totalorder %s578_s18, %s578_s18 }
  0xd8   : > { %p14307_p4 = scmp.ne.s32.totalorder %s578_s18, %s14306_s19  ;;  %p14315_p10 = scmp.lt.s32.totalorder %s14306_s19, %s14306_s19 }
  0xda   : > { %p14309_p6 = pnand %p14307_p4, %p14650_p7  ;;  %p14316_p11 = por %p14315_p10, %p14314_p9 }
  0xdc   : > { %p14310_p8 = pneg %p14309_p6 }
  0xde   : > { %p14317_p12 = pnand %p14316_p11, %p14310_p8 }
  0xe0   : > { %14320 = shalt.err (!%p14317_p12)
}
  0xe1   : > { %14033 = dma.hbm_to_vmem [thread:$0]  (!%p14634_p5), %s17102_s24, 1280, %s578_s18, [#allocation5], %s14469_s26, %s14469_s26, %s14470_s2  }
  0xe2   : > { %s14321_s4 = scalar_lea.hbm %s16976_s7, 64 }
  0xe3   : > { %p14322_p2 = scmp.ne.s32.totalorder %s16976_s7, %s14321_s4  ;;  %p14328_p0 = scmp.lt.u32.totalorder %s14321_s4, %s16976_s7 }
  0xe5   : > { %p14324_p3 = pnand %p14322_p2, %p14650_p7 }
  0xe7   : > { %p14325_p13 = pneg %p14324_p3 }
  0xe9   : > { %p14330_p1 = pnand %p14328_p0, %p14325_p13 }
  0xeb   : > { %14333 = shalt.err (!%p14330_p1)
}
  0xec   : > { %s14334_s25 = scalar_lea.vmem %s606_s0, 64  ;;  %p14342_p9 = scmp.lt.s32.totalorder %s606_s0, %s606_s0 }
  0xed   : > { %p14335_p4 = scmp.ne.s32.totalorder %s606_s0, %s14334_s25  ;;  %p14343_p10 = scmp.lt.s32.totalorder %s14334_s25, %s14334_s25 }
  0xef   : > { %p14337_p6 = pnand %p14335_p4, %p14650_p7  ;;  %p14344_p11 = por %p14343_p10, %p14342_p9 }
  0xf1   : > { %p14338_p8 = pneg %p14337_p6 }
  0xf3   : > { %p14345_p12 = pnand %p14344_p11, %p14338_p8 }
  0xf5   : > { %14348 = shalt.err (!%p14345_p12)
}
  0xf6   : > { %14039 = dma.hbm_to_vmem [thread:$0]  (!%p14634_p5), %s16976_s7, 64, %s606_s0, [#allocation8]  }
  0xf7   : > { %s14475_s18 = smov [#allocation12]   ;;  %s14476_s19 = smov [#allocation15]  }
  0xf8   : > { %s627_s17 = sshll.u32 %s14475_s18, 4  ;;  %s649_s8 = sshll.u32 %s14476_s19, 4  ;;  %s628_s17 = int_to_ptr.vmem [resolvable:$true] %s627_s17  ;;  %s650_s8 = int_to_ptr.vmem [resolvable:$true] %s649_s8 }
  0xf9   : > { %s14349_s23 = scalar_lea.hbm %s16978_s9, 64 }
  0xfa   : > { %p14350_p2 = scmp.ne.s32.totalorder %s16978_s9, %s14349_s23  ;;  %p14356_p0 = scmp.lt.u32.totalorder %s14349_s23, %s16978_s9 }
  0xfc   : > { %p14352_p3 = pnand %p14350_p2, %p14650_p7 }
  0xfe   : > { %p14353_p13 = pneg %p14352_p3 }
 0x100   : > { %p14358_p1 = pnand %p14356_p0, %p14353_p13 }
 0x102   : > { %14361 = shalt.err (!%p14358_p1)
}
 0x103   : > { %s14362_s0 = scalar_lea.vmem %s628_s17, 64  ;;  %p14370_p9 = scmp.lt.s32.totalorder %s628_s17, %s628_s17 }
 0x104   : > { %p14363_p4 = scmp.ne.s32.totalorder %s628_s17, %s14362_s0  ;;  %p14371_p10 = scmp.lt.s32.totalorder %s14362_s0, %s14362_s0 }
 0x106   : > { %p14365_p6 = pnand %p14363_p4, %p14650_p7  ;;  %p14372_p11 = por %p14371_p10, %p14370_p9 }
 0x108   : > { %p14366_p8 = pneg %p14365_p6 }
 0x10a   : > { %p14373_p12 = pnand %p14372_p11, %p14366_p8 }
 0x10c   : > { %14376 = shalt.err (!%p14373_p12)
}
 0x10d   : > { %14045 = dma.hbm_to_vmem [thread:$0]  (!%p14634_p5), %s16978_s9, 64, %s628_s17, [#allocation11]  }
 0x10e   : > { %s14377_s18 = scalar_lea.hbm %s16980_s11, 128 }
 0x10f   : > { %p14378_p2 = scmp.ne.s32.totalorder %s16980_s11, %s14377_s18  ;;  %p14384_p0 = scmp.lt.u32.totalorder %s14377_s18, %s16980_s11 }
 0x111   : > { %p14380_p3 = pnand %p14378_p2, %p14650_p7 }
 0x113   : > { %p14381_p13 = pneg %p14380_p3 }
 0x115   : > { %p14386_p1 = pnand %p14384_p0, %p14381_p13 }
 0x117   : > { %14389 = shalt.err (!%p14386_p1)
}
 0x118   : > { %s14390_s4 = scalar_lea.vmem %s650_s8, 128  ;;  %p14398_p9 = scmp.lt.s32.totalorder %s650_s8, %s650_s8 }
 0x119   : > { %p14391_p4 = scmp.ne.s32.totalorder %s650_s8, %s14390_s4  ;;  %p14399_p10 = scmp.lt.s32.totalorder %s14390_s4, %s14390_s4 }
 0x11b   : > { %p14393_p6 = pnand %p14391_p4, %p14650_p7  ;;  %p14400_p11 = por %p14399_p10, %p14398_p9 }
 0x11d   : > { %p14394_p8 = pneg %p14393_p6 }
 0x11f   : > { %p14401_p12 = pnand %p14400_p11, %p14394_p8 }
 0x121   : > { %14404 = shalt.err (!%p14401_p12)
}
 0x122   : > { %14051 = dma.hbm_to_vmem [thread:$0]  (!%p14634_p5), %s16980_s11, 128, %s650_s8, [#allocation14]  }
 0x123   : > { %s14477_s5 = smov [#allocation18]   ;;  %s14405_s25 = scalar_lea.hbm %s16985_s16, 64 }
 0x124   : > { %s680_s6 = sshll.u32 %s14477_s5, 4  ;;  %p14406_p2 = scmp.ne.s32.totalorder %s16985_s16, %s14405_s25  ;;  %s681_s6 = int_to_ptr.vmem [resolvable:$true] %s680_s6 }
 0x125   : > { %p14412_p0 = scmp.lt.u32.totalorder %s14405_s25, %s16985_s16 }
 0x126   : > { %p14408_p3 = pnand %p14406_p2, %p14650_p7 }
 0x128   : > { %p14409_p13 = pneg %p14408_p3 }
 0x12a   : > { %p14414_p1 = pnand %p14412_p0, %p14409_p13 }
 0x12c   : > { %14417 = shalt.err (!%p14414_p1)
}
 0x12d   : > { %s14418_s8 = scalar_lea.vmem %s681_s6, 64  ;;  %p14426_p9 = scmp.lt.s32.totalorder %s681_s6, %s681_s6 }
 0x12e   : > { %p14419_p4 = scmp.ne.s32.totalorder %s681_s6, %s14418_s8  ;;  %p14427_p10 = scmp.lt.s32.totalorder %s14418_s8, %s14418_s8 }
 0x130   : > { %p14421_p6 = pnand %p14419_p4, %p14650_p7  ;;  %p14428_p11 = por %p14427_p10, %p14426_p9 }
 0x132   : > { %p14422_p8 = pneg %p14421_p6 }
 0x134   : > { %p14429_p12 = pnand %p14428_p11, %p14422_p8 }
 0x136   : > { %14432 = shalt.err (!%p14429_p12)
}
 0x137   : > { %14057 = dma.hbm_to_vmem [thread:$0]  (!%p14634_p5), %s16985_s16, 64, %s681_s6, [#allocation17]  }
 0x138   : > { %p17103_p2 = scmp.ne.s32.totalorder %s17092_s29, 0 }
 0x13a   : > { %716 = sbr.rel (%p17103_p2) target bundleno = 6806 (0x1a96), region = 108 }
 0x141   : > { %p17104_p3 = scmp.eq.s32.totalorder %s14617_s28, 0 }
 0x143   : > { %14438 = dma.done.wait (%p17104_p3), [#allocation3], 3840   ;;  %p17105_p7 = pmov %p17104_p3 }
 0x144   : > { %p17106_p13 = pmov %p17104_p3 }
 0x145   : > { %14440 = vsyncadd (%p17105_p7), [#allocation3], 4294963456 }
 0x146   : > { %14442 = dma.done.wait (%p17106_p13), [#allocation5], 1664   ;;  %p17107_p0 = pmov %p17104_p3 }
 0x148   : > { %14444 = vsyncadd (%p17107_p0), [#allocation5], 4294965632  ;;  %p17108_p1 = pmov %p17107_p0 }
 0x149   : > { %p17109_p5 = pmov %p17107_p0 }
 0x14a   : > { %14446 = dma.done.wait (%p17108_p1), [#allocation8], 128  }
 0x14b   : > { %14448 = vsyncadd (%p17109_p5), [#allocation8], 4294967168  ;;  %p17110_p4 = pmov %p17107_p0 }
 0x14c   : > { %p17111_p6 = pmov %p17107_p0 }
 0x14d   : > { %14450 = dma.done.wait (%p17110_p4), [#allocation11], 128  }
 0x14e   : > { %14452 = vsyncadd (%p17111_p6), [#allocation11], 4294967168  ;;  %p17112_p8 = pmov %p17107_p0 }
 0x14f   : > { %p17113_p9 = pmov %p17107_p0 }
 0x150   : > { %14454 = dma.done.wait (%p17112_p8), [#allocation14], 256  }
 0x151   : > { %14456 = vsyncadd (%p17113_p9), [#allocation14], 4294967040  ;;  %p17114_p10 = pmov %p17107_p0 }
 0x152   : > { %p17115_p11 = pmov %p17107_p0 }
 0x153   : > { %14458 = dma.done.wait (%p17114_p10), [#allocation17], 192  }
 0x154   : > { %14460 = vsyncadd (%p17115_p11), [#allocation17], 4294967104  ;;  %p817_p12 = scmp.lt.s32.totalorder %s14617_s28, 1  ;;  %v17004_v0 = vmov 0.0|0.0   ;;  %s17116_s23 = sld [smem:[#allocation35_spill]]  ;;  %v843_v2 = vld [vmem:[#allocation2] sm:$0xff] }
 0x155   : > { %12625 = vmatprep.subr.bf16.mxu0 %v17004_v0  ;;  %12895 = vmatprep.subr.bf16.mxu1 %v17004_v0  ;;  %v844_v3 = vld [vmem:[#allocation2 + $0x8] sm:$0xff]  ;;  %s14479_s17 = smov 127   ;;  %v883_v4 = vand.u32 4294901760, %v843_v2  ;;  %v845_v6 = vld [vmem:[#allocation2 + $0x10] sm:$0xff]  ;;  %v846_v7 = vld [vmem:[#allocation2 + $0x18] sm:$0xff]  ;;  %vm831_vm0 = vcmask 1039360  }
 0x156   : > { %s17204_s28 = smov (!%p817_p12, %s14617_s28), 1  ;;  %v886_v5 = vand.u32 4294901760, %v844_v3  ;;  %v847_v8 = vld [vmem:[#allocation2 + $0x20] sm:$0xff]  ;;  %v889_v9 = vand.u32 4294901760, %v845_v6  ;;  %v892_v10 = vand.u32 4294901760, %v846_v7  ;;  %v848_v11 = vld [vmem:[#allocation2 + $0x28] sm:$0xff] }
 0x157   : > { %s10266_s22 = sshll.u32 %s17204_s28, 3  ;;  %v895_v12 = vand.u32 4294901760, %v847_v8  ;;  %v849_v13 = vld [vmem:[#allocation2 + $0x30] sm:$0xff]  ;;  %v850_v14 = vld [vmem:[#allocation2 + $0x38] sm:$0xff]  ;;  %v14913_v16 = vsub.f32 %v843_v2, %v883_v4  ;;  %v898_v18 = vand.u32 4294901760, %v848_v11  ;;  %v851_v19 = vld [vmem:[#allocation2 + $0x40] sm:$0xff] }
 0x158   : > { %v14911_v15 = vpack.c.bf16 %v886_v5, %v883_v4  ;;  %v14915_v17 = vsub.f32 %v844_v3, %v886_v5  ;;  %v852_v20 = vld [vmem:[#allocation2 + $0x48] sm:$0xff]  ;;  %v853_v21 = vld [vmem:[#allocation2 + $0x50] sm:$0xff]  ;;  %v14917_v22 = vsub.f32 %v845_v6, %v889_v9  ;;  %v14919_v23 = vsub.f32 %v846_v7, %v892_v10  ;;  %v854_v25 = vld [vmem:[#allocation2 + $0x58] sm:$0xff]  ;;  %s14480_s21 = smov 112   ;;  %s14481_s5 = smov 126  }
 0x159   : > { %v14921_v24 = vsub.f32 %v847_v8, %v895_v12  ;;  %v855_v26 = vld [vmem:[#allocation2 + $0x60] sm:$0xff]  ;;  %v14924_v27 = vpack.c.bf16 %v892_v10, %v889_v9  ;;  %v14926_v28 = vsub.f32 %v848_v11, %v898_v18  ;;  %v901_v29 = vand.u32 4294901760, %v849_v13  ;;  %v856_v34 = vld [vmem:[#allocation2 + $0x68] sm:$0xff]  ;;  %v857_v39 = vld [vmem:[#allocation2 + $0x70] sm:$0xff]  ;;  %s14482_s6 = smov 118   ;;  %s14483_s0 = smov 116  }
 0x15a   : > { %s821_s4 = scalar_lea.vmem %s17116_s23, %s10266_s22  ;;  %12627 = vmatpush1.bf16.msra.mxu0 %v14911_v15  ;;  %v904_v30 = vand.u32 4294901760, %v850_v14  ;;  %v907_v31 = vand.u32 4294901760, %v851_v19  ;;  %v910_v32 = vand.u32 4294901760, %v852_v20  ;;  %v913_v33 = vand.u32 4294901760, %v853_v21  ;;  %v858_v40 = vld [vmem:[#allocation2 + $0x78] sm:$0xff]  ;;  %v859_v44 = vld [vmem:[#allocation2 + $0x80] sm:$0xff] }
 0x15b   : > { %v14907_v1 = vld [vmem:[%s821_s4] sm:$0x77]  ;;  %12628 = vmatprep.subr.bf16.mxu0 %v17004_v0  ;;  %v14929_v35 = vsub.f32 %v849_v13, %v901_v29  ;;  %v916_v37 = vand.u32 4294901760, %v854_v25  ;;  %v919_v38 = vand.u32 4294901760, %v855_v26  ;;  %v14933_v41 = vpack.c.bf16 %v898_v18, %v895_v12  ;;  %v860_v45 = vld [vmem:[#allocation2 + $0x88] sm:$0xff]  ;;  %v861_v46 = vld [vmem:[#allocation2 + $0x90] sm:$0xff] }
 0x15c   : > { %828 = vrot.lane.b32.xlu0 %v14907_v1, %s14479_s17  ;;  %v14931_v36 = vsub.f32 %v850_v14, %v904_v30  ;;  %v14935_v42 = vsub.f32 %v851_v19, %v907_v31  ;;  %v14937_v43 = vsub.f32 %v852_v20, %v910_v32  ;;  %v14940_v47 = vsub.f32 %v853_v21, %v913_v33  ;;  %v862_v51 = vld [vmem:[#allocation2 + $0x98] sm:$0xff]  ;;  %v863_v58 = vld [vmem:[#allocation2 + $0xa0] sm:$0xff]  ;;  %v864_v59 = vld [vmem:[#allocation2 + $0xa8] sm:$0xff]  ;;  %s14484_s3 = smov 117   ;;  %s17049_s25 = smov 107  }
 0x15d   : > { %v14942_v48 = vsub.f32 %v854_v25, %v916_v37  ;;  %v922_v49 = vand.u32 4294901760, %v856_v34  ;;  %v14944_v50 = vsub.f32 %v855_v26, %v919_v38  ;;  %v925_v52 = vand.u32 4294901760, %v857_v39  ;;  %v865_v20 = vld [vmem:[#allocation2 + $0xb0] sm:$0xff]  ;;  %v866_v21 = vld [vmem:[#allocation2 + $0xb8] sm:$0xff]  ;;  %s14488_s26 = smov 108   ;;  %s17051_s2 = smov 106  }
 0x15e   : > { %12630 = vmatpush1.bf16.msra.mxu0 %v14924_v27  ;;  %v928_v53 = vand.u32 4294901760, %v858_v40  ;;  %v931_v55 = vand.u32 4294901760, %v859_v44  ;;  %v934_v56 = vand.u32 4294901760, %v860_v45  ;;  %v937_v57 = vand.u32 4294901760, %v861_v46  ;;  %s17163_s8 = sld [smem:[#allocation37_spill]]  ;;  %s14491_s1 = smov 121  }
 0x15f   : > { %12631 = vmatprep.subr.bf16.mxu0 %v17004_v0  ;;  %v14947_v54 = vsub.f32 %v856_v34, %v922_v49  ;;  %v14949_v60 = vsub.f32 %v857_v39, %v925_v52  ;;  %v940_v62 = vand.u32 4294901760, %v862_v51  ;;  %v14954_v63 = vpack.c.bf16 %v904_v30, %v901_v29  ;;  %v867_v30 = vld [vmem:[#allocation2 + $0xc0] sm:$0xff]  ;;  %s14492_s23 = smov 122   ;;  %s14493_s4 = smov 120  }
 0x160   : > { %v14951_v61 = vsub.f32 %v858_v40, %v928_v53  ;;  %v14956_v2 = vsub.f32 %v859_v44, %v931_v55  ;;  %v14958_v3 = vsub.f32 %v860_v45, %v934_v56  ;;  %v14960_v4 = vsub.f32 %v861_v46, %v937_v57  ;;  %s14495_s18 = smov 115   ;;  %s17176_s12 = sld [smem:[#allocation40_spill]] }
 0x161   : > { %v14963_v5 = vsub.f32 %v862_v51, %v940_v62  ;;  %v943_v6 = vand.u32 4294901760, %v863_v58  ;;  %v946_v7 = vand.u32 4294901760, %v864_v59  ;;  %v14970_v10 = vpack.c.bf16 %v910_v32, %v907_v31  ;;  %v868_v31 = vld [vmem:[#allocation2 + $0xc8] sm:$0xff]  ;;  %s17179_s29 = sld [smem:[#allocation45_spill]]  ;;  %s17201_s22 = sld [smem:[#allocation50_spill]] }
 0x162   : > { %12633 = vmatpush1.bf16.msra.mxu0 %v14933_v41  ;;  %v14974_v11 = vpack.c.bf16 %v916_v37, %v913_v33  ;;  %v14978_v12 = vpack.c.bf16 %v922_v49, %v919_v38  ;;  %v14982_v13 = vpack.c.bf16 %v928_v53, %v925_v52  ;;  %v14986_v14 = vpack.c.bf16 %v934_v56, %v931_v55  ;;  %v869_v37 = vld [vmem:[#allocation2 + $0xd0] sm:$0xff]  ;;  %v870_v38 = vld [vmem:[#allocation2 + $0xd8] sm:$0xff]  ;;  %v871_v49 = vld [vmem:[#allocation2 + $0xe0] sm:$0xff] }
 0x163   : > { %12634 = vmatprep.subr.bf16.mxu0 %v17004_v0  ;;  %v14965_v8 = vsub.f32 %v863_v58, %v943_v6  ;;  %v14967_v9 = vsub.f32 %v864_v59, %v946_v7  ;;  %v14990_v18 = vpack.c.bf16 %v940_v62, %v937_v57  ;;  %v14994_v19 = vpack.c.bf16 %v946_v7, %v943_v6  ;;  %v872_v51 = vld [vmem:[#allocation2 + $0xe8] sm:$0x7f] }
 0x164   : > { %v949_v25 = vand.u32 4294901760, %v865_v20  ;;  %v952_v26 = vand.u32 4294901760, %v866_v21  ;;  %v955_v32 = vand.u32 4294901760, %v867_v30  ;;  %v958_v33 = vand.u32 4294901760, %v868_v31 }
 0x165   : > { %v961_v53 = vand.u32 4294901760, %v869_v37  ;;  %v964_v55 = vand.u32 4294901760, %v870_v38  ;;  %vm878_vm1 = vcmask 1046528   ;;  %v967_v57 = vand.u32 4294901760, %v871_v49 }
 0x166   : > { %12636 = vmatpush1.bf16.msra.mxu0 %v14954_v63  ;;  %v14999_v29 = vpack.c.bf16 %v952_v26, %v949_v25  ;;  %v15003_v34 = vpack.c.bf16 %v958_v33, %v955_v32  ;;  %v15005_v40 = vsub.f32 %v865_v20, %v949_v25  ;;  %v15007_v44 = vsub.f32 %v866_v21, %v952_v26 }
 0x167   : > { %12637 = vmatprep.subr.bf16.mxu0 %v17004_v0  ;;  %v15010_v45 = vsub.f32 %v867_v30, %v955_v32  ;;  %v15012_v46 = vsub.f32 %v868_v31, %v958_v33  ;;  %v880_v56 = vsel %vm878_vm1, %v872_v51, 0  ;;  %v15017_v59 = vpack.c.bf16 %v964_v55, %v961_v53 }
 0x168   : > { %17117 = vst [vmem:[#allocation26_spill] sm:$0xff] %v15003_v34  ;;  %v15019_v62 = vsub.f32 %v869_v37, %v961_v53  ;;  %v15021_v6 = vsub.f32 %v870_v38, %v964_v55  ;;  %v970_v20 = vand.u32 4294901760, %v880_v56  ;;  %v15024_v21 = vsub.f32 %v871_v49, %v967_v57 }
 0x169   : > { %17118 = vst [vmem:[#allocation27_spill] sm:$0xff] %v15017_v59  ;;  %vm839_vm2 = vcmask 916480   ;;  %v17003_v32 = vand.u32 4294901760, %v14913_v16  ;;  %v17001_v37 = vand.u32 4294901760, %v14915_v17  ;;  %vm875_vm3 = vcmask 908288  }
 0x16a   : > { %12639 = vmatpush1.bf16.msra.mxu0 %v14970_v10  ;;  %v15028_v25 = vpack.c.bf16 %v970_v20, %v967_v57  ;;  %v15030_v26 = vsub.f32 %v880_v56, %v970_v20  ;;  %v17002_v55 = vand.u32 4294901760, %v14917_v22  ;;  %v17008_v57 = vand.u32 4294901760, %v14919_v23 }
 0x16b   : > { %12640 = vmatprep.subr.bf16.mxu0 %v17004_v0  ;;  %v996_v49 = vsub.f32 %v14913_v16, %v17003_v32  ;;  %v1003_v53 = vsub.f32 %v14915_v17, %v17001_v37  ;;  %v17015_v32 = vand.u32 4294901760, %v14929_v35  ;;  %vm14486_vm4 = vmmov 0  }
 0x16c   : > { %17119 = vst [vmem:[#allocation28_spill] sm:$0xff] %v15028_v25  ;;  %vm1749_vm5 = vcmask 1042432   ;;  %vm1769_vm6 = vcmask 220160   ;;  %vm1751_vm7 = vcmask 1045504   ;;  %vm1753_vm8 = vcmask 1040384  }
 0x16d   : > { %v997_v20 = vand.u32 4294901760, %v996_v49  ;;  %vm1755_vm9 = vcmask 1043456   ;;  %vm1758_vm10 = vcmask 1041408   ;;  %vm1760_vm11 = vcmask 1044480  }
 0x16e   : > { %12642 = vmatpush1.bf16.msra.mxu0 %v14974_v11  ;;  %vm2271_vm12 = vcmask 654336   ;;  %vm2874_vm13 = vcmask 293888   ;;  %vm3968_vm14 = vcmask 809984   ;;  %vm5120_vm15 = vcmask 195584  }
 0x16f   : > { %12643 = vmatprep.subr.bf16.mxu0 %v17004_v0 }
 0x172   : > { %12645 = vmatpush1.bf16.msra.mxu0 %v14978_v12 }
 0x173   : > { %12646 = vmatprep.subr.bf16.mxu0 %v17004_v0 }
 0x176   : > { %12648 = vmatpush1.bf16.msra.mxu0 %v14982_v13 }
 0x177   : > { %12649 = vmatprep.subr.bf16.mxu0 %v17004_v0 }
 0x17a   : > { %12651 = vmatpush1.bf16.msra.mxu0 %v14986_v14 }
 0x17b   : > { %12652 = vmatprep.subr.bf16.mxu0 %v17004_v0 }
 0x17e   : > { %12654 = vmatpush1.bf16.msra.mxu0 %v14990_v18 }
 0x17f   : > { %12655 = vmatprep.subr.bf16.mxu0 %v17004_v0 }
 0x182   : > { %12657 = vmatpush1.bf16.msra.mxu0 %v14994_v19 }
 0x183   : > { %12658 = vmatprep.subr.bf16.mxu0 %v17004_v0 }
 0x186   : > { %12660 = vmatpush1.bf16.msra.mxu0 %v14999_v29 }
 0x187   : > { %12661 = vmatprep.subr.bf16.mxu0 %v17004_v0 }
 0x18a   : > { %12663 = vmatpush1.bf16.msra.mxu0 %v15003_v34 }
 0x18b   : > { %12664 = vmatprep.subr.bf16.mxu0 %v17004_v0 }
 0x18e   : > { %12666 = vmatpush1.bf16.msra.mxu0 %v15017_v59  ;;  %v17121_v59 = vand.u32 4294901760, %v14926_v28 }
 0x18f   : > { %12667 = vmatprep.subr.bf16.mxu0 %v17004_v0 }
 0x192   : > { %12669 = vmatpush1.bf16.msra.mxu0 %v15028_v25 }
 0x193   : > { %12670 = vmatprep.subr.bf16.mxu0 %v17004_v0  ;;  %v17016_v0 = vand.u32 4294901760, %v14931_v36 }
 0x1ce   : > { %v829_v39 = vpop.permute.xlu0 %828 }
 0x1cf   : > { %v830_v52 = vrot.slane %v829_v39, 4 }
 0x1d1   : > { %v832_v58 = vsel %vm831_vm0, %v829_v39, %v830_v52  ;;  %vm5628_vm0 = vcmask 588800  }
 0x1d2   : > { %v834_v7 = vmax.f32 %v14907_v1, %v832_v58 }
 0x1d4   : > { %836 = vrot.lane.b32.xlu0 %v834_v7, %s14480_s21  ;;  %s14494_s21 = smov 114  }
 0x246   : > { %v837_v30 = vpop.permute.xlu0 %836 }
 0x247   : > { %v838_v1 = vrot.slane %v837_v30, 4 }
 0x249   : > { %v840_v31 = vsel %vm839_vm2, %v837_v30, %v838_v1  ;;  %v1004_v30 = vand.u32 4294901760, %v1003_v53  ;;  %v1010_v1 = vsub.f32 %v14917_v22, %v17002_v55  ;;  %vm9613_vm2 = vcmask 31744  }
 0x24a   : > { %v842_v33 = vmax.f32 %v834_v7, %v840_v31 }
 0x24b   : > { %v12671_v53 = vpack.c.bf16 %v1004_v30, %v997_v20  ;;  %v1011_v55 = vand.u32 4294901760, %v1010_v1  ;;  %v1038_v20 = vsub.f32 %v14929_v35, %v17015_v32  ;;  %v1045_v30 = vsub.f32 %v14931_v36, %v17016_v0 }
 0x24c   : > { %v874_v38 = vcombine.high %v842_v33, %v842_v33  ;;  %v15036_v39 = vand.u32 4294901760, %v842_v33  ;;  %v17025_v1 = vand.u32 4294901760, %v14935_v42 }
 0x24e   : > { %v15042_v51 = vsub.f32 %v842_v33, %v15036_v39  ;;  %v876_v52 = vsel %vm875_vm3, %v874_v38, 0  ;;  %v1017_v33 = vsub.f32 %v14919_v23, %v17008_v57  ;;  %v17014_v38 = vand.u32 4294901760, %v14921_v24 }
 0x24f   : > { %v15048_v56 = vand.u32 4294901760, %v876_v52  ;;  %v1052_v32 = vsub.f32 %v14935_v42, %v17025_v1  ;;  %vm10072_vm3 = vcmask 649216  }
 0x250   : > { %v17011_v58 = vand.u32 4294901760, %v15042_v51  ;;  %v1018_v57 = vand.u32 4294901760, %v1017_v33  ;;  %v1024_v37 = vsub.f32 %v14921_v24, %v17014_v38  ;;  %v17022_v33 = vand.u32 4294901760, %v14937_v43 }
 0x251   : > { %17120 = vst [vmem:[#allocation29_spill] sm:$0xff] %v15048_v56  ;;  %v15053_v7 = vsub.f32 %v876_v52, %v15048_v56  ;;  %v1046_v38 = vand.u32 4294901760, %v1045_v30 }
 0x252   : > { %v985_v52 = vsub.f32 %v15042_v51, %v17011_v58  ;;  %v1031_v58 = vsub.f32 %v14926_v28, %v17121_v59  ;;  %v1025_v59 = vand.u32 4294901760, %v1024_v37  ;;  %v1059_v0 = vsub.f32 %v14937_v43, %v17022_v33 }
 0x253   : > { %v17017_v31 = vand.u32 4294901760, %v15053_v7 }
 0x254   : > { %v986_v34 = vand.u32 4294901760, %v985_v52  ;;  %v1032_v52 = vand.u32 4294901760, %v1031_v58  ;;  %v1060_v58 = vand.u32 4294901760, %v1059_v0  ;;  %v17024_v0 = vand.u32 4294901760, %v14951_v61 }
 0x255   : > { %v979_v49 = vsub.f32 %v15053_v7, %v17017_v31 }
 0x256   : > { %v12677_v31 = vpack.c.bf16 %v1032_v52, %v1025_v59  ;;  %v17021_v59 = vand.u32 4294901760, %v14947_v54 }
 0x257   : > { %v980_v25 = vand.u32 4294901760, %v979_v49  ;;  %v12674_v49 = vpack.c.bf16 %v1018_v57, %v1011_v55  ;;  %v17018_v55 = vand.u32 4294901760, %v14942_v48  ;;  %v1053_v57 = vand.u32 4294901760, %v1052_v32 }
 0x259   : > { %981 = vmatprep.mubr.f32.mxu0 %v980_v25  ;;  %v17122_v25 = vmov 0.0|0.0   ;;  %v1073_v30 = vsub.f32 %v14942_v48, %v17018_v55  ;;  %v12683_v52 = vpack.c.bf16 %v1060_v58, %v1053_v57  ;;  %v1087_v55 = vsub.f32 %v14947_v54, %v17021_v59 }
 0x25a   : > { %987 = vmatmul.mubr.f32.vlgmr.msra.gmra.mrb[0].mxu0 %v986_v34  ;;  %v1039_v34 = vand.u32 4294901760, %v1038_v20  ;;  %v17035_v58 = vand.u32 4294901760, %v14956_v2 }
 0x25b   : > { %12672 = vmatpush1.bf16.msra.mxu0 %v12671_v53  ;;  %1207 = vmatprep.mubr.f32.mxu0 %v15048_v56  ;;  %v17020_v53 = vand.u32 4294901760, %v14940_v47  ;;  %v17031_v56 = vand.u32 4294901760, %v14960_v4 }
 0x25c   : > { %12673 = vmatprep.subr.bf16.mxu0 %v17122_v25  ;;  %v12680_v37 = vpack.c.bf16 %v1046_v38, %v1039_v34  ;;  %v17023_v38 = vand.u32 4294901760, %v14949_v60 }
 0x25d   : > { %v1066_v20 = vsub.f32 %v14940_v47, %v17020_v53  ;;  %v1088_v53 = vand.u32 4294901760, %v1087_v55 }
 0x25e   : > { %v1094_v57 = vsub.f32 %v14949_v60, %v17023_v38  ;;  %v1108_v38 = vsub.f32 %v14956_v2, %v17035_v58  ;;  %v1177_v58 = vand.u32 4294901760, %v15019_v62 }
 0x25f   : > { %12675 = vmatpush1.bf16.msra.mxu0 %v12674_v49  ;;  %v17019_v49 = vand.u32 4294901760, %v14944_v50  ;;  %v1067_v32 = vand.u32 4294901760, %v1066_v20  ;;  %v17034_v20 = vand.u32 4294901760, %v14958_v3 }
 0x260   : > { %12676 = vmatprep.subr.bf16.mxu0 %v17122_v25  ;;  %v1095_v59 = vand.u32 4294901760, %v1094_v57 }
 0x261   : > { %v1080_v34 = vsub.f32 %v14944_v50, %v17019_v49 }
 0x263   : > { %12678 = vmatpush1.bf16.msra.mxu0 %v12677_v31  ;;  %v1074_v31 = vand.u32 4294901760, %v1073_v30  ;;  %v1081_v49 = vand.u32 4294901760, %v1080_v34  ;;  %v1122_v34 = vsub.f32 %v14960_v4, %v17031_v56 }
 0x264   : > { %12679 = vmatprep.subr.bf16.mxu0 %v17122_v25 }
 0x265   : > { %v12686_v30 = vpack.c.bf16 %v1074_v31, %v1067_v32  ;;  %v12689_v1 = vpack.c.bf16 %v1088_v53, %v1081_v49  ;;  %v1109_v32 = vand.u32 4294901760, %v1108_v38  ;;  %v17028_v53 = vand.u32 4294901760, %v14965_v8 }
 0x266   : > { %v17030_v49 = vand.u32 4294901760, %v14967_v9 }
 0x267   : > { %12681 = vmatpush1.bf16.msra.mxu0 %v12680_v37  ;;  %v1101_v37 = vsub.f32 %v14951_v61, %v17024_v0  ;;  %v1115_v0 = vsub.f32 %v14958_v3, %v17034_v20 }
 0x268   : > { %12682 = vmatprep.subr.bf16.mxu0 %v17122_v25 }
 0x269   : > { %v1102_v33 = vand.u32 4294901760, %v1101_v37  ;;  %v1116_v31 = vand.u32 4294901760, %v1115_v0  ;;  %v1136_v0 = vsub.f32 %v14965_v8, %v17028_v53 }
 0x26b   : > { %12684 = vmatpush1.bf16.msra.mxu0 %v12683_v52  ;;  %v17029_v52 = vand.u32 4294901760, %v14963_v5  ;;  %v12692_v55 = vpack.c.bf16 %v1102_v33, %v1095_v59  ;;  %v12695_v37 = vpack.c.bf16 %v1116_v31, %v1109_v32  ;;  %v17032_v33 = vand.u32 4294901760, %v15005_v40 }
 0x26c   : > { %12685 = vmatprep.subr.bf16.mxu0 %v17122_v25  ;;  %v17033_v59 = vand.u32 4294901760, %v15007_v44  ;;  %v1163_v31 = vand.u32 4294901760, %v15010_v45  ;;  %v1137_v53 = vand.u32 4294901760, %v1136_v0 }
 0x26d   : > { %v1129_v57 = vsub.f32 %v14963_v5, %v17029_v52  ;;  %v1150_v32 = vsub.f32 %v15005_v40, %v17032_v33 }
 0x26e   : > { %v1164_v33 = vsub.f32 %v15010_v45, %v1163_v31 }
 0x26f   : > { %12687 = vmatpush1.bf16.msra.mxu0 %v12686_v30  ;;  %v1130_v38 = vand.u32 4294901760, %v1129_v57  ;;  %v1143_v30 = vsub.f32 %v14967_v9, %v17030_v49  ;;  %v1151_v49 = vand.u32 4294901760, %v1150_v32 }
 0x270   : > { %12688 = vmatprep.subr.bf16.mxu0 %v17122_v25 }
 0x271   : > { %v1144_v52 = vand.u32 4294901760, %v1143_v30  ;;  %v1178_v30 = vsub.f32 %v15019_v62, %v1177_v58 }
 0x273   : > { %12690 = vmatpush1.bf16.msra.mxu0 %v12689_v1  ;;  %v1123_v1 = vand.u32 4294901760, %v1122_v34  ;;  %v1170_v34 = vand.u32 4294901760, %v15012_v46  ;;  %v12701_v20 = vpack.c.bf16 %v1144_v52, %v1137_v53  ;;  %v1191_v52 = vand.u32 4294901760, %v15024_v21 }
 0x274   : > { %12691 = vmatprep.subr.bf16.mxu0 %v17122_v25  ;;  %v1198_v53 = vand.u32 4294901760, %v15030_v26 }
 0x275   : > { %v12698_v57 = vpack.c.bf16 %v1130_v38, %v1123_v1  ;;  %v1165_v38 = vand.u32 4294901760, %v1164_v33 }
 0x276   : > { %v1199_v33 = vsub.f32 %v15030_v26, %v1198_v53 }
 0x277   : > { %12693 = vmatpush1.bf16.msra.mxu0 %v12692_v55  ;;  %v1157_v55 = vsub.f32 %v15007_v44, %v17033_v59  ;;  %v1171_v59 = vsub.f32 %v15012_v46, %v1170_v34 }
 0x278   : > { %12694 = vmatprep.subr.bf16.mxu0 %v17122_v25 }
 0x279   : > { %v1158_v56 = vand.u32 4294901760, %v1157_v55  ;;  %v1172_v0 = vand.u32 4294901760, %v1171_v59 }
 0x27b   : > { %12696 = vmatpush1.bf16.msra.mxu0 %v12695_v37  ;;  %v17036_v37 = vand.u32 4294901760, %v15021_v6  ;;  %v12704_v1 = vpack.c.bf16 %v1158_v56, %v1151_v49  ;;  %v12707_v55 = vpack.c.bf16 %v1172_v0, %v1165_v38  ;;  %v1179_v56 = vand.u32 4294901760, %v1178_v30 }
 0x27c   : > { %12697 = vmatprep.subr.bf16.mxu0 %v17122_v25  ;;  %v12716_v38 = vpack.c.bf16 %v14915_v17, %v14913_v16  ;;  %v12719_v0 = vpack.c.bf16 %v14919_v23, %v14917_v22  ;;  %v12725_v30 = vpack.c.bf16 %v14931_v36, %v14929_v35 }
 0x27d   : > { %v1185_v32 = vsub.f32 %v15021_v6, %v17036_v37  ;;  %v1200_v37 = vand.u32 4294901760, %v1199_v33  ;;  %v12743_v33 = vpack.c.bf16 %v14963_v5, %v14960_v4 }
 0x27f   : > { %12699 = vmatpush1.bf16.msra.mxu0 %v12698_v57  ;;  %v1186_v49 = vand.u32 4294901760, %v1185_v32  ;;  %v12728_v32 = vpack.c.bf16 %v14937_v43, %v14935_v42 }
 0x280   : > { %12700 = vmatprep.subr.bf16.mxu0 %v17122_v25 }
 0x281   : > { %v12710_v59 = vpack.c.bf16 %v1186_v49, %v1179_v56  ;;  %v12734_v56 = vpack.c.bf16 %v14947_v54, %v14944_v50  ;;  %v12737_v49 = vpack.c.bf16 %v14951_v61, %v14949_v60 }
 0x283   : > { %12702 = vmatpush1.bf16.msra.mxu0 %v12701_v20  ;;  %v1192_v20 = vsub.f32 %v15024_v21, %v1191_v52 }
 0x284   : > { %12703 = vmatprep.subr.bf16.mxu0 %v17122_v25 }
 0x285   : > { %v1193_v57 = vand.u32 4294901760, %v1192_v20  ;;  %v12740_v20 = vpack.c.bf16 %v14958_v3, %v14956_v2 }
 0x287   : > { %12705 = vmatpush1.bf16.msra.mxu0 %v12704_v1  ;;  %v12713_v1 = vpack.c.bf16 %v1200_v37, %v1193_v57  ;;  %v12722_v37 = vpack.c.bf16 %v14926_v28, %v14921_v24  ;;  %v12749_v57 = vpack.c.bf16 %v15007_v44, %v15005_v40 }
 0x288   : > { %12706 = vmatprep.subr.bf16.mxu0 %v17122_v25 }
 0x28b   : > { %12708 = vmatpush1.bf16.msra.mxu0 %v12707_v55  ;;  %v12731_v55 = vpack.c.bf16 %v14942_v48, %v14940_v47 }
 0x28c   : > { %12709 = vmatprep.subr.bf16.mxu0 %v17122_v25 }
 0x28f   : > { %12711 = vmatpush1.bf16.msra.mxu0 %v12710_v59  ;;  %v12746_v59 = vpack.c.bf16 %v14967_v9, %v14965_v8 }
 0x290   : > { %12712 = vmatprep.subr.bf16.mxu0 %v17122_v25 }
 0x293   : > { %12714 = vmatpush1.bf16.msra.mxu0 %v12713_v1  ;;  %v12752_v1 = vpack.c.bf16 %v15012_v46, %v15010_v45 }
 0x294   : > { %12715 = vmatprep.subr.bf16.mxu0 %v17122_v25 }
 0x296   : > { %1209 = vmatmul.mubr.f32.vlgmr.msra.gmra.mrb[0].mxu0 %v15036_v39 }
 0x297   : > { %12717 = vmatpush1.bf16.msra.mxu0 %v12716_v38  ;;  %1340 = vmatprep.mubr.f32.mxu0 %v15053_v7  ;;  %v12755_v38 = vpack.c.bf16 %v15021_v6, %v15019_v62 }
 0x298   : > { %12718 = vmatprep.subr.bf16.mxu0 %v17122_v25 }
 0x29b   : > { %12720 = vmatpush1.bf16.msra.mxu0 %v12719_v0  ;;  %v12758_v0 = vpack.c.bf16 %v15030_v26, %v15024_v21 }
 0x29c   : > { %12721 = vmatprep.subr.bf16.mxu0 %v17122_v25 }
 0x29f   : > { %12723 = vmatpush1.bf16.msra.mxu0 %v12722_v37  ;;  %v17123_v37 = vand.u32 4294901760, %v15053_v7  ;;  %v17124_v7 = vld [vmem:[#allocation26_spill] sm:$0xff] }
 0x2a0   : > { %12724 = vmatprep.subr.bf16.mxu0 %v17122_v25 }
 0x2a3   : > { %12726 = vmatpush1.bf16.msra.mxu0 %v12725_v30  ;;  %v17125_v30 = vld [vmem:[#allocation27_spill] sm:$0xff] }
 0x2a4   : > { %12727 = vmatprep.subr.bf16.mxu0 %v17122_v25 }
 0x2a7   : > { %12729 = vmatpush1.bf16.msra.mxu0 %v12728_v32  ;;  %v17126_v32 = vld [vmem:[#allocation28_spill] sm:$0xff] }
 0x2a8   : > { %12730 = vmatprep.subr.bf16.mxu0 %v17122_v25 }
 0x2ab   : > { %12732 = vmatpush1.bf16.msra.mxu0 %v12731_v55  ;;  %v17127_v55 = vand.u32 4294901760, %v14913_v16  ;;  %v17133_v16 = vand.u32 4294901760, %v14921_v24  ;;  %v17139_v24 = vand.u32 4294901760, %v14940_v47  ;;  %v17145_v47 = vand.u32 4294901760, %v14956_v2 }
 0x2ac   : > { %12733 = vmatprep.subr.bf16.mxu0 %v17122_v25  ;;  %v17151_v2 = vand.u32 4294901760, %v15005_v40  ;;  %v1762_v40 = vld [vmem:[#allocation7] sm:$0xf] }
 0x2ad   : > { %v1771_v62 = vsel %vm1769_vm6, %v1762_v40, 0  ;;  %v2266_v40 = vld [vmem:[#allocation6 + $0x28] sm:$0xff] }
 0x2ae   : > { %v15392_v26 = vand.u32 4294901760, %v1771_v62 }
 0x2af   : > { %12735 = vmatpush1.bf16.msra.mxu0 %v12734_v56  ;;  %v17128_v56 = vand.u32 4294901760, %v14915_v17  ;;  %v17134_v17 = vand.u32 4294901760, %v14926_v28  ;;  %v17140_v28 = vand.u32 4294901760, %v14942_v48  ;;  %v17146_v48 = vand.u32 4294901760, %v14958_v3 }
 0x2b0   : > { %12736 = vmatprep.subr.bf16.mxu0 %v17122_v25  ;;  %v17152_v3 = vand.u32 4294901760, %v15007_v44 }
 0x2b3   : > { %12738 = vmatpush1.bf16.msra.mxu0 %v12737_v49  ;;  %v12806_v49 = vpack.c.bf16 %v17128_v56, %v17127_v55  ;;  %v12821_v56 = vpack.c.bf16 %v17140_v28, %v17139_v24 }
 0x2b4   : > { %12739 = vmatprep.subr.bf16.mxu0 %v17122_v25 }
 0x2b7   : > { %12741 = vmatpush1.bf16.msra.mxu0 %v12740_v20  ;;  %v17129_v20 = vand.u32 4294901760, %v15042_v51 }
 0x2b8   : > { %12742 = vmatprep.subr.bf16.mxu0 %v17122_v25 }
 0x2bb   : > { %12744 = vmatpush1.bf16.msra.mxu0 %v12743_v33  ;;  %v17130_v33 = vld [vmem:[#allocation29_spill] sm:$0xff] }
 0x2bc   : > { %12745 = vmatprep.subr.bf16.mxu0 %v17122_v25 }
 0x2bf   : > { %12747 = vmatpush1.bf16.msra.mxu0 %v12746_v59  ;;  %v17131_v59 = vand.u32 4294901760, %v14917_v22  ;;  %v17137_v22 = vand.u32 4294901760, %v14935_v42  ;;  %v17143_v42 = vand.u32 4294901760, %v14949_v60  ;;  %v17149_v60 = vand.u32 4294901760, %v14965_v8 }
 0x2c0   : > { %12748 = vmatprep.subr.bf16.mxu0 %v17122_v25 }
 0x2c3   : > { %12750 = vmatpush1.bf16.msra.mxu0 %v12749_v57  ;;  %v17132_v57 = vand.u32 4294901760, %v14919_v23  ;;  %v17138_v23 = vand.u32 4294901760, %v14937_v43  ;;  %v17144_v43 = vand.u32 4294901760, %v14951_v61  ;;  %v17150_v61 = vand.u32 4294901760, %v14967_v9 }
 0x2c4   : > { %12751 = vmatprep.subr.bf16.mxu0 %v17122_v25  ;;  %v12848_v9 = vpack.c.bf16 %v1198_v53, %v1191_v52  ;;  %v1845_v53 = vsub.f32 %v1771_v62, %v15392_v26  ;;  %v2267_v62 = vld [vmem:[#allocation6 + $0x30] sm:$0xff] }
 0x2c5   : > { %v12818_v55 = vpack.c.bf16 %v17138_v23, %v17137_v22 }
 0x2c7   : > { %12753 = vmatpush1.bf16.msra.mxu0 %v12752_v1  ;;  %v12809_v1 = vpack.c.bf16 %v17132_v57, %v17131_v59  ;;  %v12830_v59 = vpack.c.bf16 %v17146_v48, %v17145_v47 }
 0x2c8   : > { %12754 = vmatprep.subr.bf16.mxu0 %v17122_v25 }
 0x2cb   : > { %12756 = vmatpush1.bf16.msra.mxu0 %v12755_v38  ;;  %v12812_v38 = vpack.c.bf16 %v17134_v17, %v17133_v16  ;;  %v12839_v16 = vpack.c.bf16 %v17152_v3, %v17151_v2 }
 0x2cc   : > { %12757 = vmatprep.subr.bf16.mxu0 %v17122_v25 }
 0x2cf   : > { %12759 = vmatpush1.bf16.msra.mxu0 %v12758_v0  ;;  %v17136_v0 = vand.u32 4294901760, %v14931_v36  ;;  %v17142_v36 = vand.u32 4294901760, %v14947_v54  ;;  %v17148_v54 = vand.u32 4294901760, %v14963_v5  ;;  %v17153_v5 = vand.u32 4294901760, %v15021_v6 }
 0x2d0   : > { %12760 = vmatprep.subr.bf16.mxu0 %v17122_v25 }
 0x2d1   : > { %v12845_v8 = vpack.c.bf16 %v17153_v5, %v1177_v58 }
 0x2d2   : > { %1343 = vmatmul.mubr.f32.vlgmr.msra.gmra.mrb[0].mxu0 %v15042_v51  ;;  %v17135_v51 = vand.u32 4294901760, %v14929_v35  ;;  %v17141_v35 = vand.u32 4294901760, %v14944_v50  ;;  %v17147_v50 = vand.u32 4294901760, %v14960_v4  ;;  %v12842_v4 = vpack.c.bf16 %v1170_v34, %v1163_v31 }
 0x2d3   : > { %12762 = vmatpush1.bf16.msra.mxu0 %v14911_v15  ;;  %1445 = vmatprep.mubr.f32.mxu0 %v17123_v37 }
 0x2d4   : > { %12763 = vmatprep.subr.bf16.mxu0 %v17122_v25  ;;  %v12815_v37 = vpack.c.bf16 %v17136_v0, %v17135_v51  ;;  %v12833_v57 = vpack.c.bf16 %v17148_v54, %v17147_v50 }
 0x2d7   : > { %12765 = vmatpush1.bf16.msra.mxu0 %v14924_v27 }
 0x2d8   : > { %12766 = vmatprep.subr.bf16.mxu0 %v17122_v25 }
 0x2db   : > { %12768 = vmatpush1.bf16.msra.mxu0 %v14933_v41 }
 0x2dc   : > { %12769 = vmatprep.subr.bf16.mxu0 %v17122_v25 }
 0x2df   : > { %12771 = vmatpush1.bf16.msra.mxu0 %v14954_v63 }
 0x2e0   : > { %12772 = vmatprep.subr.bf16.mxu0 %v17122_v25 }
 0x2e3   : > { %12774 = vmatpush1.bf16.msra.mxu0 %v14970_v10 }
 0x2e4   : > { %12775 = vmatprep.subr.bf16.mxu0 %v17122_v25 }
 0x2e7   : > { %12777 = vmatpush1.bf16.msra.mxu0 %v14974_v11 }
 0x2e8   : > { %12778 = vmatprep.subr.bf16.mxu0 %v17122_v25 }
 0x2eb   : > { %12780 = vmatpush1.bf16.msra.mxu0 %v14978_v12 }
 0x2ec   : > { %12781 = vmatprep.subr.bf16.mxu0 %v17122_v25 }
 0x2ef   : > { %12783 = vmatpush1.bf16.msra.mxu0 %v14982_v13 }
 0x2f0   : > { %12784 = vmatprep.subr.bf16.mxu0 %v17122_v25 }
 0x2f3   : > { %12786 = vmatpush1.bf16.msra.mxu0 %v14986_v14 }
 0x2f4   : > { %12787 = vmatprep.subr.bf16.mxu0 %v17122_v25 }
 0x2f7   : > { %12789 = vmatpush1.bf16.msra.mxu0 %v14990_v18 }
 0x2f8   : > { %12790 = vmatprep.subr.bf16.mxu0 %v17122_v25 }
 0x2fb   : > { %12792 = vmatpush1.bf16.msra.mxu0 %v14994_v19 }
 0x2fc   : > { %12793 = vmatprep.subr.bf16.mxu0 %v17122_v25 }
 0x2ff   : > { %12795 = vmatpush1.bf16.msra.mxu0 %v14999_v29 }
 0x300   : > { %12796 = vmatprep.subr.bf16.mxu0 %v17122_v25 }
 0x303   : > { %12798 = vmatpush1.bf16.msra.mxu0 %v17124_v7 }
 0x304   : > { %12799 = vmatprep.subr.bf16.mxu0 %v17122_v25 }
 0x307   : > { %12801 = vmatpush1.bf16.msra.mxu0 %v17125_v30 }
 0x308   : > { %12802 = vmatprep.subr.bf16.mxu0 %v17122_v25 }
 0x30b   : > { %12804 = vmatpush1.bf16.msra.mxu0 %v17126_v32 }
 0x30c   : > { %12805 = vmatprep.subr.bf16.mxu0 %v17122_v25 }
 0x30e   : > { %1449 = vmatmul.mubr.f32.vlgmr.msra.gmra.mrb[0].mxu0 %v17129_v20  ;;  %v12827_v20 = vpack.c.bf16 %v17144_v43, %v17143_v42 }
 0x30f   : > { %12807 = vmatpush1.bf16.msra.mxu0 %v12806_v49  ;;  %1609 = vmatprep.mubr.f32.mxu0 %v17130_v33  ;;  %v12824_v49 = vpack.c.bf16 %v17142_v36, %v17141_v35 }
 0x310   : > { %12808 = vmatprep.subr.bf16.mxu0 %v17122_v25 }
 0x313   : > { %12810 = vmatpush1.bf16.msra.mxu0 %v12809_v1  ;;  %v12836_v1 = vpack.c.bf16 %v17150_v61, %v17149_v60 }
 0x314   : > { %12811 = vmatprep.subr.bf16.mxu0 %v17122_v25 }
 0x317   : > { %12813 = vmatpush1.bf16.msra.mxu0 %v12812_v38 }
 0x318   : > { %12814 = vmatprep.subr.bf16.mxu0 %v17122_v25 }
 0x31b   : > { %12816 = vmatpush1.bf16.msra.mxu0 %v12815_v37  ;;  %v1846_v37 = vand.u32 4294901760, %v1845_v53 }
 0x31c   : > { %12817 = vmatprep.subr.bf16.mxu0 %v17122_v25 }
 0x31f   : > { %12819 = vmatpush1.bf16.msra.mxu0 %v12818_v55 }
 0x320   : > { %12820 = vmatprep.subr.bf16.mxu0 %v17122_v25 }
 0x323   : > { %12822 = vmatpush1.bf16.msra.mxu0 %v12821_v56 }
 0x324   : > { %12823 = vmatprep.subr.bf16.mxu0 %v17122_v25 }
 0x327   : > { %12825 = vmatpush1.bf16.msra.mxu0 %v12824_v49  ;;  %v1847_v49 = vsub.f32 %v1845_v53, %v1846_v37 }
 0x328   : > { %12826 = vmatprep.subr.bf16.mxu0 %v17122_v25 }
 0x329   : > { %v1848_v50 = vand.u32 4294901760, %v1847_v49 }
 0x32b   : > { %12828 = vmatpush1.bf16.msra.mxu0 %v12827_v20 }
 0x32c   : > { %12829 = vmatprep.subr.bf16.mxu0 %v17122_v25 }
 0x32f   : > { %12831 = vmatpush1.bf16.msra.mxu0 %v12830_v59 }
 0x330   : > { %12832 = vmatprep.subr.bf16.mxu0 %v17122_v25 }
 0x333   : > { %12834 = vmatpush1.bf16.msra.mxu0 %v12833_v57 }
 0x334   : > { %12835 = vmatprep.subr.bf16.mxu0 %v17122_v25 }
 0x337   : > { %12837 = vmatpush1.bf16.msra.mxu0 %v12836_v1 }
 0x338   : > { %12838 = vmatprep.subr.bf16.mxu0 %v17122_v25 }
 0x33b   : > { %12840 = vmatpush1.bf16.msra.mxu0 %v12839_v16 }
 0x33c   : > { %12841 = vmatprep.subr.bf16.mxu0 %v17122_v25 }
 0x33f   : > { %12843 = vmatpush1.bf16.msra.mxu0 %v12842_v4 }
 0x340   : > { %12844 = vmatprep.subr.bf16.mxu0 %v17122_v25 }
 0x343   : > { %12846 = vmatpush1.bf16.msra.mxu0 %v12845_v8 }
 0x344   : > { %12847 = vmatprep.subr.bf16.mxu0 %v17122_v25 }
 0x347   : > { %12849 = vmatpush1.bf16.msra.mxu0 %v12848_v9 }
 0x348   : > { %12850 = vmatprep.subr.bf16.mxu0 %v17122_v25 }
 0x34a   : > { %1611 = vmatmul.mubr.f32.vlgmr.msra.gmra.mrb[0].mxu0 %v15036_v39 }
 0x34b   : > { %12852 = vmatpush1.bf16.msra.mxu0 %v14911_v15  ;;  %1711 = vmatprep.mubr.f32.mxu0 %v17130_v33 }
 0x34c   : > { %12853 = vmatprep.subr.bf16.mxu0 %v17122_v25 }
 0x34f   : > { %12855 = vmatpush1.bf16.msra.mxu0 %v14924_v27 }
 0x350   : > { %12856 = vmatprep.subr.bf16.mxu0 %v17122_v25 }
 0x353   : > { %12858 = vmatpush1.bf16.msra.mxu0 %v14933_v41 }
 0x354   : > { %12859 = vmatprep.subr.bf16.mxu0 %v17122_v25 }
 0x357   : > { %12861 = vmatpush1.bf16.msra.mxu0 %v14954_v63 }
 0x358   : > { %12862 = vmatprep.subr.bf16.mxu0 %v17122_v25 }
 0x35b   : > { %12864 = vmatpush1.bf16.msra.mxu0 %v14970_v10 }
 0x35c   : > { %12865 = vmatprep.subr.bf16.mxu0 %v17122_v25 }
 0x35f   : > { %12867 = vmatpush1.bf16.msra.mxu0 %v14974_v11 }
 0x360   : > { %12868 = vmatprep.subr.bf16.mxu0 %v17122_v25 }
 0x363   : > { %12870 = vmatpush1.bf16.msra.mxu0 %v14978_v12 }
 0x364   : > { %12871 = vmatprep.subr.bf16.mxu0 %v17122_v25 }
 0x367   : > { %12873 = vmatpush1.bf16.msra.mxu0 %v14982_v13 }
 0x368   : > { %12874 = vmatprep.subr.bf16.mxu0 %v17122_v25 }
 0x36b   : > { %12876 = vmatpush1.bf16.msra.mxu0 %v14986_v14 }
 0x36c   : > { %12877 = vmatprep.subr.bf16.mxu0 %v17122_v25 }
 0x36f   : > { %12879 = vmatpush1.bf16.msra.mxu0 %v14990_v18  ;;  %v17054_v18 = vmov 0.0  }
 0x370   : > { %12880 = vmatprep.subr.bf16.mxu0 %v17122_v25  ;;  %11031 = vmatprep.mubr.msk.f32.mxu1 %vm14486_vm4, %v17054_v18 }
 0x373   : > { %12882 = vmatpush1.bf16.msra.mxu0 %v14994_v19  ;;  %v1763_v19 = vld [vmem:[#allocation9] sm:$0xf] }
 0x374   : > { %12883 = vmatprep.subr.bf16.mxu0 %v17122_v25 }
 0x377   : > { %12885 = vmatpush1.bf16.msra.mxu0 %v14999_v29  ;;  %v14490_v29 = vmov 0  }
 0x378   : > { %12886 = vmatprep.subr.bf16.mxu0 %v17122_v25  ;;  %14119 = vset.pattern.permute.xlu0 %v14490_v29 }
 0x379   : > { %14120 = vset.pattern.permute.xlu1 %v14490_v29  ;;  %v2265_v29 = vld [vmem:[#allocation6 + $0x20] sm:$0xff] }
 0x37b   : > { %12888 = vmatpush1.bf16.msra.mxu0 %v17124_v7 }
 0x37c   : > { %12889 = vmatprep.subr.bf16.mxu0 %v17122_v25 }
 0x37f   : > { %12891 = vmatpush1.bf16.msra.mxu0 %v17125_v30 }
 0x380   : > { %12892 = vmatprep.subr.bf16.mxu0 %v17122_v25 }
 0x383   : > { %12894 = vmatpush1.bf16.msra.mxu0 %v17126_v32 }
 0x384   : > { %13261 = vmatprep.subr.bf16.mxu0 %v17122_v25 }
 0x386   : > { %1713 = vmatmul.mubr.f32.vlgmr.msra.gmra.mrb[0].mxu0 %v15036_v39 }
 0x387   : > { %11640 = vmatprep.mubr.msk.f32.mxu0 %vm14486_vm4, %v17054_v18 }
 0x459   : > { %v1714_v15 = vpop.f32.mrb[0].mxu0 }
 0x45a   : > { %v1716_v27 = vpop.f32.mrb[1].mxu0  ;;  %v1723_v41 = vrot.slane %v1714_v15, 2  ;;  %v1719_v63 = vrot.slane %v1714_v15, 5  ;;  %v1727_v10 = vrot.slane %v1714_v15, 7  ;;  %v1735_v11 = vrot.slane %v1714_v15, 1 }
 0x45b   : > { %v1731_v12 = vrot.slane %v1714_v15, 4  ;;  %v1743_v13 = vrot.slane %v1714_v15, 3  ;;  %v1739_v14 = vrot.slane %v1714_v15, 6  ;;  %v15419_v27 = vld [vmem:[#allocation6 + $0x8] sm:$0xff] }
 0x45c   : > { %1724 = vrot.lane.b32.xlu1 %v1723_v41, %s14481_s5  ;;  %1720 = vrot.lane.b32.xlu0 %v1719_v63, %s14479_s17  ;;  %v2279_v63 = vand.u32 4294901760, %v15419_v27 }
 0x460   : > { %1728 = vrot.lane.b32.xlu1 %v1727_v10, %s14482_s6  ;;  %1736 = vrot.lane.b32.xlu0 %v1735_v11, %s14483_s0  ;;  %v2263_v11 = vld [vmem:[#allocation6 + $0x10] sm:$0xff] }
 0x464   : > { %1732 = vrot.lane.b32.xlu1 %v1731_v12, %s14484_s3  ;;  %1744 = vrot.lane.b32.xlu0 %v1743_v13, %s17049_s25  ;;  %v2264_v12 = vld [vmem:[#allocation6 + $0x18] sm:$0xff]  ;;  %v2282_v13 = vand.u32 4294901760, %v2263_v11 }
 0x468   : > { %1740 = vrot.lane.b32.xlu1 %v1739_v14, %s14488_s26  ;;  %1766 = vperm.xlu0 %14119, %v1763_v19   ;;  %v2285_v14 = vand.u32 4294901760, %v2264_v12 }
 0x46a   : > { %v15439_v19 = vpack.c.bf16 %v2285_v14, %v2282_v13 }
 0x46c   : > { %1747 = vrot.lane.b32.xlu1 %v1714_v15, %s17051_s2  ;;  %17154 = vst [vmem:[#allocation26_spill] sm:$0xff] %v15439_v19 }
 0x4ce   : > { %v1725_v44 = vpop.permute.xlu1 %1724  ;;  %v1721_v45 = vpop.permute.xlu0 %1720 }
 0x4cf   : > { %v1750_v46 = vsel %vm1749_vm5, %v1714_v15, %v1721_v45  ;;  %v15417_v15 = vld [vmem:[#allocation6] sm:$0xff]  ;;  %v2291_v45 = vand.u32 4294901760, %v2266_v40 }
 0x4d0   : > { %v1752_v6 = vsel %vm1751_vm7, %v1750_v46, %v1725_v44  ;;  %v2276_v41 = vand.u32 4294901760, %v15417_v15 }
 0x4d1   : > { %v1776_v39 = vand.u32 4294901760, %v1752_v6 }
 0x4d2   : > { %v1729_v21 = vpop.permute.xlu1 %1728  ;;  %v1737_v58 = vpop.permute.xlu0 %1736  ;;  %v15431_v10 = vpack.c.bf16 %v2279_v63, %v2276_v41 }
 0x4d3   : > { %v1754_v31 = vsel %vm1753_vm8, %v1725_v44, %v1729_v21  ;;  %v1856_v7 = vsub.f32 %v1752_v6, %v1776_v39  ;;  %v2288_v44 = vand.u32 4294901760, %v2265_v29  ;;  %v2268_v6 = vld [vmem:[#allocation6 + $0x38] sm:$0xff]  ;;  %v2294_v21 = vand.u32 4294901760, %v2267_v62 }
 0x4d5   : > { %v1857_v22 = vand.u32 4294901760, %v1856_v7  ;;  %v15443_v46 = vpack.c.bf16 %v2291_v45, %v2288_v44 }
 0x4d6   : > { %v1733_v34 = vpop.permute.xlu1 %1732  ;;  %v1745_v38 = vpop.permute.xlu0 %1744 }
 0x4d7   : > { %v1756_v52 = vsel %vm1755_vm9, %v1754_v31, %v1733_v34  ;;  %v1858_v42 = vsub.f32 %v1856_v7, %v1857_v22  ;;  %17155 = vst [vmem:[#allocation27_spill] sm:$0xff] %v15443_v46  ;;  %v2270_v31 = vld [vmem:[#allocation6 + $0x48] sm:$0xff] }
 0x4d8   : > { %v1757_v30 = vsel %vm878_vm1, %v1756_v52, %v1737_v58  ;;  %v2303_v52 = vand.u32 4294901760, %v2270_v31  ;;  %vm7878_vm1 = vcmask 883712  }
 0x4d9   : > { %v1779_v32 = vand.u32 4294901760, %v1757_v30  ;;  %v1859_v60 = vand.u32 4294901760, %v1858_v42 }
 0x4da   : > { %v1741_v33 = vpop.permute.xlu1 %1740 }
 0x4db   : > { %v1863_v17 = vsub.f32 %v1757_v30, %v1779_v32  ;;  %v1759_v51 = vsel %vm1758_vm10, %v1737_v58, %v1741_v33  ;;  %v12896_v0 = vpack.c.bf16 %v1779_v32, %v1776_v39  ;;  %v2269_v58 = vld [vmem:[#allocation6 + $0x40] sm:$0xff]  ;;  %v2383_v30 = vsub.f32 %v2264_v12, %v2285_v14 }
 0x4dc   : > { %v1761_v23 = vsel %vm1760_vm11, %v1759_v51, %v1745_v38  ;;  %v2300_v34 = vand.u32 4294901760, %v2269_v58  ;;  %v2390_v38 = vsub.f32 %v2265_v29, %v2288_v44  ;;  %v2397_v51 = vsub.f32 %v2266_v40, %v2291_v45 }
 0x4dd   : > { %v1864_v55 = vand.u32 4294901760, %v1863_v17  ;;  %v1782_v24 = vand.u32 4294901760, %v1761_v23  ;;  %12897 = vmatpush3.bf16.msra.mxu1 %v12896_v0  ;;  %v12908_v4 = vpack.c.bf16 %v1863_v17, %v1856_v7  ;;  %v2376_v7 = vsub.f32 %v2263_v11, %v2282_v13 }
 0x4de   : > { %v1748_v28 = vpop.permute.xlu1 %1747  ;;  %12898 = vmatprep.subr.bf16.mxu1 %v17122_v25  ;;  %v2384_v33 = vand.u32 4294901760, %v2383_v30  ;;  %v15465_v11 = vpack.c.bf16 %v2397_v51, %v2390_v38  ;;  %v2362_v14 = vsub.f32 %v15417_v15, %v2276_v41  ;;  %v2369_v29 = vsub.f32 %v15419_v27, %v2279_v63 }
 0x4df   : > { %v1865_v56 = vsub.f32 %v1863_v17, %v1864_v55  ;;  %v1870_v35 = vsub.f32 %v1761_v23, %v1782_v24  ;;  %v1773_v36 = vsel %vm1749_vm5, %v1748_v28, 0  ;;  %v12920_v8 = vpack.c.bf16 %v1864_v55, %v1857_v22 }
 0x4e0   : > { %v1785_v43 = vand.u32 4294901760, %v1773_v36  ;;  %v2377_v32 = vand.u32 4294901760, %v2376_v7  ;;  %v2391_v22 = vand.u32 4294901760, %v2390_v38  ;;  %v2398_v23 = vand.u32 4294901760, %v2397_v51 }
 0x4e1   : > { %v1871_v20 = vand.u32 4294901760, %v1870_v35  ;;  %v1866_v59 = vand.u32 4294901760, %v1865_v56  ;;  %v2404_v56 = vsub.f32 %v2267_v62, %v2294_v21  ;;  %v2363_v40 = vand.u32 4294901760, %v2362_v14 }
 0x4e2   : > { %v12899_v47 = vpack.c.bf16 %v1785_v43, %v1782_v24  ;;  %v1877_v48 = vsub.f32 %v1773_v36, %v1785_v43  ;;  %v2378_v17 = vsub.f32 %v2376_v7, %v2377_v32  ;;  %v2392_v24 = vsub.f32 %v2390_v38, %v2391_v22 }
 0x4e3   : > { %v1872_v54 = vsub.f32 %v1870_v35, %v1871_v20  ;;  %v12902_v1 = vpack.c.bf16 %v1866_v59, %v1859_v60  ;;  %v2399_v28 = vsub.f32 %v2397_v51, %v2398_v23  ;;  %v2405_v43 = vand.u32 4294901760, %v2404_v56 }
 0x4e4   : > { %v1878_v57 = vand.u32 4294901760, %v1877_v48  ;;  %12900 = vmatpush3.bf16.msra.mxu1 %v12899_v47  ;;  %v12911_v5 = vpack.c.bf16 %v1877_v48, %v1870_v35  ;;  %v2393_v49 = vand.u32 4294901760, %v2392_v24  ;;  %v2370_v44 = vand.u32 4294901760, %v2369_v29  ;;  %v2868_v24 = vld [vmem:[#allocation12] sm:$0xf] }
 0x4e5   : > { %12901 = vmatprep.subr.bf16.mxu1 %v17122_v25  ;;  %v1873_v3 = vand.u32 4294901760, %v1872_v54  ;;  %v2400_v42 = vand.u32 4294901760, %v2399_v28  ;;  %v2425_v54 = vsub.f32 %v2270_v31, %v2303_v52  ;;  %v15479_v62 = vpack.c.bf16 %v2384_v33, %v2377_v32  ;;  %v2867_v28 = vld [vmem:[#allocation10] sm:$0xf] }
 0x4e6   : > { %v1879_v61 = vsub.f32 %v1877_v48, %v1878_v57  ;;  %v12923_v9 = vpack.c.bf16 %v1878_v57, %v1871_v20  ;;  %v2406_v48 = vsub.f32 %v2404_v56, %v2405_v43  ;;  %v15477_v45 = vpack.c.bf16 %v2370_v44, %v2363_v40 }
 0x4e7   : > { %11032 = vmatmul.mubr.f32.vlgmr.msra.gmra.mrb[0].mxu1 %v1848_v50  ;;  %v2418_v50 = vsub.f32 %v2269_v58, %v2300_v34  ;;  %17159 = vst [vmem:[#allocation31_spill] sm:$0xff] %v15479_v62  ;;  %v1767_v58 = vpop.permute.xlu0 %1766  ;;  %v2364_v63 = vsub.f32 %v2362_v14, %v2363_v40 }
 0x4e8   : > { %v1880_v2 = vand.u32 4294901760, %v1879_v61  ;;  %12903 = vmatpush3.bf16.msra.mxu1 %v12902_v1  ;;  %11042 = vmatprep.mubr.msk.f32.mxu1 %vm14486_vm4, %v17054_v18  ;;  %v2407_v57 = vand.u32 4294901760, %v2406_v48  ;;  %v2426_v1 = vand.u32 4294901760, %v2425_v54  ;;  %17158 = vst [vmem:[#allocation30_spill] sm:$0xff] %v15477_v45 }
 0x4e9   : > { %12904 = vmatprep.subr.bf16.mxu1 %v17122_v25  ;;  %v2419_v61 = vand.u32 4294901760, %v2418_v50  ;;  %v15469_v13 = vpack.c.bf16 %v2425_v54, %v2418_v50  ;;  %v2365_v32 = vand.u32 4294901760, %v2364_v63 }
 0x4ea   : > { %v12905_v16 = vpack.c.bf16 %v1880_v2, %v1873_v3 }
 0x4eb   : > { %v2420_v3 = vsub.f32 %v2418_v50, %v2419_v61 }
 0x4ec   : > { %12906 = vmatpush3.bf16.msra.mxu1 %v12905_v16  ;;  %v2427_v16 = vsub.f32 %v2425_v54, %v2426_v1 }
 0x4ed   : > { %12907 = vmatprep.subr.bf16.mxu1 %v17122_v25 }
 0x4ef   : > { %11043 = vmatmul.mubr.f32.vlgmr.msra.gmra.mrb[0].mxu1 %v15392_v26 }
 0x4f0   : > { %12909 = vmatpush3.bf16.msra.mxu1 %v12908_v4  ;;  %11053 = vmatprep.mubr.msk.f32.mxu1 %vm14486_vm4, %v17054_v18  ;;  %v2421_v4 = vand.u32 4294901760, %v2420_v3 }
 0x4f1   : > { %12910 = vmatprep.subr.bf16.mxu1 %v17122_v25 }
 0x4f4   : > { %12912 = vmatpush3.bf16.msra.mxu1 %v12911_v5  ;;  %v2428_v5 = vand.u32 4294901760, %v2427_v16 }
 0x4f5   : > { %12913 = vmatprep.subr.bf16.mxu1 %v17122_v25 }
 0x4f7   : > { %11054 = vmatmul.mubr.f32.vlgmr.msra.gmra.mrb[0].mxu1 %v1845_v53  ;;  %v15451_v53 = vpack.c.bf16 %v2303_v52, %v2300_v34  ;;  %v2371_v52 = vsub.f32 %v2369_v29, %v2370_v44 }
 0x4f8   : > { %12915 = vmatpush3.bf16.msra.mxu1 %v12896_v0  ;;  %11064 = vmatprep.mubr.msk.f32.mxu1 %vm14486_vm4, %v17054_v18 }
 0x4f9   : > { %12916 = vmatprep.subr.bf16.mxu1 %v17122_v25  ;;  %17157 = vst [vmem:[#allocation29_spill] sm:$0xff] %v15451_v53 }
 0x4fc   : > { %12918 = vmatpush3.bf16.msra.mxu1 %v12899_v47 }
 0x4fd   : > { %12919 = vmatprep.subr.bf16.mxu1 %v17122_v25 }
 0x4ff   : > { %11065 = vmatmul.mubr.f32.vlgmr.msra.gmra.mrb[0].mxu1 %v1846_v37  ;;  %v2379_v37 = vand.u32 4294901760, %v2378_v17 }
 0x500   : > { %12921 = vmatpush3.bf16.msra.mxu1 %v12920_v8  ;;  %11075 = vmatprep.mubr.msk.f32.mxu1 %vm14486_vm4, %v17054_v18  ;;  %v15461_v8 = vpack.c.bf16 %v2428_v5, %v2421_v4 }
 0x501   : > { %12922 = vmatprep.subr.bf16.mxu1 %v17122_v25 }
 0x504   : > { %12924 = vmatpush3.bf16.msra.mxu1 %v12923_v9  ;;  %v15463_v9 = vpack.c.bf16 %v2383_v30, %v2376_v7 }
 0x505   : > { %12925 = vmatprep.subr.bf16.mxu1 %v17122_v25 }
 0x507   : > { %11076 = vmatmul.mubr.f32.vlgmr.msra.gmra.mrb[0].mxu1 %v15392_v26 }
 0x508   : > { %12927 = vmatpush3.bf16.msra.mxu1 %v12896_v0  ;;  %11086 = vmatprep.mubr.msk.f32.mxu1 %vm14486_vm4, %v17054_v18  ;;  %v2385_v0 = vsub.f32 %v2383_v30, %v2384_v33  ;;  %v2372_v33 = vand.u32 4294901760, %v2371_v52 }
 0x509   : > { %12928 = vmatprep.subr.bf16.mxu1 %v17122_v25 }
 0x50a   : > { %v2386_v55 = vand.u32 4294901760, %v2385_v0  ;;  %v15491_v51 = vpack.c.bf16 %v2372_v33, %v2365_v32 }
 0x50c   : > { %12930 = vmatpush3.bf16.msra.mxu1 %v12899_v47  ;;  %v15455_v36 = vpack.c.bf16 %v2386_v55, %v2379_v37  ;;  %v15457_v47 = vpack.c.bf16 %v2400_v42, %v2393_v49  ;;  %v15504_v37 = vpack.c.bf16 %v2369_v29, %v2362_v14 }
 0x50d   : > { %12931 = vmatprep.subr.bf16.mxu1 %v17122_v25 }
 0x50f   : > { %11087 = vmatmul.mubr.f32.vlgmr.msra.gmra.mrb[0].mxu1 %v15392_v26  ;;  %v2297_v26 = vand.u32 4294901760, %v2268_v6 }
 0x510   : > { %12933 = vmatpush3.bf16.msra.mxu1 %v15431_v10  ;;  %11109 = vmatprep.mubr.msk.f32.mxu1 %vm14486_vm4, %v17054_v18 }
 0x511   : > { %12934 = vmatprep.subr.bf16.mxu1 %v17122_v25  ;;  %v15447_v39 = vpack.c.bf16 %v2297_v26, %v2294_v21  ;;  %v2411_v35 = vsub.f32 %v2268_v6, %v2297_v26  ;;  %v15481_v6 = vpack.c.bf16 %v2398_v23, %v2391_v22  ;;  %v15485_v26 = vpack.c.bf16 %v2426_v1, %v2419_v61 }
 0x513   : > { %17156 = vst [vmem:[#allocation28_spill] sm:$0xff] %v15447_v39  ;;  %v2412_v20 = vand.u32 4294901760, %v2411_v35  ;;  %v15467_v12 = vpack.c.bf16 %v2411_v35, %v2404_v56  ;;  %17160 = vst [vmem:[#allocation32_spill] sm:$0xff] %v15481_v6 }
 0x514   : > { %12936 = vmatpush3.bf16.msra.mxu1 %v15439_v19  ;;  %17162 = vst [vmem:[#allocation34_spill] sm:$0xff] %v15485_v26 }
 0x515   : > { %12937 = vmatprep.subr.bf16.mxu1 %v17122_v25  ;;  %v2413_v59 = vsub.f32 %v2411_v35, %v2412_v20  ;;  %v15483_v21 = vpack.c.bf16 %v2412_v20, %v2405_v43  ;;  %v2876_v35 = vsel %vm2874_vm13, %v2867_v28, 0 }
 0x516   : > { %v15570_v43 = vand.u32 4294901760, %v2876_v35 }
 0x517   : > { %v2414_v60 = vand.u32 4294901760, %v2413_v59  ;;  %17161 = vst [vmem:[#allocation33_spill] sm:$0xff] %v15483_v21 }
 0x518   : > { %12939 = vmatpush3.bf16.msra.mxu1 %v15443_v46 }
 0x519   : > { %12940 = vmatprep.subr.bf16.mxu1 %v17122_v25  ;;  %v15459_v2 = vpack.c.bf16 %v2414_v60, %v2407_v57  ;;  %v15576_v57 = vsub.f32 %v2876_v35, %v15570_v43 }
 0x51b   : > { %v2952_v4 = vand.u32 4294901760, %v15576_v57 }
 0x51c   : > { %12942 = vmatpush3.bf16.msra.mxu1 %v15447_v39 }
 0x51d   : > { %12943 = vmatprep.subr.bf16.mxu1 %v17122_v25 }
 0x520   : > { %12945 = vmatpush3.bf16.msra.mxu1 %v15451_v53 }
 0x521   : > { %12946 = vmatprep.subr.bf16.mxu1 %v17122_v25 }
 0x5e2   : > { %v2256_v31 = vpop.f32.mrb[0].mxu1 }
 0x5e3   : > { %v13813_v34 = vadd.f32 %v2256_v31, %v1767_v58  ;;  %v11088_v15 = vpop.f32.mrb[1].mxu1 }
 0x5e5   : > { %v2260_v41 = vmax.f32 %v13813_v34, 0.0 }
 0x5e7   : > { %v2273_v27 = vsel %vm2271_vm12, %v2260_v41, 0  ;;  %v2953_v41 = vsub.f32 %v15576_v57, %v2952_v4 }
 0x5e8   : > { %v15488_v7 = vand.u32 4294901760, %v2273_v27 }
 0x5ea   : > { %v2351_v30 = vsub.f32 %v2273_v27, %v15488_v7 }
 0x5ec   : > { %v2352_v17 = vand.u32 4294901760, %v2351_v30 }
 0x5ee   : > { %v2353_v38 = vsub.f32 %v2351_v30, %v2352_v17 }
 0x5f0   : > { %v2354_v0 = vand.u32 4294901760, %v2353_v38 }
 0x5f2   : > { %11110 = vmatmul.mubr.f32.vlgmr.msra.gmra.mrb[2].mxu1 %v2354_v0  ;;  %v2954_v0 = vand.u32 4294901760, %v2953_v41  ;;  %v3958_v41 = vld [vmem:[%s17163_s8 + $0x18] sm:$0xff] }
 0x5f3   : > { %12948 = vmatpush3.bf16.msra.mxu1 %v15491_v51  ;;  %11132 = vmatprep.mubr.msk.f32.mxu1 %vm14486_vm4, %v17054_v18 }
 0x5f4   : > { %12949 = vmatprep.subr.bf16.mxu1 %v17122_v25 }
 0x5f7   : > { %12951 = vmatpush3.bf16.msra.mxu1 %v15455_v36 }
 0x5f8   : > { %12952 = vmatprep.subr.bf16.mxu1 %v17122_v25 }
 0x5fb   : > { %12954 = vmatpush3.bf16.msra.mxu1 %v15457_v47 }
 0x5fc   : > { %12955 = vmatprep.subr.bf16.mxu1 %v17122_v25 }
 0x5ff   : > { %12957 = vmatpush3.bf16.msra.mxu1 %v15459_v2 }
 0x600   : > { %12958 = vmatprep.subr.bf16.mxu1 %v17122_v25 }
 0x603   : > { %12960 = vmatpush3.bf16.msra.mxu1 %v15461_v8 }
 0x604   : > { %12961 = vmatprep.subr.bf16.mxu1 %v17122_v25 }
 0x606   : > { %11133 = vmatmul.mubr.f32.vlgmr.msra.gmra.mrb[2].mxu1 %v15488_v7 }
 0x607   : > { %12963 = vmatpush3.bf16.msra.mxu1 %v15504_v37  ;;  %11155 = vmatprep.mubr.msk.f32.mxu1 %vm14486_vm4, %v17054_v18 }
 0x608   : > { %12964 = vmatprep.subr.bf16.mxu1 %v17122_v25 }
 0x60b   : > { %12966 = vmatpush3.bf16.msra.mxu1 %v15463_v9 }
 0x60c   : > { %12967 = vmatprep.subr.bf16.mxu1 %v17122_v25 }
 0x60f   : > { %12969 = vmatpush3.bf16.msra.mxu1 %v15465_v11 }
 0x610   : > { %12970 = vmatprep.subr.bf16.mxu1 %v17122_v25 }
 0x613   : > { %12972 = vmatpush3.bf16.msra.mxu1 %v15467_v12 }
 0x614   : > { %12973 = vmatprep.subr.bf16.mxu1 %v17122_v25 }
 0x617   : > { %12975 = vmatpush3.bf16.msra.mxu1 %v15469_v13 }
 0x618   : > { %12976 = vmatprep.subr.bf16.mxu1 %v17122_v25 }
 0x61a   : > { %11156 = vmatmul.mubr.f32.vlgmr.msra.gmra.mrb[2].mxu1 %v2351_v30 }
 0x61b   : > { %12978 = vmatpush3.bf16.msra.mxu1 %v15431_v10  ;;  %11178 = vmatprep.mubr.msk.f32.mxu1 %vm14486_vm4, %v17054_v18 }
 0x61c   : > { %12979 = vmatprep.subr.bf16.mxu1 %v17122_v25 }
 0x61f   : > { %12981 = vmatpush3.bf16.msra.mxu1 %v15439_v19 }
 0x620   : > { %12982 = vmatprep.subr.bf16.mxu1 %v17122_v25 }
 0x623   : > { %12984 = vmatpush3.bf16.msra.mxu1 %v15443_v46 }
 0x624   : > { %12985 = vmatprep.subr.bf16.mxu1 %v17122_v25 }
 0x627   : > { %12987 = vmatpush3.bf16.msra.mxu1 %v15447_v39 }
 0x628   : > { %12988 = vmatprep.subr.bf16.mxu1 %v17122_v25 }
 0x62b   : > { %12990 = vmatpush3.bf16.msra.mxu1 %v15451_v53 }
 0x62c   : > { %12991 = vmatprep.subr.bf16.mxu1 %v17122_v25 }
 0x62e   : > { %11179 = vmatmul.mubr.f32.vlgmr.msra.gmra.mrb[2].mxu1 %v2352_v17 }
 0x62f   : > { %12993 = vmatpush3.bf16.msra.mxu1 %v15477_v45  ;;  %11201 = vmatprep.mubr.msk.f32.mxu1 %vm14486_vm4, %v17054_v18 }
 0x630   : > { %12994 = vmatprep.subr.bf16.mxu1 %v17122_v25 }
 0x633   : > { %12996 = vmatpush3.bf16.msra.mxu1 %v15479_v62 }
 0x634   : > { %12997 = vmatprep.subr.bf16.mxu1 %v17122_v25 }
 0x637   : > { %12999 = vmatpush3.bf16.msra.mxu1 %v15481_v6 }
 0x638   : > { %13000 = vmatprep.subr.bf16.mxu1 %v17122_v25 }
 0x63b   : > { %13002 = vmatpush3.bf16.msra.mxu1 %v15483_v21 }
 0x63c   : > { %13003 = vmatprep.subr.bf16.mxu1 %v17122_v25 }
 0x63f   : > { %13005 = vmatpush3.bf16.msra.mxu1 %v15485_v26 }
 0x640   : > { %13006 = vmatprep.subr.bf16.mxu1 %v17122_v25 }
 0x642   : > { %11202 = vmatmul.mubr.f32.vlgmr.msra.gmra.mrb[2].mxu1 %v15488_v7 }
 0x643   : > { %13008 = vmatpush3.bf16.msra.mxu1 %v15431_v10  ;;  %11224 = vmatprep.mubr.msk.f32.mxu1 %vm14486_vm4, %v17054_v18 }
 0x644   : > { %13009 = vmatprep.subr.bf16.mxu1 %v17122_v25 }
 0x647   : > { %13011 = vmatpush3.bf16.msra.mxu1 %v15439_v19 }
 0x648   : > { %13012 = vmatprep.subr.bf16.mxu1 %v17122_v25 }
 0x64b   : > { %13014 = vmatpush3.bf16.msra.mxu1 %v15443_v46 }
 0x64c   : > { %13015 = vmatprep.subr.bf16.mxu1 %v17122_v25 }
 0x64f   : > { %13017 = vmatpush3.bf16.msra.mxu1 %v15447_v39 }
 0x650   : > { %13018 = vmatprep.subr.bf16.mxu1 %v17122_v25 }
 0x653   : > { %13020 = vmatpush3.bf16.msra.mxu1 %v15451_v53 }
 0x654   : > { %13021 = vmatprep.subr.bf16.mxu1 %v17122_v25 }
 0x656   : > { %11225 = vmatmul.mubr.f32.vlgmr.msra.gmra.mrb[2].mxu1 %v15488_v7 }
 0x657   : > { %11237 = vmatprep.mubr.msk.f32.mxu1 %vm14486_vm4, %v17054_v18 }
 0x729   : > { %v2834_v22 = vpop.f32.mrb[2].mxu1 }
 0x72a   : > { %2843 = vrot.lane.b32.xlu1 %v2834_v22, %s14481_s5  ;;  %v11226_v23 = vpop.f32.mrb[3].mxu1  ;;  %v2839_v55 = vrot.slane %v2834_v22, 4 }
 0x72c   : > { %2846 = vrot.lane.b32.xlu0 %v2839_v55, %s14482_s6 }
 0x72e   : > { %2849 = vrot.lane.b32.xlu1 %v2834_v22, %s14484_s3 }
 0x730   : > { %2852 = vrot.lane.b32.xlu0 %v2839_v55, %s14483_s0 }
 0x732   : > { %2840 = vrot.lane.b32.xlu1 %v2839_v55, %s14479_s17 }
 0x734   : > { %2858 = vrot.lane.b32.xlu0 %v2839_v55, %s17049_s25 }
 0x736   : > { %2855 = vrot.lane.b32.xlu1 %v2834_v22, %s14488_s26 }
 0x738   : > { %2871 = vperm.xlu0 %14119, %v2868_v24  }
 0x73a   : > { %2861 = vrot.lane.b32.xlu1 %v2834_v22, %s17051_s2 }
 0x79c   : > { %v2844_v56 = vpop.permute.xlu1 %2843 }
 0x79e   : > { %v2847_v49 = vpop.permute.xlu0 %2846 }
 0x79f   : > { %v2864_v42 = vsel %vm1755_vm9, %v2844_v56, %v2847_v49 }
 0x7a0   : > { %v2884_v20 = vand.u32 4294901760, %v2864_v42  ;;  %v2850_v48 = vpop.permute.xlu1 %2849 }
 0x7a2   : > { %v2853_v59 = vpop.permute.xlu0 %2852  ;;  %v15572_v50 = vsub.f32 %v2864_v42, %v2884_v20 }
 0x7a3   : > { %v2865_v54 = vsel %vm1755_vm9, %v2850_v48, %v2853_v59 }
 0x7a4   : > { %v2887_v60 = vand.u32 4294901760, %v2865_v54  ;;  %v2841_v61 = vpop.permute.xlu1 %2840  ;;  %v2970_v16 = vand.u32 4294901760, %v15572_v50 }
 0x7a5   : > { %v2863_v1 = vsel %vm1755_vm9, %v2834_v22, %v2841_v61 }
 0x7a6   : > { %v2881_v3 = vand.u32 4294901760, %v2863_v1  ;;  %v15581_v5 = vsub.f32 %v2865_v54, %v2887_v60  ;;  %v2859_v40 = vpop.permute.xlu0 %2858  ;;  %v2971_v15 = vsub.f32 %v15572_v50, %v2970_v16 }
 0x7a8   : > { %v15583_v14 = vpack.c.bf16 %v2884_v20, %v2881_v3  ;;  %v2962_v29 = vsub.f32 %v2863_v1, %v2881_v3  ;;  %v2856_v44 = vpop.permute.xlu1 %2855  ;;  %v2977_v27 = vand.u32 4294901760, %v15581_v5  ;;  %v2972_v22 = vand.u32 4294901760, %v2971_v15 }
 0x7a9   : > { %v2866_v58 = vsel %vm1755_vm9, %v2856_v44, %v2859_v40  ;;  %v3955_v44 = vld [vmem:[%s17163_s8] sm:$0xff] }
 0x7aa   : > { %v2963_v31 = vand.u32 4294901760, %v2962_v29  ;;  %v2890_v34 = vand.u32 4294901760, %v2866_v58  ;;  %13023 = vmatpush3.bf16.msra.mxu1 %v15583_v14  ;;  %v2978_v23 = vsub.f32 %v15581_v5, %v2977_v27  ;;  %v13034_v59 = vpack.c.bf16 %v15572_v50, %v2962_v29 }
 0x7ab   : > { %13024 = vmatprep.subr.bf16.mxu1 %v17122_v25 }
 0x7ac   : > { %v2964_v63 = vsub.f32 %v2962_v29, %v2963_v31  ;;  %v13025_v52 = vpack.c.bf16 %v2890_v34, %v2887_v60  ;;  %v2983_v7 = vsub.f32 %v2866_v58, %v2890_v34  ;;  %v2862_v30 = vpop.permute.xlu1 %2861  ;;  %v2979_v49 = vand.u32 4294901760, %v2978_v23  ;;  %v3956_v58 = vld [vmem:[%s17163_s8 + $0x8] sm:$0xff] }
 0x7ad   : > { %v2878_v32 = vsel %vm1755_vm9, %v2862_v30, 0  ;;  %v13046_v60 = vpack.c.bf16 %v2970_v16, %v2963_v31  ;;  %v3957_v31 = vld [vmem:[%s17163_s8 + $0x10] sm:$0xff]  ;;  %v3976_v34 = vand.u32 4294901760, %v3955_v44  ;;  %v3979_v15 = vand.u32 4294901760, %v3956_v58 }
 0x7ae   : > { %v2965_v33 = vand.u32 4294901760, %v2964_v63  ;;  %v2984_v17 = vand.u32 4294901760, %v2983_v7  ;;  %v2893_v38 = vand.u32 4294901760, %v2878_v32  ;;  %13026 = vmatpush3.bf16.msra.mxu1 %v13025_v52  ;;  %v13037_v54 = vpack.c.bf16 %v2983_v7, %v15581_v5  ;;  %v3959_v63 = vld [vmem:[%s17163_s8 + $0x20] sm:$0xff] }
 0x7af   : > { %11235 = vmatprep.subr.mxu1 %v17054_v18  ;;  %v3988_v30 = vand.u32 4294901760, %v3959_v63 }
 0x7b0   : > { %v2985_v55 = vsub.f32 %v2983_v7, %v2984_v17  ;;  %v2990_v24 = vsub.f32 %v2878_v32, %v2893_v38  ;;  %v13028_v35 = vpack.c.bf16 %v2972_v22, %v2965_v33  ;;  %v13049_v61 = vpack.c.bf16 %v2984_v17, %v2977_v27  ;;  %v3961_v33 = vld [vmem:[%s17163_s8 + $0x30] sm:$0xff]  ;;  %v3962_v17 = vld [vmem:[%s17163_s8 + $0x38] sm:$0xff] }
 0x7b1   : > { %v3982_v27 = vand.u32 4294901760, %v3957_v31  ;;  %v3985_v7 = vand.u32 4294901760, %v3958_v41  ;;  %v15745_v22 = vsub.f32 %v3956_v58, %v3979_v15 }
 0x7b2   : > { %v2986_v28 = vand.u32 4294901760, %v2985_v55  ;;  %v2991_v56 = vand.u32 4294901760, %v2990_v24  ;;  %11236 = vmatpush3.msra.mxu1 %v2893_v38 }
 0x7b3   : > { %13027 = vmatprep.subr.bf16.mxu1 %v17122_v25  ;;  %11238 = vmatmul.mubr.f32.vlgmr.msra.gmra.mrb[4].mxu1 %v2954_v0  ;;  %v15743_v0 = vsub.f32 %v3955_v44, %v3976_v34  ;;  %v15747_v23 = vsub.f32 %v3957_v31, %v3982_v27  ;;  %v15749_v55 = vsub.f32 %v3958_v41, %v3985_v7  ;;  %v17047_v58 = vand.u32 4294901760, %v15745_v22 }
 0x7b4   : > { %13029 = vmatpush3.bf16.msra.mxu1 %v13028_v35  ;;  %11250 = vmatprep.mubr.msk.f32.mxu1 %vm14486_vm4, %v17054_v18  ;;  %v2992_v42 = vsub.f32 %v2990_v24, %v2991_v56  ;;  %v13031_v20 = vpack.c.bf16 %v2986_v28, %v2979_v49  ;;  %v15754_v28 = vpack.c.bf16 %v3985_v7, %v3982_v27  ;;  %v3994_v35 = vand.u32 4294901760, %v3961_v33 }
 0x7b5   : > { %13030 = vmatprep.subr.bf16.mxu1 %v17122_v25  ;;  %v3997_v49 = vand.u32 4294901760, %v3962_v17  ;;  %v17048_v44 = vand.u32 4294901760, %v15743_v0 }
 0x7b6   : > { %v2993_v48 = vand.u32 4294901760, %v2992_v42  ;;  %v15759_v42 = vsub.f32 %v3961_v33, %v3994_v35  ;;  %v17046_v33 = vand.u32 4294901760, %v15747_v23 }
 0x7b8   : > { %13032 = vmatpush3.bf16.msra.mxu1 %v13031_v20  ;;  %v15761_v20 = vsub.f32 %v3962_v17, %v3997_v49  ;;  %v17042_v17 = vand.u32 4294901760, %v15749_v55 }
 0x7b9   : > { %11248 = vmatprep.subr.mxu1 %v17054_v18 }
 0x7bc   : > { %11249 = vmatpush3.msra.mxu1 %v2993_v48 }
 0x7bd   : > { %13033 = vmatprep.subr.bf16.mxu1 %v17122_v25  ;;  %11251 = vmatmul.mubr.f32.vlgmr.msra.gmra.mrb[4].mxu1 %v15570_v43 }
 0x7be   : > { %13035 = vmatpush3.bf16.msra.mxu1 %v13034_v59  ;;  %11263 = vmatprep.mubr.msk.f32.mxu1 %vm14486_vm4, %v17054_v18 }
 0x7bf   : > { %13036 = vmatprep.subr.bf16.mxu1 %v17122_v25 }
 0x7c2   : > { %13038 = vmatpush3.bf16.msra.mxu1 %v13037_v54 }
 0x7c3   : > { %11261 = vmatprep.subr.mxu1 %v17054_v18 }
 0x7c6   : > { %11262 = vmatpush3.msra.mxu1 %v2990_v24  ;;  %v15751_v24 = vsub.f32 %v3959_v63, %v3988_v30  ;;  %v4067_v63 = vsub.f32 %v15743_v0, %v17048_v44 }
 0x7c7   : > { %13039 = vmatprep.subr.bf16.mxu1 %v17122_v25  ;;  %11264 = vmatmul.mubr.f32.vlgmr.msra.gmra.mrb[4].mxu1 %v15576_v57 }
 0x7c8   : > { %13041 = vmatpush3.bf16.msra.mxu1 %v15583_v14  ;;  %11276 = vmatprep.mubr.msk.f32.mxu1 %vm14486_vm4, %v17054_v18 }
 0x7c9   : > { %13042 = vmatprep.subr.bf16.mxu1 %v17122_v25 }
 0x7cc   : > { %13044 = vmatpush3.bf16.msra.mxu1 %v13025_v52 }
 0x7cd   : > { %11274 = vmatprep.subr.mxu1 %v17054_v18 }
 0x7d0   : > { %11275 = vmatpush3.msra.mxu1 %v2893_v38 }
 0x7d1   : > { %13045 = vmatprep.subr.bf16.mxu1 %v17122_v25  ;;  %11277 = vmatmul.mubr.f32.vlgmr.msra.gmra.mrb[4].mxu1 %v2952_v4 }
 0x7d2   : > { %13047 = vmatpush3.bf16.msra.mxu1 %v13046_v60  ;;  %11289 = vmatprep.mubr.msk.f32.mxu1 %vm14486_vm4, %v17054_v18  ;;  %v15772_v60 = vpack.c.bf16 %v3997_v49, %v3994_v35 }
 0x7d3   : > { %13048 = vmatprep.subr.bf16.mxu1 %v17122_v25 }
 0x7d6   : > { %13050 = vmatpush3.bf16.msra.mxu1 %v13049_v61  ;;  %v3963_v61 = vld [vmem:[%s17163_s8 + $0x40] sm:$0xff] }
 0x7d7   : > { %11287 = vmatprep.subr.mxu1 %v17054_v18 }
 0x7da   : > { %11288 = vmatpush3.msra.mxu1 %v2991_v56 }
 0x7db   : > { %13051 = vmatprep.subr.bf16.mxu1 %v17122_v25  ;;  %11290 = vmatmul.mubr.f32.vlgmr.msra.gmra.mrb[4].mxu1 %v15570_v43 }
 0x7dc   : > { %13053 = vmatpush3.bf16.msra.mxu1 %v15583_v14  ;;  %11302 = vmatprep.mubr.msk.f32.mxu1 %vm14486_vm4, %v17054_v18 }
 0x7dd   : > { %13054 = vmatprep.subr.bf16.mxu1 %v17122_v25 }
 0x7e0   : > { %13056 = vmatpush3.bf16.msra.mxu1 %v13025_v52  ;;  %v3960_v52 = vld [vmem:[%s17163_s8 + $0x28] sm:$0xff] }
 0x7e1   : > { %11300 = vmatprep.subr.mxu1 %v17054_v18  ;;  %v3991_v32 = vand.u32 4294901760, %v3960_v52 }
 0x7e3   : > { %v15756_v56 = vsub.f32 %v3960_v52, %v3991_v32  ;;  %v15764_v48 = vpack.c.bf16 %v3991_v32, %v3988_v30  ;;  %v4074_v52 = vsub.f32 %v15745_v22, %v17047_v58  ;;  %v4068_v30 = vand.u32 4294901760, %v4067_v63 }
 0x7e4   : > { %11301 = vmatpush3.msra.mxu1 %v2893_v38  ;;  %v15741_v38 = vpack.c.bf16 %v3979_v15, %v3976_v34 }
 0x7e5   : > { %11303 = vmatmul.mubr.f32.vlgmr.msra.gmra.mrb[4].mxu1 %v15570_v43  ;;  %13057 = vmatprep.subr.bf16.mxu1 %v17122_v25  ;;  %v2872_v43 = vpop.permute.xlu0 %2871  ;;  %v4075_v32 = vand.u32 4294901760, %v4074_v52  ;;  %v17038_v52 = vand.u32 4294901760, %v15759_v42 }
 0x7e6   : > { %13059 = vmatpush3.bf16.msra.mxu1 %v15431_v10  ;;  %11325 = vmatprep.mubr.msk.f32.mxu1 %vm14486_vm4, %v17054_v18 }
 0x7e7   : > { %13060 = vmatprep.subr.bf16.mxu1 %v17122_v25  ;;  %v13166_v49 = vpack.c.bf16 %v4075_v32, %v4068_v30  ;;  %v4109_v32 = vsub.f32 %v15759_v42, %v17038_v52 }
 0x7ea   : > { %13062 = vmatpush3.bf16.msra.mxu1 %v15439_v19 }
 0x7eb   : > { %13063 = vmatprep.subr.bf16.mxu1 %v17122_v25 }
 0x7ee   : > { %13065 = vmatpush3.bf16.msra.mxu1 %v15443_v46 }
 0x7ef   : > { %13066 = vmatprep.subr.bf16.mxu1 %v17122_v25 }
 0x7f2   : > { %13068 = vmatpush3.bf16.msra.mxu1 %v15447_v39 }
 0x7f3   : > { %13069 = vmatprep.subr.bf16.mxu1 %v17122_v25 }
 0x7f6   : > { %13071 = vmatpush3.bf16.msra.mxu1 %v15451_v53 }
 0x7f7   : > { %13072 = vmatprep.subr.bf16.mxu1 %v17122_v25 }
 0x8b8   : > { %v3374_v50 = vpop.f32.mrb[4].mxu1 }
 0x8b9   : > { %v13814_v57 = vadd.f32 %v3374_v50, %v2872_v43  ;;  %v11304_v1 = vpop.f32.mrb[5].mxu1  ;;  %v3964_v43 = vld [vmem:[%s17163_s8 + $0x48] sm:$0xff]  ;;  %v4000_v50 = vand.u32 4294901760, %v3963_v61 }
 0x8ba   : > { %v3967_v1 = vld [vmem:[%s17163_s8 + $0x60] sm:$0x7] }
 0x8bb   : > { %v3378_v3 = vmax.f32 %v13814_v57, 0.0  ;;  %v4003_v57 = vand.u32 4294901760, %v3964_v43  ;;  %v15806_v34 = vsub.f32 %v3963_v61, %v4000_v50  ;;  %v4088_v61 = vsub.f32 %v15749_v55, %v17042_v17 }
 0x8bd   : > { %v3380_v16 = vsel %vm2271_vm12, %v3378_v3, 0  ;;  %v15786_v3 = vpack.c.bf16 %v4003_v57, %v4000_v50  ;;  %v15808_v15 = vsub.f32 %v3964_v43, %v4003_v57  ;;  %v4089_v50 = vand.u32 4294901760, %v4088_v61 }
 0x8be   : > { %v15649_v4 = vand.u32 4294901760, %v3380_v16  ;;  %v17039_v57 = vand.u32 4294901760, %v15751_v24  ;;  %v4110_v61 = vand.u32 4294901760, %v4109_v32 }
 0x8c0   : > { %v3458_v5 = vsub.f32 %v3380_v16, %v15649_v4  ;;  %v3965_v16 = vld [vmem:[%s17163_s8 + $0x50] sm:$0xff] }
 0x8c2   : > { %v3459_v14 = vand.u32 4294901760, %v3458_v5 }
 0x8c4   : > { %v3460_v29 = vsub.f32 %v3458_v5, %v3459_v14 }
 0x8c6   : > { %v3461_v40 = vand.u32 4294901760, %v3460_v29 }
 0x8c8   : > { %11326 = vmatmul.mubr.f32.vlgmr.msra.gmra.mrb[6].mxu1 %v3461_v40 }
 0x8c9   : > { %13074 = vmatpush3.bf16.msra.mxu1 %v15491_v51  ;;  %11348 = vmatprep.mubr.msk.f32.mxu1 %vm14486_vm4, %v17054_v18 }
 0x8ca   : > { %13075 = vmatprep.subr.bf16.mxu1 %v17122_v25 }
 0x8cd   : > { %13077 = vmatpush3.bf16.msra.mxu1 %v15455_v36 }
 0x8ce   : > { %13078 = vmatprep.subr.bf16.mxu1 %v17122_v25 }
 0x8d1   : > { %13080 = vmatpush3.bf16.msra.mxu1 %v15457_v47 }
 0x8d2   : > { %13081 = vmatprep.subr.bf16.mxu1 %v17122_v25 }
 0x8d5   : > { %13083 = vmatpush3.bf16.msra.mxu1 %v15459_v2 }
 0x8d6   : > { %13084 = vmatprep.subr.bf16.mxu1 %v17122_v25 }
 0x8d9   : > { %13086 = vmatpush3.bf16.msra.mxu1 %v15461_v8 }
 0x8da   : > { %13087 = vmatprep.subr.bf16.mxu1 %v17122_v25 }
 0x8dc   : > { %11349 = vmatmul.mubr.f32.vlgmr.msra.gmra.mrb[6].mxu1 %v15649_v4 }
 0x8dd   : > { %13089 = vmatpush3.bf16.msra.mxu1 %v15504_v37  ;;  %11371 = vmatprep.mubr.msk.f32.mxu1 %vm14486_vm4, %v17054_v18 }
 0x8de   : > { %13090 = vmatprep.subr.bf16.mxu1 %v17122_v25 }
 0x8e1   : > { %13092 = vmatpush3.bf16.msra.mxu1 %v15463_v9 }
 0x8e2   : > { %13093 = vmatprep.subr.bf16.mxu1 %v17122_v25 }
 0x8e5   : > { %13095 = vmatpush3.bf16.msra.mxu1 %v15465_v11 }
 0x8e6   : > { %13096 = vmatprep.subr.bf16.mxu1 %v17122_v25 }
 0x8e9   : > { %13098 = vmatpush3.bf16.msra.mxu1 %v15467_v12 }
 0x8ea   : > { %13099 = vmatprep.subr.bf16.mxu1 %v17122_v25 }
 0x8ed   : > { %13101 = vmatpush3.bf16.msra.mxu1 %v15469_v13 }
 0x8ee   : > { %13102 = vmatprep.subr.bf16.mxu1 %v17122_v25 }
 0x8f0   : > { %11372 = vmatmul.mubr.f32.vlgmr.msra.gmra.mrb[6].mxu1 %v3458_v5  ;;  %v15795_v5 = vsel %vm1749_vm5, %v3967_v1, 0  ;;  %v17037_v1 = vand.u32 4294901760, %v15756_v56 }
 0x8f1   : > { %13104 = vmatpush3.bf16.msra.mxu1 %v15431_v10  ;;  %11394 = vmatprep.mubr.msk.f32.mxu1 %vm14486_vm4, %v17054_v18  ;;  %v15804_v31 = vand.u32 4294901760, %v15795_v5 }
 0x8f2   : > { %13105 = vmatprep.subr.bf16.mxu1 %v17122_v25 }
 0x8f5   : > { %13107 = vmatpush3.bf16.msra.mxu1 %v15439_v19 }
 0x8f6   : > { %13108 = vmatprep.subr.bf16.mxu1 %v17122_v25 }
 0x8f9   : > { %13110 = vmatpush3.bf16.msra.mxu1 %v15443_v46 }
 0x8fa   : > { %13111 = vmatprep.subr.bf16.mxu1 %v17122_v25 }
 0x8fd   : > { %13113 = vmatpush3.bf16.msra.mxu1 %v15447_v39 }
 0x8fe   : > { %13114 = vmatprep.subr.bf16.mxu1 %v17122_v25 }
 0x901   : > { %13116 = vmatpush3.bf16.msra.mxu1 %v15451_v53 }
 0x902   : > { %13117 = vmatprep.subr.bf16.mxu1 %v17122_v25 }
 0x904   : > { %11395 = vmatmul.mubr.f32.vlgmr.msra.gmra.mrb[6].mxu1 %v3459_v14  ;;  %v4006_v14 = vand.u32 4294901760, %v3965_v16 }
 0x905   : > { %13119 = vmatpush3.bf16.msra.mxu1 %v15477_v45  ;;  %11417 = vmatprep.mubr.msk.f32.mxu1 %vm14486_vm4, %v17054_v18 }
 0x906   : > { %13120 = vmatprep.subr.bf16.mxu1 %v17122_v25  ;;  %v15811_v41 = vsub.f32 %v3965_v16, %v4006_v14 }
 0x909   : > { %13122 = vmatpush3.bf16.msra.mxu1 %v15479_v62 }
 0x90a   : > { %13123 = vmatprep.subr.bf16.mxu1 %v17122_v25 }
 0x90d   : > { %13125 = vmatpush3.bf16.msra.mxu1 %v15481_v6 }
 0x90e   : > { %13126 = vmatprep.subr.bf16.mxu1 %v17122_v25 }
 0x911   : > { %13128 = vmatpush3.bf16.msra.mxu1 %v15483_v21 }
 0x912   : > { %13129 = vmatprep.subr.bf16.mxu1 %v17122_v25 }
 0x915   : > { %13131 = vmatpush3.bf16.msra.mxu1 %v15485_v26 }
 0x916   : > { %13132 = vmatprep.subr.bf16.mxu1 %v17122_v25 }
 0x918   : > { %11418 = vmatmul.mubr.f32.vlgmr.msra.gmra.mrb[6].mxu1 %v15649_v4 }
 0x919   : > { %13134 = vmatpush3.bf16.msra.mxu1 %v15431_v10  ;;  %11440 = vmatprep.mubr.msk.f32.mxu1 %vm14486_vm4, %v17054_v18 }
 0x91a   : > { %13135 = vmatprep.subr.bf16.mxu1 %v17122_v25 }
 0x91d   : > { %13137 = vmatpush3.bf16.msra.mxu1 %v15439_v19 }
 0x91e   : > { %13138 = vmatprep.subr.bf16.mxu1 %v17122_v25 }
 0x921   : > { %13140 = vmatpush3.bf16.msra.mxu1 %v15443_v46 }
 0x922   : > { %13141 = vmatprep.subr.bf16.mxu1 %v17122_v25 }
 0x925   : > { %13143 = vmatpush3.bf16.msra.mxu1 %v15447_v39 }
 0x926   : > { %13144 = vmatprep.subr.bf16.mxu1 %v17122_v25 }
 0x929   : > { %13146 = vmatpush3.bf16.msra.mxu1 %v15451_v53 }
 0x92a   : > { %13147 = vmatprep.subr.bf16.mxu1 %v17122_v25 }
 0x92c   : > { %11441 = vmatmul.mubr.f32.vlgmr.msra.gmra.mrb[6].mxu1 %v15649_v4  ;;  %v3966_v4 = vld [vmem:[%s17163_s8 + $0x58] sm:$0xff] }
 0x92d   : > { %11469 = vmatprep.mubr.msk.f32.mxu1 %vm14486_vm4, %v17054_v18  ;;  %13149 = vmatpush3.bf16.msra.mxu1 %v15741_v38  ;;  %v4009_v29 = vand.u32 4294901760, %v3966_v4 }
 0x92e   : > { %13150 = vmatprep.subr.bf16.mxu1 %v17122_v25 }
 0x92f   : > { %v15799_v40 = vpack.c.bf16 %v4009_v29, %v4006_v14  ;;  %v15813_v27 = vsub.f32 %v3966_v4, %v4009_v29  ;;  %v4095_v4 = vsub.f32 %v15751_v24, %v17039_v57  ;;  %v4102_v14 = vsub.f32 %v15756_v56, %v17037_v1 }
 0x930   : > { %v17043_v57 = vand.u32 4294901760, %v15811_v41 }
 0x931   : > { %13152 = vmatpush3.bf16.msra.mxu1 %v15754_v28  ;;  %v4096_v29 = vand.u32 4294901760, %v4095_v4  ;;  %v4103_v63 = vand.u32 4294901760, %v4102_v14  ;;  %v17045_v4 = vand.u32 4294901760, %v15808_v15  ;;  %v17044_v32 = vand.u32 4294901760, %v15813_v27 }
 0x932   : > { %13153 = vmatprep.subr.bf16.mxu1 %v17122_v25 }
 0x933   : > { %v13172_v30 = vpack.c.bf16 %v4103_v63, %v4096_v29  ;;  %v4130_v29 = vsub.f32 %v15808_v15, %v17045_v4 }
 0x935   : > { %13155 = vmatpush3.bf16.msra.mxu1 %v15764_v48  ;;  %v4131_v52 = vand.u32 4294901760, %v4130_v29  ;;  %v13187_v29 = vpack.c.bf16 %v15749_v55, %v15747_v23 }
 0x936   : > { %13156 = vmatprep.subr.bf16.mxu1 %v17122_v25 }
 0x939   : > { %13158 = vmatpush3.bf16.msra.mxu1 %v15772_v60 }
 0x93a   : > { %13159 = vmatprep.subr.bf16.mxu1 %v17122_v25 }
 0x93d   : > { %13161 = vmatpush3.bf16.msra.mxu1 %v15786_v3 }
 0x93e   : > { %13162 = vmatprep.subr.bf16.mxu1 %v17122_v25 }
 0x941   : > { %13164 = vmatpush3.bf16.msra.mxu1 %v15799_v40 }
 0x942   : > { %11467 = vmatprep.subr.mxu1 %v17054_v18 }
 0x945   : > { %11468 = vmatpush3.msra.mxu1 %v15804_v31 }
 0x946   : > { %13165 = vmatprep.subr.bf16.mxu1 %v17122_v25 }
 0x9ff   : > { %v15766_v59 = vpop.f32.mrb[6].mxu1 }
 0xa00   : > { %3946 = vrot.lane.b32.xlu1 %v15766_v59, %s14479_s17  ;;  %v11442_v54 = vpop.f32.mrb[7].mxu1 }
 0xa01   : > { %v4081_v54 = vsub.f32 %v15747_v23, %v17046_v33 }
 0xa03   : > { %v4082_v43 = vand.u32 4294901760, %v4081_v54 }
 0xa05   : > { %v13169_v16 = vpack.c.bf16 %v4089_v50, %v4082_v43  ;;  %v17041_v50 = vand.u32 4294901760, %v15806_v34 }
 0xa07   : > { %v4123_v1 = vsub.f32 %v15806_v34, %v17041_v50 }
 0xa09   : > { %v4124_v63 = vand.u32 4294901760, %v4123_v1  ;;  %v13184_v1 = vpack.c.bf16 %v15745_v22, %v15743_v0 }
 0xa72   : > { %v3947_v7 = vpop.permute.xlu1 %3946 }
 0xa73   : > { %v3949_v35 = vmax.f32 %v15766_v59, %v3947_v7  ;;  %v17040_v7 = vand.u32 4294901760, %v15761_v20 }
 0xa75   : > { %3951 = vrot.lane.b32.xlu0 %v3949_v35, %s14482_s6  ;;  %v4116_v54 = vsub.f32 %v15761_v20, %v17040_v7  ;;  %v4137_v7 = vsub.f32 %v15811_v41, %v17043_v57  ;;  %v13196_v57 = vpack.c.bf16 %v15808_v15, %v15806_v34 }
 0xa77   : > { %v4117_v43 = vand.u32 4294901760, %v4116_v54  ;;  %v13178_v54 = vpack.c.bf16 %v4131_v52, %v4124_v63  ;;  %v13190_v52 = vpack.c.bf16 %v15756_v56, %v15751_v24  ;;  %v13193_v63 = vpack.c.bf16 %v15761_v20, %v15759_v42 }
 0xa79   : > { %v13175_v14 = vpack.c.bf16 %v4117_v43, %v4110_v61  ;;  %v4144_v61 = vsub.f32 %v15813_v27, %v17044_v32  ;;  %v4138_v43 = vand.u32 4294901760, %v4137_v7  ;;  %v13199_v7 = vpack.c.bf16 %v15813_v27, %v15811_v41 }
 0xa7b   : > { %v4145_v50 = vand.u32 4294901760, %v4144_v61 }
 0xa7d   : > { %v13181_v17 = vpack.c.bf16 %v4145_v50, %v4138_v43 }
 0xae7   : > { %v3952_v50 = vpop.permute.xlu0 %3951 }
 0xae8   : > { %v3954_v61 = vmax.f32 %v3949_v35, %v3952_v50  ;;  %v15887_v35 = vsub.f32 %v15795_v5, %v15804_v31  ;;  %v17164_v5 = vand.u32 4294901760, %v15743_v0  ;;  %v17168_v0 = vand.u32 4294901760, %v15751_v24 }
 0xae9   : > { %v17174_v24 = vand.u32 4294901760, %v15811_v41 }
 0xaea   : > { %v3970_v43 = vsel %vm3968_vm14, %v3954_v61, 0 }
 0xaeb   : > { %v15878_v32 = vand.u32 4294901760, %v3970_v43 }
 0xaed   : > { %v4054_v4 = vsub.f32 %v3970_v43, %v15878_v32 }
 0xaef   : > { %v4055_v33 = vand.u32 4294901760, %v4054_v4 }
 0xaf1   : > { %v4056_v58 = vsub.f32 %v4054_v4, %v4055_v33 }
 0xaf3   : > { %v4057_v44 = vand.u32 4294901760, %v4056_v58  ;;  %v4150_v58 = vand.u32 4294901760, %v15887_v35 }
 0xaf5   : > { %11470 = vmatmul.mubr.f32.vlgmr.msra.gmra.mrb[8].mxu1 %v4057_v44  ;;  %v4151_v44 = vsub.f32 %v15887_v35, %v4150_v58 }
 0xaf6   : > { %13167 = vmatpush3.bf16.msra.mxu1 %v13166_v49  ;;  %11498 = vmatprep.mubr.msk.f32.mxu1 %vm14486_vm4, %v17054_v18 }
 0xaf7   : > { %13168 = vmatprep.subr.bf16.mxu1 %v17122_v25  ;;  %v4152_v49 = vand.u32 4294901760, %v4151_v44 }
 0xafa   : > { %13170 = vmatpush3.bf16.msra.mxu1 %v13169_v16  ;;  %v17166_v16 = vand.u32 4294901760, %v15747_v23  ;;  %v17171_v23 = vand.u32 4294901760, %v15761_v20  ;;  %v4607_v20 = vld [vmem:[#allocation15] sm:$0xff] }
 0xafb   : > { %13171 = vmatprep.subr.bf16.mxu1 %v17122_v25 }
 0xafe   : > { %13173 = vmatpush3.bf16.msra.mxu1 %v13172_v30  ;;  %v17167_v30 = vand.u32 4294901760, %v15749_v55 }
 0xaff   : > { %13174 = vmatprep.subr.bf16.mxu1 %v17122_v25 }
 0xb02   : > { %13176 = vmatpush3.bf16.msra.mxu1 %v13175_v14 }
 0xb03   : > { %13177 = vmatprep.subr.bf16.mxu1 %v17122_v25 }
 0xb06   : > { %13179 = vmatpush3.bf16.msra.mxu1 %v13178_v54  ;;  %v17172_v54 = vand.u32 4294901760, %v15806_v34  ;;  %v4606_v34 = vld [vmem:[#allocation13] sm:$0xff] }
 0xb07   : > { %13180 = vmatprep.subr.bf16.mxu1 %v17122_v25 }
 0xb0a   : > { %13182 = vmatpush3.bf16.msra.mxu1 %v13181_v17  ;;  %v17165_v17 = vand.u32 4294901760, %v15745_v22  ;;  %v17169_v22 = vand.u32 4294901760, %v15756_v56  ;;  %v17175_v56 = vand.u32 4294901760, %v15813_v27 }
 0xb0b   : > { %11496 = vmatprep.subr.mxu1 %v17054_v18 }
 0xb0c   : > { %v13226_v14 = vpack.c.bf16 %v17169_v22, %v17168_v0 }
 0xb0e   : > { %11497 = vmatpush3.msra.mxu1 %v4152_v49 }
 0xb0f   : > { %11499 = vmatmul.mubr.f32.vlgmr.msra.gmra.mrb[8].mxu1 %v15878_v32  ;;  %13183 = vmatprep.subr.bf16.mxu1 %v17122_v25 }
 0xb10   : > { %13185 = vmatpush3.bf16.msra.mxu1 %v13184_v1  ;;  %11527 = vmatprep.mubr.msk.f32.mxu1 %vm14486_vm4, %v17054_v18  ;;  %v17173_v1 = vand.u32 4294901760, %v15808_v15 }
 0xb11   : > { %13186 = vmatprep.subr.bf16.mxu1 %v17122_v25 }
 0xb14   : > { %13188 = vmatpush3.bf16.msra.mxu1 %v13187_v29  ;;  %v13232_v29 = vpack.c.bf16 %v17173_v1, %v17172_v54 }
 0xb15   : > { %13189 = vmatprep.subr.bf16.mxu1 %v17122_v25 }
 0xb18   : > { %13191 = vmatpush3.bf16.msra.mxu1 %v13190_v52  ;;  %v13235_v52 = vpack.c.bf16 %v17175_v56, %v17174_v24 }
 0xb19   : > { %13192 = vmatprep.subr.bf16.mxu1 %v17122_v25 }
 0xb1c   : > { %13194 = vmatpush3.bf16.msra.mxu1 %v13193_v63 }
 0xb1d   : > { %13195 = vmatprep.subr.bf16.mxu1 %v17122_v25 }
 0xb20   : > { %13197 = vmatpush3.bf16.msra.mxu1 %v13196_v57  ;;  %v13220_v57 = vpack.c.bf16 %v17165_v17, %v17164_v5 }
 0xb21   : > { %13198 = vmatprep.subr.bf16.mxu1 %v17122_v25 }
 0xb24   : > { %13200 = vmatpush3.bf16.msra.mxu1 %v13199_v7  ;;  %v4614_v7 = vsel %vm2874_vm13, %v4606_v34, 0 }
 0xb25   : > { %11525 = vmatprep.subr.mxu1 %v17054_v18  ;;  %v15995_v44 = vand.u32 4294901760, %v4614_v7 }
 0xb28   : > { %11526 = vmatpush3.msra.mxu1 %v15887_v35 }
 0xb29   : > { %11528 = vmatmul.mubr.f32.vlgmr.msra.gmra.mrb[8].mxu1 %v4054_v4  ;;  %13201 = vmatprep.subr.bf16.mxu1 %v17122_v25  ;;  %v13223_v4 = vpack.c.bf16 %v17167_v30, %v17166_v16  ;;  %v4689_v30 = vsub.f32 %v4614_v7, %v15995_v44 }
 0xb2a   : > { %13203 = vmatpush3.bf16.msra.mxu1 %v15741_v38  ;;  %11556 = vmatprep.mubr.msk.f32.mxu1 %vm14486_vm4, %v17054_v18 }
 0xb2b   : > { %13204 = vmatprep.subr.bf16.mxu1 %v17122_v25 }
 0xb2e   : > { %13206 = vmatpush3.bf16.msra.mxu1 %v15754_v28 }
 0xb2f   : > { %13207 = vmatprep.subr.bf16.mxu1 %v17122_v25 }
 0xb32   : > { %13209 = vmatpush3.bf16.msra.mxu1 %v15764_v48 }
 0xb33   : > { %13210 = vmatprep.subr.bf16.mxu1 %v17122_v25 }
 0xb36   : > { %13212 = vmatpush3.bf16.msra.mxu1 %v15772_v60 }
 0xb37   : > { %13213 = vmatprep.subr.bf16.mxu1 %v17122_v25 }
 0xb3a   : > { %13215 = vmatpush3.bf16.msra.mxu1 %v15786_v3 }
 0xb3b   : > { %13216 = vmatprep.subr.bf16.mxu1 %v17122_v25 }
 0xb3e   : > { %13218 = vmatpush3.bf16.msra.mxu1 %v15799_v40 }
 0xb3f   : > { %11554 = vmatprep.subr.mxu1 %v17054_v18 }
 0xb42   : > { %11555 = vmatpush3.msra.mxu1 %v15804_v31 }
 0xb43   : > { %11557 = vmatmul.mubr.f32.vlgmr.msra.gmra.mrb[8].mxu1 %v4055_v33  ;;  %13219 = vmatprep.subr.bf16.mxu1 %v17122_v25  ;;  %v17170_v33 = vand.u32 4294901760, %v15759_v42 }
 0xb44   : > { %13221 = vmatpush3.bf16.msra.mxu1 %v13220_v57  ;;  %11585 = vmatprep.mubr.msk.f32.mxu1 %vm14486_vm4, %v17054_v18 }
 0xb45   : > { %13222 = vmatprep.subr.bf16.mxu1 %v17122_v25  ;;  %v13229_v55 = vpack.c.bf16 %v17171_v23, %v17170_v33  ;;  %v4690_v23 = vand.u32 4294901760, %v4689_v30 }
 0xb47   : > { %v4691_v24 = vsub.f32 %v4689_v30, %v4690_v23 }
 0xb48   : > { %13224 = vmatpush3.bf16.msra.mxu1 %v13223_v4 }
 0xb49   : > { %13225 = vmatprep.subr.bf16.mxu1 %v17122_v25 }
 0xb4c   : > { %13227 = vmatpush3.bf16.msra.mxu1 %v13226_v14 }
 0xb4d   : > { %13228 = vmatprep.subr.bf16.mxu1 %v17122_v25 }
 0xb50   : > { %13230 = vmatpush3.bf16.msra.mxu1 %v13229_v55 }
 0xb51   : > { %13231 = vmatprep.subr.bf16.mxu1 %v17122_v25 }
 0xb54   : > { %13233 = vmatpush3.bf16.msra.mxu1 %v13232_v29 }
 0xb55   : > { %13234 = vmatprep.subr.bf16.mxu1 %v17122_v25 }
 0xb58   : > { %13236 = vmatpush3.bf16.msra.mxu1 %v13235_v52 }
 0xb59   : > { %11583 = vmatprep.subr.mxu1 %v17054_v18 }
 0xb5c   : > { %11584 = vmatpush3.msra.mxu1 %v4150_v58 }
 0xb5d   : > { %11586 = vmatmul.mubr.f32.vlgmr.msra.gmra.mrb[8].mxu1 %v15878_v32  ;;  %13237 = vmatprep.subr.bf16.mxu1 %v17122_v25 }
 0xb5e   : > { %13239 = vmatpush3.bf16.msra.mxu1 %v15741_v38  ;;  %11614 = vmatprep.mubr.msk.f32.mxu1 %vm14486_vm4, %v17054_v18 }
 0xb5f   : > { %13240 = vmatprep.subr.bf16.mxu1 %v17122_v25 }
 0xb62   : > { %13242 = vmatpush3.bf16.msra.mxu1 %v15754_v28 }
 0xb63   : > { %13243 = vmatprep.subr.bf16.mxu1 %v17122_v25 }
 0xb66   : > { %13245 = vmatpush3.bf16.msra.mxu1 %v15764_v48 }
 0xb67   : > { %13246 = vmatprep.subr.bf16.mxu1 %v17122_v25 }
 0xb6a   : > { %13248 = vmatpush3.bf16.msra.mxu1 %v15772_v60 }
 0xb6b   : > { %13249 = vmatprep.subr.bf16.mxu1 %v17122_v25 }
 0xb6e   : > { %13251 = vmatpush3.bf16.msra.mxu1 %v15786_v3 }
 0xb6f   : > { %13252 = vmatprep.subr.bf16.mxu1 %v17122_v25 }
 0xb72   : > { %13254 = vmatpush3.bf16.msra.mxu1 %v15799_v40 }
 0xb73   : > { %11612 = vmatprep.subr.mxu1 %v17054_v18 }
 0xb76   : > { %11613 = vmatpush3.msra.mxu1 %v15804_v31 }
 0xb77   : > { %11615 = vmatmul.mubr.f32.vlgmr.msra.gmra.mrb[8].mxu1 %v15878_v32  ;;  %13255 = vmatprep.subr.bf16.mxu1 %v17122_v25 }
 0xb78   : > { %11627 = vmatprep.mubr.msk.f32.mxu1 %vm14486_vm4, %v17054_v18 }
 0xc4a   : > { %v4573_v38 = vpop.f32.mrb[8].mxu1 }
 0xc4b   : > { %4582 = vrot.lane.b32.xlu0 %v4573_v38, %s14481_s5  ;;  %v11616_v28 = vpop.f32.mrb[9].mxu1  ;;  %v4578_v42 = vrot.slane %v4573_v38, 4 }
 0xc4d   : > { %4579 = vrot.lane.b32.xlu1 %v4578_v42, %s14479_s17 }
 0xc4f   : > { %4588 = vrot.lane.b32.xlu0 %v4573_v38, %s14491_s1 }
 0xc51   : > { %4585 = vrot.lane.b32.xlu1 %v4578_v42, %s14492_s23 }
 0xc53   : > { %4594 = vrot.lane.b32.xlu0 %v4573_v38, %s14483_s0 }
 0xc55   : > { %4591 = vrot.lane.b32.xlu1 %v4578_v42, %s14493_s4 }
 0xc57   : > { %4600 = vrot.lane.b32.xlu0 %v4573_v38, %s14494_s21 }
 0xc59   : > { %4597 = vrot.lane.b32.xlu1 %v4578_v42, %s14495_s18 }
 0xc5d   : > { %4610 = vperm.xlu1 %14120, %v4607_v20  }
 0xcbd   : > { %v4583_v48 = vpop.permute.xlu0 %4582 }
 0xcbf   : > { %v4580_v60 = vpop.permute.xlu1 %4579 }
 0xcc0   : > { %v4602_v3 = vsel %vm1755_vm9, %v4573_v38, %v4580_v60 }
 0xcc1   : > { %v4619_v40 = vand.u32 4294901760, %v4602_v3  ;;  %v4589_v31 = vpop.permute.xlu0 %4588 }
 0xcc3   : > { %v15985_v15 = vsub.f32 %v4602_v3, %v4619_v40  ;;  %v4586_v41 = vpop.permute.xlu1 %4585 }
 0xcc4   : > { %v4603_v27 = vsel %vm1755_vm9, %v4583_v48, %v4586_v41  ;;  %v4692_v48 = vand.u32 4294901760, %v4691_v24 }
 0xcc5   : > { %v4622_v32 = vand.u32 4294901760, %v4603_v27  ;;  %v4595_v63 = vpop.permute.xlu0 %4594  ;;  %v4701_v50 = vand.u32 4294901760, %v15985_v15 }
 0xcc7   : > { %v15990_v61 = vpack.c.bf16 %v4622_v32, %v4619_v40  ;;  %v15992_v43 = vsub.f32 %v4603_v27, %v4622_v32  ;;  %v4592_v35 = vpop.permute.xlu1 %4591  ;;  %v4702_v57 = vsub.f32 %v15985_v15, %v4701_v50 }
 0xcc8   : > { %v4604_v58 = vsel %vm1755_vm9, %v4589_v31, %v4592_v35 }
 0xcc9   : > { %v4708_v49 = vand.u32 4294901760, %v15992_v43  ;;  %v4625_v5 = vand.u32 4294901760, %v4604_v58  ;;  %v4601_v17 = vpop.permute.xlu0 %4600  ;;  %13257 = vmatpush3.bf16.msra.mxu1 %v15990_v61  ;;  %v4703_v29 = vand.u32 4294901760, %v4702_v57  ;;  %v13268_v32 = vpack.c.bf16 %v15992_v43, %v15985_v15  ;;  %v5117_v15 = vld [vmem:[%s17176_s12] sm:$0xff] }
 0xcca   : > { %v4616_v16 = vsel %vm1755_vm9, %v4601_v17, 0  ;;  %13258 = vmatprep.subr.bf16.mxu1 %v17122_v25 }
 0xccb   : > { %v4709_v4 = vsub.f32 %v15992_v43, %v4708_v49  ;;  %v4714_v0 = vsub.f32 %v4604_v58, %v4625_v5  ;;  %v16006_v22 = vand.u32 4294901760, %v4616_v16  ;;  %v4598_v14 = vpop.permute.xlu1 %4597  ;;  %v13280_v7 = vpack.c.bf16 %v4708_v49, %v4701_v50  ;;  %v5118_v50 = vld [vmem:[%s17176_s12 + $0x8] sm:$0xff] }
 0xccc   : > { %v4605_v33 = vsel %vm1755_vm9, %v4595_v63, %v4598_v14  ;;  %v5128_v35 = vand.u32 4294901760, %v5118_v50 }
 0xccd   : > { %v4710_v55 = vand.u32 4294901760, %v4709_v4  ;;  %v4715_v54 = vand.u32 4294901760, %v4714_v0  ;;  %v4628_v1 = vand.u32 4294901760, %v4605_v33  ;;  %v4728_v56 = vsub.f32 %v4616_v16, %v16006_v22 }
 0xccf   : > { %v13259_v52 = vpack.c.bf16 %v4628_v1, %v4625_v5  ;;  %v4721_v38 = vsub.f32 %v4605_v33, %v4628_v1  ;;  %v13262_v28 = vpack.c.bf16 %v4710_v55, %v4703_v29  ;;  %v4716_v42 = vsub.f32 %v4714_v0, %v4715_v54 }
 0xcd0   : > { %v4729_v60 = vand.u32 4294901760, %v4728_v56  ;;  %v5211_v5 = vsub.f32 %v5118_v50, %v5128_v35 }
 0xcd1   : > { %v4722_v20 = vand.u32 4294901760, %v4721_v38  ;;  %13260 = vmatpush3.bf16.msra.mxu1 %v13259_v52  ;;  %13263 = vmatpush3.bf16.msra.mxu0 %v13262_v28  ;;  %v4717_v40 = vand.u32 4294901760, %v4716_v42  ;;  %v13271_v63 = vpack.c.bf16 %v4721_v38, %v4714_v0 }
 0xcd2   : > { %11625 = vmatprep.subr.mxu1 %v17054_v18  ;;  %13264 = vmatprep.subr.bf16.mxu0 %v17122_v25  ;;  %v4730_v34 = vsub.f32 %v4728_v56, %v4729_v60  ;;  %v5212_v16 = vand.u32 4294901760, %v5211_v5 }
 0xcd3   : > { %v4723_v3 = vsub.f32 %v4721_v38, %v4722_v20  ;;  %v13283_v43 = vpack.c.bf16 %v4722_v20, %v4715_v54 }
 0xcd4   : > { %v4731_v27 = vand.u32 4294901760, %v4730_v34  ;;  %v5213_v4 = vsub.f32 %v5211_v5, %v5212_v16 }
 0xcd5   : > { %v4724_v31 = vand.u32 4294901760, %v4723_v3  ;;  %11626 = vmatpush3.msra.mxu1 %v16006_v22 }
 0xcd6   : > { %11628 = vmatmul.mubr.f32.vlgmr.msra.gmra.mrb[10].mxu1 %v4692_v48  ;;  %13381 = vmatprep.subr.bf16.mxu1 %v17122_v25 }
 0xcd7   : > { %v13265_v41 = vpack.c.bf16 %v4724_v31, %v4717_v40  ;;  %11881 = vmatprep.mubr.msk.f32.mxu1 %vm14486_vm4, %v17054_v18 }
 0xcd9   : > { %13266 = vmatpush3.bf16.msra.mxu0 %v13265_v41 }
 0xcda   : > { %11638 = vmatprep.subr.mxu0 %v17054_v18 }
 0xcdc   : > { %v4611_v1 = vpop.permute.xlu1 %4610 }
 0xcdd   : > { %11639 = vmatpush3.msra.mxu0 %v4731_v27 }
 0xcde   : > { %13267 = vmatprep.subr.bf16.mxu0 %v17122_v25  ;;  %11641 = vmatmul.mubr.f32.vlgmr.msra.gmra.mrb[2].mxu0 %v15995_v44 }
 0xcdf   : > { %13269 = vmatpush3.bf16.msra.mxu0 %v13268_v32  ;;  %11653 = vmatprep.mubr.msk.f32.mxu0 %vm14486_vm4, %v17054_v18 }
 0xce0   : > { %13270 = vmatprep.subr.bf16.mxu0 %v17122_v25 }
 0xce3   : > { %13272 = vmatpush3.bf16.msra.mxu0 %v13271_v63  ;;  %v5622_v63 = vld [vmem:[%s16982_s13] sm:$0xff] }
 0xce4   : > { %11651 = vmatprep.subr.mxu0 %v17054_v18 }
 0xce7   : > { %11652 = vmatpush3.msra.mxu0 %v4728_v56 }
 0xce8   : > { %13273 = vmatprep.subr.bf16.mxu0 %v17122_v25  ;;  %11654 = vmatmul.mubr.f32.vlgmr.msra.gmra.mrb[2].mxu0 %v4689_v30 }
 0xce9   : > { %13275 = vmatpush3.bf16.msra.mxu0 %v15990_v61  ;;  %11666 = vmatprep.mubr.msk.f32.mxu0 %vm14486_vm4, %v17054_v18 }
 0xcea   : > { %13276 = vmatprep.subr.bf16.mxu0 %v17122_v25 }
 0xced   : > { %13278 = vmatpush3.bf16.msra.mxu0 %v13259_v52 }
 0xcee   : > { %11664 = vmatprep.subr.mxu0 %v17054_v18 }
 0xcf1   : > { %11665 = vmatpush3.msra.mxu0 %v16006_v22 }
 0xcf2   : > { %13279 = vmatprep.subr.bf16.mxu0 %v17122_v25  ;;  %11667 = vmatmul.mubr.f32.vlgmr.msra.gmra.mrb[2].mxu0 %v4690_v23 }
 0xcf3   : > { %13281 = vmatpush3.bf16.msra.mxu0 %v13280_v7  ;;  %11679 = vmatprep.mubr.msk.f32.mxu0 %vm14486_vm4, %v17054_v18  ;;  %v5621_v7 = vld [vmem:[#allocation16] sm:$0xff] }
 0xcf4   : > { %13282 = vmatprep.subr.bf16.mxu0 %v17122_v25  ;;  %v5630_v50 = vsel %vm5628_vm0, %v5621_v7, 0 }
 0xcf7   : > { %13284 = vmatpush3.bf16.msra.mxu0 %v13283_v43 }
 0xcf8   : > { %11677 = vmatprep.subr.mxu0 %v17054_v18 }
 0xcfb   : > { %11678 = vmatpush3.msra.mxu0 %v4729_v60 }
 0xcfc   : > { %13285 = vmatprep.subr.bf16.mxu0 %v17122_v25  ;;  %11680 = vmatmul.mubr.f32.vlgmr.msra.gmra.mrb[2].mxu0 %v15995_v44 }
 0xcfd   : > { %13287 = vmatpush3.bf16.msra.mxu0 %v15990_v61  ;;  %11692 = vmatprep.mubr.msk.f32.mxu0 %vm14486_vm4, %v17054_v18  ;;  %v5125_v61 = vand.u32 4294901760, %v5117_v15 }
 0xcfe   : > { %13288 = vmatprep.subr.bf16.mxu0 %v17122_v25 }
 0xcff   : > { %v13292_v58 = vpack.c.bf16 %v5128_v35, %v5125_v61  ;;  %v5204_v49 = vsub.f32 %v5117_v15, %v5125_v61 }
 0xd01   : > { %13290 = vmatpush3.bf16.msra.mxu0 %v13259_v52  ;;  %v5205_v57 = vand.u32 4294901760, %v5204_v49  ;;  %v13298_v33 = vpack.c.bf16 %v5211_v5, %v5204_v49 }
 0xd02   : > { %11690 = vmatprep.subr.mxu0 %v17054_v18 }
 0xd03   : > { %v5206_v30 = vsub.f32 %v5204_v49, %v5205_v57  ;;  %v13304_v23 = vpack.c.bf16 %v5212_v16, %v5205_v57  ;;  %v16099_v49 = vand.u32 4294901760, %v5630_v50 }
 0xd05   : > { %11691 = vmatpush3.msra.mxu0 %v16006_v22  ;;  %v5207_v0 = vand.u32 4294901760, %v5206_v30  ;;  %v5214_v22 = vand.u32 4294901760, %v5213_v4  ;;  %v16108_v4 = vsub.f32 %v5630_v50, %v16099_v49 }
 0xd06   : > { %11693 = vmatmul.mubr.f32.vlgmr.msra.gmra.mrb[2].mxu0 %v15995_v44  ;;  %13291 = vmatprep.subr.bf16.mxu0 %v17122_v25  ;;  %v5119_v44 = vld [vmem:[%s17176_s12 + $0x10] sm:$0xff] }
 0xd07   : > { %11701 = vmatprep.mubr.msk.f32.mxu0 %vm14486_vm4, %v17054_v18  ;;  %13293 = vmatpush3.bf16.msra.mxu0 %v13292_v58  ;;  %v5131_v17 = vand.u32 4294901760, %v5119_v44  ;;  %v13295_v14 = vpack.c.bf16 %v5214_v22, %v5207_v0 }
 0xd08   : > { %11699 = vmatprep.subr.mxu0 %v17054_v18 }
 0xd09   : > { %v5218_v42 = vsub.f32 %v5119_v44, %v5131_v17 }
 0xd0b   : > { %11700 = vmatpush3.msra.mxu0 %v5131_v17  ;;  %v5219_v60 = vand.u32 4294901760, %v5218_v42 }
 0xd0c   : > { %13294 = vmatprep.subr.bf16.mxu0 %v17122_v25 }
 0xd0d   : > { %v5220_v31 = vsub.f32 %v5218_v42, %v5219_v60 }
 0xd0f   : > { %v5221_v41 = vand.u32 4294901760, %v5220_v31 }
 0xda9   : > { %v4694_v55 = vpop.f32.mrb[10].mxu1 }
 0xdaa   : > { %v11629_v54 = vpop.f32.mrb[11].mxu1  ;;  %v4695_v29 = vadd.f32 %v4694_v55, %v4611_v1  ;;  %v5708_v1 = vand.u32 4294901760, %v16108_v4 }
 0xdd9   : > { %v5112_v24 = vpop.f32.mrb[2].mxu0 }
 0xdda   : > { %v13816_v56 = vadd.f32 %v5112_v24, %v4695_v29  ;;  %v11694_v52 = vpop.f32.mrb[3].mxu0 }
 0xddc   : > { %v5116_v38 = vmax.f32 %v13816_v56, 0.0 }
 0xdde   : > { %v5122_v28 = vsel %vm5120_vm15, %v5116_v38, 0 }
 0xddf   : > { %v5192_v20 = vand.u32 4294901760, %v5122_v28 }
 0xde1   : > { %v5193_v48 = vsub.f32 %v5122_v28, %v5192_v20 }
 0xde3   : > { %v5194_v3 = vand.u32 4294901760, %v5193_v48 }
 0xde5   : > { %v5195_v40 = vsub.f32 %v5193_v48, %v5194_v3 }
 0xde7   : > { %v5196_v34 = vand.u32 4294901760, %v5195_v40 }
 0xde9   : > { %11702 = vmatmul.mubr.f32.vlgmr.msra.gmra.mrb[4].mxu0 %v5196_v34 }
 0xdea   : > { %13296 = vmatpush3.bf16.msra.mxu0 %v13295_v14  ;;  %11710 = vmatprep.mubr.msk.f32.mxu0 %vm14486_vm4, %v17054_v18 }
 0xdeb   : > { %11708 = vmatprep.subr.mxu0 %v17054_v18 }
 0xdee   : > { %11709 = vmatpush3.msra.mxu0 %v5221_v41 }
 0xdef   : > { %13297 = vmatprep.subr.bf16.mxu0 %v17122_v25 }
 0xdf1   : > { %11711 = vmatmul.mubr.f32.vlgmr.msra.gmra.mrb[4].mxu0 %v5192_v20 }
 0xdf2   : > { %13299 = vmatpush3.bf16.msra.mxu0 %v13298_v33  ;;  %11719 = vmatprep.mubr.msk.f32.mxu0 %vm14486_vm4, %v17054_v18 }
 0xdf3   : > { %11717 = vmatprep.subr.mxu0 %v17054_v18 }
 0xdf6   : > { %11718 = vmatpush3.msra.mxu0 %v5218_v42 }
 0xdf7   : > { %13300 = vmatprep.subr.bf16.mxu0 %v17122_v25 }
 0xdf9   : > { %11720 = vmatmul.mubr.f32.vlgmr.msra.gmra.mrb[4].mxu0 %v5193_v48 }
 0xdfa   : > { %13302 = vmatpush3.bf16.msra.mxu0 %v13292_v58  ;;  %11728 = vmatprep.mubr.msk.f32.mxu0 %vm14486_vm4, %v17054_v18 }
 0xdfb   : > { %11726 = vmatprep.subr.mxu0 %v17054_v18 }
 0xdfe   : > { %11727 = vmatpush3.msra.mxu0 %v5131_v17 }
 0xdff   : > { %13303 = vmatprep.subr.bf16.mxu0 %v17122_v25 }
 0xe01   : > { %11729 = vmatmul.mubr.f32.vlgmr.msra.gmra.mrb[4].mxu0 %v5194_v3  ;;  %v5709_v3 = vsub.f32 %v16108_v4, %v5708_v1 }
 0xe02   : > { %13305 = vmatpush3.bf16.msra.mxu0 %v13304_v23  ;;  %11737 = vmatprep.mubr.msk.f32.mxu0 %vm14486_vm4, %v17054_v18 }
 0xe03   : > { %11735 = vmatprep.subr.mxu0 %v17054_v18 }
 0xe06   : > { %11736 = vmatpush3.msra.mxu0 %v5219_v60 }
 0xe07   : > { %13306 = vmatprep.subr.bf16.mxu0 %v17122_v25 }
 0xe09   : > { %11738 = vmatmul.mubr.f32.vlgmr.msra.gmra.mrb[4].mxu0 %v5192_v20 }
 0xe0a   : > { %13308 = vmatpush3.bf16.msra.mxu0 %v13292_v58  ;;  %11746 = vmatprep.mubr.msk.f32.mxu0 %vm14486_vm4, %v17054_v18 }
 0xe0b   : > { %11744 = vmatprep.subr.mxu0 %v17054_v18 }
 0xe0e   : > { %11745 = vmatpush3.msra.mxu0 %v5131_v17 }
 0xe0f   : > { %13309 = vmatprep.subr.bf16.mxu0 %v17122_v25 }
 0xe11   : > { %11747 = vmatmul.mubr.f32.vlgmr.msra.gmra.mrb[4].mxu0 %v5192_v20 }
 0xe12   : > { %11767 = vmatprep.mubr.msk.f32.mxu0 %vm14486_vm4, %v17054_v18 }
 0xee4   : > { %v5592_v27 = vpop.f32.mrb[4].mxu0 }
 0xee5   : > { %5600 = vrot.lane.b32.xlu1 %v5592_v27, %s14481_s5  ;;  %5597 = vrot.lane.b32.xlu0 %v5592_v27, %s14479_s17  ;;  %v11748_v32 = vpop.f32.mrb[5].mxu0  ;;  %v5633_v61 = vand.u32 4294901760, %v5592_v27 }
 0xee7   : > { %v16105_v30 = vsub.f32 %v5592_v27, %v5633_v61 }
 0xee9   : > { %5606 = vrot.lane.b32.xlu1 %v5592_v27, %s14491_s1  ;;  %5603 = vrot.lane.b32.xlu0 %v5592_v27, %s14492_s23  ;;  %v5719_v29 = vand.u32 4294901760, %v16105_v30  ;;  %s17177_s1 = smov 106   ;;  %s17178_s23 = smov 107  }
 0xeeb   : > { %v5720_v40 = vsub.f32 %v16105_v30, %v5719_v29 }
 0xeed   : > { %5612 = vrot.lane.b32.xlu1 %v5592_v27, %s14483_s0  ;;  %5609 = vrot.lane.b32.xlu0 %v5592_v27, %s14493_s4  ;;  %s17197_s4 = sld [smem:[#allocation49_spill]] }
 0xef1   : > { %5618 = vrot.lane.b32.xlu1 %v5592_v27, %s14494_s21  ;;  %5615 = vrot.lane.b32.xlu0 %v5592_v27, %s14495_s18  ;;  %s17198_s18 = sld [smem:[#allocation47_spill]] }
 0xef5   : > { %5625 = vperm.xlu0 %14119, %v5622_v63  }
 0xf57   : > { %v5601_v43 = vpop.permute.xlu1 %5600  ;;  %v5598_v15 = vpop.permute.xlu0 %5597 }
 0xf58   : > { %v5636_v35 = vand.u32 4294901760, %v5598_v15  ;;  %v5639_v17 = vand.u32 4294901760, %v5601_v43 }
 0xf5a   : > { %v16097_v58 = vpack.c.bf16 %v5636_v35, %v5633_v61  ;;  %v16102_v57 = vsub.f32 %v5598_v15, %v5636_v35  ;;  %v16119_v24 = vsub.f32 %v5601_v43, %v5639_v17  ;;  %v5710_v43 = vand.u32 4294901760, %v5709_v3 }
 0xf5b   : > { %v5607_v5 = vpop.permute.xlu1 %5606  ;;  %v5604_v44 = vpop.permute.xlu0 %5603  ;;  %v5721_v15 = vand.u32 4294901760, %v5720_v40 }
 0xf5c   : > { %13311 = vmatpush3.bf16.msra.mxu0 %v16097_v58  ;;  %v5642_v16 = vand.u32 4294901760, %v5604_v44  ;;  %v5726_v14 = vand.u32 4294901760, %v16102_v57  ;;  %v5645_v33 = vand.u32 4294901760, %v5607_v5  ;;  %v5733_v31 = vand.u32 4294901760, %v16119_v24 }
 0xf5d   : > { %13312 = vmatprep.subr.bf16.mxu0 %v17122_v25 }
 0xf5e   : > { %v16110_v0 = vpack.c.bf16 %v5642_v16, %v5639_v17  ;;  %v16113_v23 = vsub.f32 %v5604_v44, %v5642_v16  ;;  %v5727_v42 = vsub.f32 %v16102_v57, %v5726_v14  ;;  %v16140_v34 = vsub.f32 %v5607_v5, %v5645_v33 }
 0xf5f   : > { %v5610_v22 = vpop.permute.xlu0 %5609  ;;  %v5613_v55 = vpop.permute.xlu1 %5612  ;;  %v5734_v50 = vsub.f32 %v16119_v24, %v5733_v31 }
 0xf60   : > { %v5648_v54 = vand.u32 4294901760, %v5610_v22  ;;  %13314 = vmatpush3.bf16.msra.mxu0 %v16110_v0  ;;  %v5651_v38 = vand.u32 4294901760, %v5613_v55  ;;  %v5740_v20 = vand.u32 4294901760, %v16113_v23  ;;  %v5728_v27 = vand.u32 4294901760, %v5727_v42 }
 0xf61   : > { %13315 = vmatprep.subr.bf16.mxu0 %v17122_v25  ;;  %v5747_v61 = vand.u32 4294901760, %v16140_v34 }
 0xf62   : > { %v16121_v56 = vpack.c.bf16 %v5648_v54, %v5645_v33  ;;  %v16127_v48 = vsub.f32 %v5610_v22, %v5648_v54  ;;  %v5741_v32 = vsub.f32 %v16113_v23, %v5740_v20  ;;  %v16154_v35 = vsub.f32 %v5613_v55, %v5651_v38 }
 0xf63   : > { %v5616_v52 = vpop.permute.xlu0 %5615  ;;  %v5619_v41 = vpop.permute.xlu1 %5618  ;;  %v13322_v22 = vpack.c.bf16 %v5728_v27, %v5721_v15  ;;  %v5735_v33 = vand.u32 4294901760, %v5734_v50  ;;  %v5748_v55 = vsub.f32 %v16140_v34, %v5747_v61 }
 0xf64   : > { %v5654_v28 = vand.u32 4294901760, %v5616_v52  ;;  %13317 = vmatpush3.bf16.msra.mxu0 %v16121_v56  ;;  %v5754_v63 = vand.u32 4294901760, %v16127_v48  ;;  %v16156_v5 = vand.u32 4294901760, %v5619_v41  ;;  %v5742_v44 = vand.u32 4294901760, %v5741_v32 }
 0xf65   : > { %13318 = vmatprep.subr.bf16.mxu0 %v17122_v25  ;;  %v5761_v54 = vand.u32 4294901760, %v16154_v35  ;;  %v5749_v3 = vand.u32 4294901760, %v5748_v55 }
 0xf66   : > { %v16130_v60 = vpack.c.bf16 %v5654_v28, %v5651_v38  ;;  %v16146_v7 = vsub.f32 %v5616_v52, %v5654_v28  ;;  %v5755_v17 = vsub.f32 %v16127_v48, %v5754_v63  ;;  %v5774_v38 = vsub.f32 %v5619_v41, %v16156_v5 }
 0xf67   : > { %v13325_v42 = vpack.c.bf16 %v5742_v44, %v5735_v33  ;;  %v5762_v40 = vsub.f32 %v16154_v35, %v5761_v54  ;;  %v13340_v33 = vpack.c.bf16 %v16127_v48, %v16140_v34 }
 0xf68   : > { %13320 = vmatpush3.bf16.msra.mxu0 %v16130_v60  ;;  %v5768_v16 = vand.u32 4294901760, %v16146_v7  ;;  %v5756_v52 = vand.u32 4294901760, %v5755_v17  ;;  %v5775_v27 = vand.u32 4294901760, %v5774_v38  ;;  %v13334_v17 = vpack.c.bf16 %v16102_v57, %v16105_v30 }
 0xf69   : > { %11765 = vmatprep.subr.mxu0 %v17054_v18  ;;  %v5763_v15 = vand.u32 4294901760, %v5762_v40  ;;  %v13343_v55 = vpack.c.bf16 %v16146_v7, %v16154_v35  ;;  %v13364_v57 = vpack.c.bf16 %v5754_v63, %v5747_v61 }
 0xf6a   : > { %v5769_v28 = vsub.f32 %v16146_v7, %v5768_v16  ;;  %v5776_v41 = vsub.f32 %v5774_v38, %v5775_v27  ;;  %v13367_v30 = vpack.c.bf16 %v5768_v16, %v5761_v54 }
 0xf6c   : > { %11766 = vmatpush3.msra.mxu0 %v16156_v5  ;;  %v5770_v32 = vand.u32 4294901760, %v5769_v28  ;;  %v5777_v44 = vand.u32 4294901760, %v5776_v41 }
 0xf6d   : > { %13321 = vmatprep.subr.bf16.mxu0 %v17122_v25  ;;  %11768 = vmatmul.mubr.f32.vlgmr.msra.gmra.mrb[6].mxu0 %v5710_v43  ;;  %v13328_v43 = vpack.c.bf16 %v5756_v52, %v5749_v3  ;;  %v13358_v52 = vpack.c.bf16 %v5726_v14, %v5719_v29  ;;  %v6185_v29 = vld [vmem:[#allocation4 + $0x10] sm:$0xff] }
 0xf6e   : > { %13323 = vmatpush3.bf16.msra.mxu0 %v13322_v22  ;;  %11788 = vmatprep.mubr.msk.f32.mxu0 %vm14486_vm4, %v17054_v18  ;;  %v13331_v50 = vpack.c.bf16 %v5770_v32, %v5763_v15  ;;  %v13337_v22 = vpack.c.bf16 %v16113_v23, %v16119_v24  ;;  %v6196_v24 = vand.u32 4294901760, %v6185_v29 }
 0xf6f   : > { %13324 = vmatprep.subr.bf16.mxu0 %v17122_v25 }
 0xf70   : > { %v6283_v3 = vsub.f32 %v6185_v29, %v6196_v24 }
 0xf72   : > { %13326 = vmatpush3.bf16.msra.mxu0 %v13325_v42  ;;  %v6284_v32 = vand.u32 4294901760, %v6283_v3 }
 0xf73   : > { %13327 = vmatprep.subr.bf16.mxu0 %v17122_v25 }
 0xf74   : > { %v5626_v35 = vpop.permute.xlu0 %5625  ;;  %v6285_v41 = vsub.f32 %v6283_v3, %v6284_v32 }
 0xf76   : > { %13329 = vmatpush3.bf16.msra.mxu0 %v13328_v43 }
 0xf77   : > { %13330 = vmatprep.subr.bf16.mxu0 %v17122_v25 }
 0xf7a   : > { %13332 = vmatpush3.bf16.msra.mxu0 %v13331_v50 }
 0xf7b   : > { %11786 = vmatprep.subr.mxu0 %v17054_v18 }
 0xf7e   : > { %11787 = vmatpush3.msra.mxu0 %v5777_v44  ;;  %v6286_v44 = vand.u32 4294901760, %v6285_v41 }
 0xf7f   : > { %13333 = vmatprep.subr.bf16.mxu0 %v17122_v25  ;;  %11789 = vmatmul.mubr.f32.vlgmr.msra.gmra.mrb[6].mxu0 %v16099_v49 }
 0xf80   : > { %13335 = vmatpush3.bf16.msra.mxu0 %v13334_v17  ;;  %11809 = vmatprep.mubr.msk.f32.mxu0 %vm14486_vm4, %v17054_v18 }
 0xf81   : > { %13336 = vmatprep.subr.bf16.mxu0 %v17122_v25 }
 0xf84   : > { %13338 = vmatpush3.bf16.msra.mxu0 %v13337_v22 }
 0xf85   : > { %13339 = vmatprep.subr.bf16.mxu0 %v17122_v25 }
 0xf88   : > { %13341 = vmatpush3.bf16.msra.mxu0 %v13340_v33  ;;  %v6687_v33 = vld [vmem:[%s16984_s15] sm:$0xff] }
 0xf89   : > { %13342 = vmatprep.subr.bf16.mxu0 %v17122_v25 }
 0xf8c   : > { %13344 = vmatpush3.bf16.msra.mxu0 %v13343_v55  ;;  %v6686_v55 = vld [vmem:[%s16983_s14] sm:$0xff] }
 0xf8d   : > { %11807 = vmatprep.subr.mxu0 %v17054_v18 }
 0xf90   : > { %11808 = vmatpush3.msra.mxu0 %v5774_v38  ;;  %v13361_v38 = vpack.c.bf16 %v5740_v20, %v5733_v31 }
 0xf91   : > { %13345 = vmatprep.subr.bf16.mxu0 %v17122_v25  ;;  %11810 = vmatmul.mubr.f32.vlgmr.msra.gmra.mrb[6].mxu0 %v16108_v4 }
 0xf92   : > { %13347 = vmatpush3.bf16.msra.mxu0 %v16097_v58  ;;  %11830 = vmatprep.mubr.msk.f32.mxu0 %vm14486_vm4, %v17054_v18 }
 0xf93   : > { %13348 = vmatprep.subr.bf16.mxu0 %v17122_v25 }
 0xf96   : > { %13350 = vmatpush3.bf16.msra.mxu0 %v16110_v0 }
 0xf97   : > { %13351 = vmatprep.subr.bf16.mxu0 %v17122_v25 }
 0xf9a   : > { %13353 = vmatpush3.bf16.msra.mxu0 %v16121_v56 }
 0xf9b   : > { %13354 = vmatprep.subr.bf16.mxu0 %v17122_v25 }
 0xf9e   : > { %13356 = vmatpush3.bf16.msra.mxu0 %v16130_v60 }
 0xf9f   : > { %11828 = vmatprep.subr.mxu0 %v17054_v18 }
 0xfa2   : > { %11829 = vmatpush3.msra.mxu0 %v16156_v5 }
 0xfa3   : > { %13357 = vmatprep.subr.bf16.mxu0 %v17122_v25  ;;  %11831 = vmatmul.mubr.f32.vlgmr.msra.gmra.mrb[6].mxu0 %v5708_v1 }
 0xfa4   : > { %13359 = vmatpush3.bf16.msra.mxu0 %v13358_v52  ;;  %11851 = vmatprep.mubr.msk.f32.mxu0 %vm14486_vm4, %v17054_v18 }
 0xfa5   : > { %13360 = vmatprep.subr.bf16.mxu0 %v17122_v25 }
 0xfa8   : > { %13362 = vmatpush3.bf16.msra.mxu0 %v13361_v38 }
 0xfa9   : > { %13363 = vmatprep.subr.bf16.mxu0 %v17122_v25 }
 0xfac   : > { %13365 = vmatpush3.bf16.msra.mxu0 %v13364_v57  ;;  %v6694_v57 = vsel %vm5628_vm0, %v6686_v55, 0 }
 0xfad   : > { %13366 = vmatprep.subr.bf16.mxu0 %v17122_v25 }
 0xfb0   : > { %13368 = vmatpush3.bf16.msra.mxu0 %v13367_v30 }
 0xfb1   : > { %11849 = vmatprep.subr.mxu0 %v17054_v18 }
 0xfb4   : > { %11850 = vmatpush3.msra.mxu0 %v5775_v27 }
 0xfb5   : > { %13369 = vmatprep.subr.bf16.mxu0 %v17122_v25  ;;  %11852 = vmatmul.mubr.f32.vlgmr.msra.gmra.mrb[6].mxu0 %v16099_v49 }
 0xfb6   : > { %13371 = vmatpush3.bf16.msra.mxu0 %v16097_v58  ;;  %11872 = vmatprep.mubr.msk.f32.mxu0 %vm14486_vm4, %v17054_v18  ;;  %v6183_v58 = vld [vmem:[#allocation4] sm:$0xff] }
 0xfb7   : > { %13372 = vmatprep.subr.bf16.mxu0 %v17122_v25  ;;  %v6190_v4 = vand.u32 4294901760, %v6183_v58 }
 0xfb9   : > { %v6269_v23 = vsub.f32 %v6183_v58, %v6190_v4 }
 0xfba   : > { %13374 = vmatpush3.bf16.msra.mxu0 %v16110_v0 }
 0xfbb   : > { %13375 = vmatprep.subr.bf16.mxu0 %v17122_v25 }
 0xfbe   : > { %13377 = vmatpush3.bf16.msra.mxu0 %v16121_v56  ;;  %v6270_v56 = vand.u32 4294901760, %v6269_v23 }
 0xfbf   : > { %13378 = vmatprep.subr.bf16.mxu0 %v17122_v25 }
 0xfc0   : > { %v6271_v48 = vsub.f32 %v6269_v23, %v6270_v56 }
 0xfc2   : > { %13380 = vmatpush3.bf16.msra.mxu0 %v16130_v60  ;;  %v6272_v31 = vand.u32 4294901760, %v6271_v48 }
 0xfc3   : > { %11870 = vmatprep.subr.mxu0 %v17054_v18 }
 0xfc6   : > { %11871 = vmatpush3.msra.mxu0 %v16156_v5 }
 0xfc7   : > { %11873 = vmatmul.mubr.f32.vlgmr.msra.gmra.mrb[6].mxu0 %v16099_v49  ;;  %13471 = vmatprep.subr.bf16.mxu0 %v17122_v25  ;;  %v6184_v49 = vld [vmem:[#allocation4 + $0x8] sm:$0xff] }
 0xfc8   : > { %13473 = vmatpush3.bf16.msra.mxu0 %v15431_v10  ;;  %12075 = vmatprep.mubr.msk.f32.mxu0 %vm14486_vm4, %v17054_v18  ;;  %v6193_v0 = vand.u32 4294901760, %v6184_v49 }
 0xfc9   : > { %13474 = vmatprep.subr.bf16.mxu0 %v17122_v25 }
 0xfca   : > { %v13382_v14 = vpack.c.bf16 %v6193_v0, %v6190_v4  ;;  %v6276_v1 = vsub.f32 %v6184_v49, %v6193_v0  ;;  %v16304_v4 = vand.u32 4294901760, %v6694_v57 }
 0xfcc   : > { %13476 = vmatpush3.bf16.msra.mxu0 %v15439_v19  ;;  %13383 = vmatpush3.bf16.msra.mxu1 %v13382_v14  ;;  %v6277_v20 = vand.u32 4294901760, %v6276_v1  ;;  %v13388_v7 = vpack.c.bf16 %v6276_v1, %v6269_v23 }
 0xfcd   : > { %13477 = vmatprep.subr.bf16.mxu0 %v17122_v25  ;;  %11879 = vmatprep.subr.mxu1 %v17054_v18 }
 0xfce   : > { %v6278_v60 = vsub.f32 %v6276_v1, %v6277_v20  ;;  %v13394_v61 = vpack.c.bf16 %v6277_v20, %v6270_v56  ;;  %v16313_v56 = vsub.f32 %v6694_v57, %v16304_v4 }
 0xfd0   : > { %13479 = vmatpush3.bf16.msra.mxu0 %v15443_v46  ;;  %11880 = vmatpush3.msra.mxu1 %v6196_v24  ;;  %v6279_v34 = vand.u32 4294901760, %v6278_v60 }
 0xfd1   : > { %13480 = vmatprep.subr.bf16.mxu0 %v17122_v25  ;;  %13384 = vmatprep.subr.bf16.mxu1 %v17122_v25 }
 0xfd2   : > { %v13385_v63 = vpack.c.bf16 %v6279_v34, %v6272_v31 }
 0xfd4   : > { %13482 = vmatpush3.bf16.msra.mxu0 %v15447_v39 }
 0xfd5   : > { %13483 = vmatprep.subr.bf16.mxu0 %v17122_v25 }
 0xfd8   : > { %13485 = vmatpush3.bf16.msra.mxu0 %v15451_v53 }
 0xfd9   : > { %13486 = vmatprep.subr.bf16.mxu0 %v17122_v25 }
0x109a   : > { %v6178_v5 = vpop.f32.mrb[6].mxu0 }
0x109b   : > { %v13817_v16 = vadd.f32 %v6178_v5, %v5626_v35  ;;  %v11874_v54 = vpop.f32.mrb[7].mxu0 }
0x109d   : > { %v6182_v28 = vmax.f32 %v13817_v16, 0.0 }
0x109f   : > { %v6187_v42 = vsel %vm5120_vm15, %v6182_v28, 0 }
0x10a0   : > { %v6257_v40 = vand.u32 4294901760, %v6187_v42 }
0x10a2   : > { %v6258_v27 = vsub.f32 %v6187_v42, %v6257_v40 }
0x10a4   : > { %v6259_v43 = vand.u32 4294901760, %v6258_v27 }
0x10a6   : > { %v6260_v15 = vsub.f32 %v6258_v27, %v6259_v43 }
0x10a8   : > { %v6261_v50 = vand.u32 4294901760, %v6260_v15 }
0x10aa   : > { %11882 = vmatmul.mubr.f32.vlgmr.msra.gmra.mrb[12].mxu1 %v6261_v50 }
0x10ab   : > { %13386 = vmatpush3.bf16.msra.mxu1 %v13385_v63  ;;  %11890 = vmatprep.mubr.msk.f32.mxu1 %vm14486_vm4, %v17054_v18 }
0x10ac   : > { %11888 = vmatprep.subr.mxu1 %v17054_v18 }
0x10af   : > { %11889 = vmatpush3.msra.mxu1 %v6286_v44 }
0x10b0   : > { %13387 = vmatprep.subr.bf16.mxu1 %v17122_v25 }
0x10b2   : > { %11891 = vmatmul.mubr.f32.vlgmr.msra.gmra.mrb[12].mxu1 %v6257_v40 }
0x10b3   : > { %13389 = vmatpush3.bf16.msra.mxu1 %v13388_v7  ;;  %11899 = vmatprep.mubr.msk.f32.mxu1 %vm14486_vm4, %v17054_v18 }
0x10b4   : > { %11897 = vmatprep.subr.mxu1 %v17054_v18 }
0x10b7   : > { %11898 = vmatpush3.msra.mxu1 %v6283_v3 }
0x10b8   : > { %13390 = vmatprep.subr.bf16.mxu1 %v17122_v25 }
0x10ba   : > { %11900 = vmatmul.mubr.f32.vlgmr.msra.gmra.mrb[12].mxu1 %v6258_v27 }
0x10bb   : > { %13392 = vmatpush3.bf16.msra.mxu1 %v13382_v14  ;;  %11908 = vmatprep.mubr.msk.f32.mxu1 %vm14486_vm4, %v17054_v18 }
0x10bc   : > { %11906 = vmatprep.subr.mxu1 %v17054_v18 }
0x10bf   : > { %11907 = vmatpush3.msra.mxu1 %v6196_v24 }
0x10c0   : > { %13393 = vmatprep.subr.bf16.mxu1 %v17122_v25 }
0x10c2   : > { %11909 = vmatmul.mubr.f32.vlgmr.msra.gmra.mrb[12].mxu1 %v6259_v43 }
0x10c3   : > { %13395 = vmatpush3.bf16.msra.mxu1 %v13394_v61  ;;  %11917 = vmatprep.mubr.msk.f32.mxu1 %vm14486_vm4, %v17054_v18  ;;  %v6772_v61 = vand.u32 4294901760, %v16313_v56 }
0x10c4   : > { %11915 = vmatprep.subr.mxu1 %v17054_v18 }
0x10c5   : > { %v6773_v43 = vsub.f32 %v16313_v56, %v6772_v61 }
0x10c7   : > { %11916 = vmatpush3.msra.mxu1 %v6284_v32 }
0x10c8   : > { %13396 = vmatprep.subr.bf16.mxu1 %v17122_v25 }
0x10ca   : > { %11918 = vmatmul.mubr.f32.vlgmr.msra.gmra.mrb[12].mxu1 %v6257_v40 }
0x10cb   : > { %13398 = vmatpush3.bf16.msra.mxu1 %v13382_v14  ;;  %11926 = vmatprep.mubr.msk.f32.mxu1 %vm14486_vm4, %v17054_v18 }
0x10cc   : > { %11924 = vmatprep.subr.mxu1 %v17054_v18 }
0x10cf   : > { %11925 = vmatpush3.msra.mxu1 %v6196_v24 }
0x10d0   : > { %13399 = vmatprep.subr.bf16.mxu1 %v17122_v25 }
0x10d2   : > { %11927 = vmatmul.mubr.f32.vlgmr.msra.gmra.mrb[12].mxu1 %v6257_v40 }
0x10d3   : > { %11947 = vmatprep.mubr.msk.f32.mxu1 %vm14486_vm4, %v17054_v18 }
0x11a5   : > { %v6657_v17 = vpop.f32.mrb[12].mxu1 }
0x11a6   : > { %6665 = vrot.lane.b32.xlu0 %v6657_v17, %s14481_s5  ;;  %6662 = vrot.lane.b32.xlu1 %v6657_v17, %s14479_s17  ;;  %v11928_v22 = vpop.f32.mrb[13].mxu1  ;;  %v6697_v30 = vand.u32 4294901760, %v6657_v17 }
0x11a8   : > { %v16310_v24 = vsub.f32 %v6657_v17, %v6697_v30 }
0x11aa   : > { %6671 = vrot.lane.b32.xlu0 %v6657_v17, %s14484_s3  ;;  %6668 = vrot.lane.b32.xlu1 %v6657_v17, %s14482_s6  ;;  %v6783_v35 = vand.u32 4294901760, %v16310_v24 }
0x11ac   : > { %v6784_v15 = vsub.f32 %v16310_v24, %v6783_v35 }
0x11ae   : > { %6677 = vrot.lane.b32.xlu0 %v6657_v17, %s14488_s26  ;;  %6674 = vrot.lane.b32.xlu1 %v6657_v17, %s14483_s0 }
0x11b2   : > { %6683 = vrot.lane.b32.xlu0 %v6657_v17, %s17177_s1  ;;  %6680 = vrot.lane.b32.xlu1 %v6657_v17, %s17178_s23 }
0x11b6   : > { %6690 = vperm.xlu1 %14120, %v6687_v33  }
0x1218   : > { %v6666_v52 = vpop.permute.xlu0 %6665  ;;  %v6663_v38 = vpop.permute.xlu1 %6662 }
0x1219   : > { %v6700_v58 = vand.u32 4294901760, %v6663_v38  ;;  %v6703_v23 = vand.u32 4294901760, %v6666_v52 }
0x121b   : > { %v16302_v49 = vpack.c.bf16 %v6700_v58, %v6697_v30  ;;  %v16307_v1 = vsub.f32 %v6663_v38, %v6700_v58  ;;  %v16324_v5 = vsub.f32 %v6666_v52, %v6703_v23  ;;  %v6774_v52 = vand.u32 4294901760, %v6773_v43 }
0x121c   : > { %v6672_v0 = vpop.permute.xlu0 %6671  ;;  %v6669_v14 = vpop.permute.xlu1 %6668  ;;  %v6785_v38 = vand.u32 4294901760, %v6784_v15 }
0x121d   : > { %13401 = vmatpush3.bf16.msra.mxu1 %v16302_v49  ;;  %v6706_v29 = vand.u32 4294901760, %v6669_v14  ;;  %v6790_v60 = vand.u32 4294901760, %v16307_v1  ;;  %v6709_v31 = vand.u32 4294901760, %v6672_v0  ;;  %v6797_v41 = vand.u32 4294901760, %v16324_v5 }
0x121e   : > { %13402 = vmatprep.subr.bf16.mxu1 %v17122_v25 }
0x121f   : > { %v16315_v20 = vpack.c.bf16 %v6706_v29, %v6703_v23  ;;  %v16318_v34 = vsub.f32 %v6669_v14, %v6706_v29  ;;  %v6791_v3 = vsub.f32 %v16307_v1, %v6790_v60  ;;  %v16345_v50 = vsub.f32 %v6672_v0, %v6709_v31 }
0x1220   : > { %v6675_v48 = vpop.permute.xlu1 %6674  ;;  %v6678_v63 = vpop.permute.xlu0 %6677  ;;  %v6798_v57 = vsub.f32 %v16324_v5, %v6797_v41 }
0x1221   : > { %v6712_v7 = vand.u32 4294901760, %v6675_v48  ;;  %13404 = vmatpush3.bf16.msra.mxu1 %v16315_v20  ;;  %v6715_v28 = vand.u32 4294901760, %v6678_v63  ;;  %v6804_v40 = vand.u32 4294901760, %v16318_v34  ;;  %v6792_v17 = vand.u32 4294901760, %v6791_v3 }
0x1222   : > { %13405 = vmatprep.subr.bf16.mxu1 %v17122_v25  ;;  %v6811_v30 = vand.u32 4294901760, %v16345_v50 }
0x1223   : > { %v16326_v16 = vpack.c.bf16 %v6712_v7, %v6709_v31  ;;  %v16332_v27 = vsub.f32 %v6675_v48, %v6712_v7  ;;  %v6805_v22 = vsub.f32 %v16318_v34, %v6804_v40  ;;  %v16359_v58 = vsub.f32 %v6678_v63, %v6715_v28 }
0x1224   : > { %v6681_v54 = vpop.permute.xlu1 %6680  ;;  %v6684_v44 = vpop.permute.xlu0 %6683  ;;  %v13412_v48 = vpack.c.bf16 %v6792_v17, %v6785_v38  ;;  %v6799_v31 = vand.u32 4294901760, %v6798_v57  ;;  %v6812_v63 = vsub.f32 %v16345_v50, %v6811_v30 }
0x1225   : > { %v6718_v42 = vand.u32 4294901760, %v6681_v54  ;;  %13407 = vmatpush3.bf16.msra.mxu1 %v16326_v16  ;;  %v6818_v33 = vand.u32 4294901760, %v16332_v27  ;;  %v16361_v0 = vand.u32 4294901760, %v6684_v44  ;;  %v6806_v14 = vand.u32 4294901760, %v6805_v22 }
0x1226   : > { %13408 = vmatprep.subr.bf16.mxu1 %v17122_v25  ;;  %v6825_v7 = vand.u32 4294901760, %v16359_v58  ;;  %v6813_v43 = vand.u32 4294901760, %v6812_v63 }
0x1227   : > { %v16335_v32 = vpack.c.bf16 %v6718_v42, %v6715_v28  ;;  %v16351_v55 = vsub.f32 %v6681_v54, %v6718_v42  ;;  %v6819_v23 = vsub.f32 %v16332_v27, %v6818_v33  ;;  %v6838_v28 = vsub.f32 %v6684_v44, %v16361_v0 }
0x1228   : > { %v13415_v3 = vpack.c.bf16 %v6806_v14, %v6799_v31  ;;  %v6826_v15 = vsub.f32 %v16359_v58, %v6825_v7  ;;  %v13430_v31 = vpack.c.bf16 %v16332_v27, %v16345_v50 }
0x1229   : > { %13410 = vmatpush3.bf16.msra.mxu1 %v16335_v32  ;;  %v6832_v29 = vand.u32 4294901760, %v16351_v55  ;;  %v6820_v54 = vand.u32 4294901760, %v6819_v23  ;;  %v6839_v17 = vand.u32 4294901760, %v6838_v28  ;;  %v13424_v23 = vpack.c.bf16 %v16307_v1, %v16310_v24 }
0x122a   : > { %11945 = vmatprep.subr.mxu1 %v17054_v18  ;;  %v6827_v38 = vand.u32 4294901760, %v6826_v15  ;;  %v13433_v63 = vpack.c.bf16 %v16351_v55, %v16359_v58  ;;  %v13454_v1 = vpack.c.bf16 %v6818_v33, %v6811_v30 }
0x122b   : > { %v6833_v42 = vsub.f32 %v16351_v55, %v6832_v29  ;;  %v6840_v44 = vsub.f32 %v6838_v28, %v6839_v17  ;;  %v13457_v24 = vpack.c.bf16 %v6832_v29, %v6825_v7 }
0x122d   : > { %11946 = vmatpush3.msra.mxu1 %v16361_v0  ;;  %v6834_v22 = vand.u32 4294901760, %v6833_v42  ;;  %v6841_v14 = vand.u32 4294901760, %v6840_v44 }
0x122e   : > { %13411 = vmatprep.subr.bf16.mxu1 %v17122_v25  ;;  %11948 = vmatmul.mubr.f32.vlgmr.msra.gmra.mrb[14].mxu1 %v6774_v52  ;;  %v13418_v52 = vpack.c.bf16 %v6820_v54, %v6813_v43  ;;  %v13448_v54 = vpack.c.bf16 %v6790_v60, %v6783_v35 }
0x122f   : > { %13413 = vmatpush3.bf16.msra.mxu1 %v13412_v48  ;;  %11968 = vmatprep.mubr.msk.f32.mxu1 %vm14486_vm4, %v17054_v18  ;;  %v13421_v57 = vpack.c.bf16 %v6834_v22, %v6827_v38  ;;  %v13427_v48 = vpack.c.bf16 %v16318_v34, %v16324_v5 }
0x1230   : > { %13414 = vmatprep.subr.bf16.mxu1 %v17122_v25 }
0x1233   : > { %13416 = vmatpush3.bf16.msra.mxu1 %v13415_v3 }
0x1234   : > { %13417 = vmatprep.subr.bf16.mxu1 %v17122_v25 }
0x1237   : > { %13419 = vmatpush3.bf16.msra.mxu1 %v13418_v52 }
0x1238   : > { %13420 = vmatprep.subr.bf16.mxu1 %v17122_v25 }
0x123b   : > { %13422 = vmatpush3.bf16.msra.mxu1 %v13421_v57 }
0x123c   : > { %11966 = vmatprep.subr.mxu1 %v17054_v18 }
0x123f   : > { %11967 = vmatpush3.msra.mxu1 %v6841_v14 }
0x1240   : > { %13423 = vmatprep.subr.bf16.mxu1 %v17122_v25  ;;  %11969 = vmatmul.mubr.f32.vlgmr.msra.gmra.mrb[14].mxu1 %v16304_v4 }
0x1241   : > { %13425 = vmatpush3.bf16.msra.mxu1 %v13424_v23  ;;  %11989 = vmatprep.mubr.msk.f32.mxu1 %vm14486_vm4, %v17054_v18  ;;  %v7871_v23 = vld [vmem:[#allocation18] sm:$0xf] }
0x1242   : > { %13426 = vmatprep.subr.bf16.mxu1 %v17122_v25 }
0x1245   : > { %13428 = vmatpush3.bf16.msra.mxu1 %v13427_v48 }
0x1246   : > { %13429 = vmatprep.subr.bf16.mxu1 %v17122_v25 }
0x1249   : > { %13431 = vmatpush3.bf16.msra.mxu1 %v13430_v31 }
0x124a   : > { %13432 = vmatprep.subr.bf16.mxu1 %v17122_v25 }
0x124d   : > { %13434 = vmatpush3.bf16.msra.mxu1 %v13433_v63 }
0x124e   : > { %11987 = vmatprep.subr.mxu1 %v17054_v18 }
0x1251   : > { %11988 = vmatpush3.msra.mxu1 %v6838_v28  ;;  %v13451_v28 = vpack.c.bf16 %v6804_v40, %v6797_v41 }
0x1252   : > { %13435 = vmatprep.subr.bf16.mxu1 %v17122_v25  ;;  %11990 = vmatmul.mubr.f32.vlgmr.msra.gmra.mrb[14].mxu1 %v16313_v56 }
0x1253   : > { %13437 = vmatpush3.bf16.msra.mxu1 %v16302_v49  ;;  %12010 = vmatprep.mubr.msk.f32.mxu1 %vm14486_vm4, %v17054_v18 }
0x1254   : > { %13438 = vmatprep.subr.bf16.mxu1 %v17122_v25 }
0x1257   : > { %13440 = vmatpush3.bf16.msra.mxu1 %v16315_v20 }
0x1258   : > { %13441 = vmatprep.subr.bf16.mxu1 %v17122_v25 }
0x125b   : > { %13443 = vmatpush3.bf16.msra.mxu1 %v16326_v16 }
0x125c   : > { %13444 = vmatprep.subr.bf16.mxu1 %v17122_v25 }
0x125f   : > { %13446 = vmatpush3.bf16.msra.mxu1 %v16335_v32 }
0x1260   : > { %12008 = vmatprep.subr.mxu1 %v17054_v18 }
0x1263   : > { %12009 = vmatpush3.msra.mxu1 %v16361_v0 }
0x1264   : > { %13447 = vmatprep.subr.bf16.mxu1 %v17122_v25  ;;  %12011 = vmatmul.mubr.f32.vlgmr.msra.gmra.mrb[14].mxu1 %v6772_v61 }
0x1265   : > { %13449 = vmatpush3.bf16.msra.mxu1 %v13448_v54  ;;  %12031 = vmatprep.mubr.msk.f32.mxu1 %vm14486_vm4, %v17054_v18 }
0x1266   : > { %13450 = vmatprep.subr.bf16.mxu1 %v17122_v25 }
0x1269   : > { %13452 = vmatpush3.bf16.msra.mxu1 %v13451_v28 }
0x126a   : > { %13453 = vmatprep.subr.bf16.mxu1 %v17122_v25 }
0x126d   : > { %13455 = vmatpush3.bf16.msra.mxu1 %v13454_v1 }
0x126e   : > { %13456 = vmatprep.subr.bf16.mxu1 %v17122_v25 }
0x1271   : > { %13458 = vmatpush3.bf16.msra.mxu1 %v13457_v24 }
0x1272   : > { %12029 = vmatprep.subr.mxu1 %v17054_v18 }
0x1275   : > { %12030 = vmatpush3.msra.mxu1 %v6839_v17 }
0x1276   : > { %13459 = vmatprep.subr.bf16.mxu1 %v17122_v25  ;;  %12032 = vmatmul.mubr.f32.vlgmr.msra.gmra.mrb[14].mxu1 %v16304_v4 }
0x1277   : > { %13461 = vmatpush3.bf16.msra.mxu1 %v16302_v49  ;;  %12052 = vmatprep.mubr.msk.f32.mxu1 %vm14486_vm4, %v17054_v18  ;;  %v6691_v49 = vpop.permute.xlu1 %6690 }
0x1278   : > { %13462 = vmatprep.subr.bf16.mxu1 %v17122_v25 }
0x127b   : > { %13464 = vmatpush3.bf16.msra.mxu1 %v16315_v20 }
0x127c   : > { %13465 = vmatprep.subr.bf16.mxu1 %v17122_v25 }
0x127f   : > { %13467 = vmatpush3.bf16.msra.mxu1 %v16326_v16 }
0x1280   : > { %13468 = vmatprep.subr.bf16.mxu1 %v17122_v25 }
0x1283   : > { %13470 = vmatpush3.bf16.msra.mxu1 %v16335_v32 }
0x1284   : > { %12050 = vmatprep.subr.mxu1 %v17054_v18 }
0x1287   : > { %12051 = vmatpush3.msra.mxu1 %v16361_v0 }
0x1288   : > { %12053 = vmatmul.mubr.f32.vlgmr.msra.gmra.mrb[14].mxu1 %v16304_v4  ;;  %13561 = vmatprep.subr.bf16.mxu1 %v17122_v25 }
0x1289   : > { %12221 = vmatprep.mubr.msk.f32.mxu1 %vm14486_vm4, %v17054_v18 }
0x135b   : > { %v7242_v56 = vpop.f32.mrb[14].mxu1 }
0x135c   : > { %v13818_v20 = vadd.f32 %v7242_v56, %v6691_v49  ;;  %v12054_v60 = vpop.f32.mrb[15].mxu1 }
0x135e   : > { %v7247_v34 = vsel %vm2271_vm12, %v13818_v20, 0  ;;  %v7880_v20 = vsel %vm7878_vm1, %v7871_v23, 0 }
0x135f   : > { %v16458_v61 = vand.u32 4294901760, %v7247_v34 }
0x1361   : > { %v7325_v35 = vsub.f32 %v7247_v34, %v16458_v61 }
0x1363   : > { %v7326_v5 = vand.u32 4294901760, %v7325_v35 }
0x1365   : > { %v7327_v16 = vsub.f32 %v7325_v35, %v7326_v5 }
0x1367   : > { %v7328_v40 = vand.u32 4294901760, %v7327_v16 }
0x1369   : > { %12076 = vmatmul.mubr.f32.vlgmr.msra.gmra.mrb[8].mxu0 %v7328_v40 }
0x136a   : > { %13488 = vmatpush3.bf16.msra.mxu0 %v15491_v51  ;;  %12098 = vmatprep.mubr.msk.f32.mxu0 %vm14486_vm4, %v17054_v18 }
0x136b   : > { %13489 = vmatprep.subr.bf16.mxu0 %v17122_v25 }
0x136e   : > { %13491 = vmatpush3.bf16.msra.mxu0 %v15455_v36 }
0x136f   : > { %13492 = vmatprep.subr.bf16.mxu0 %v17122_v25 }
0x1372   : > { %13494 = vmatpush3.bf16.msra.mxu0 %v15457_v47 }
0x1373   : > { %13495 = vmatprep.subr.bf16.mxu0 %v17122_v25 }
0x1376   : > { %13497 = vmatpush3.bf16.msra.mxu0 %v15459_v2 }
0x1377   : > { %13498 = vmatprep.subr.bf16.mxu0 %v17122_v25 }
0x137a   : > { %13500 = vmatpush3.bf16.msra.mxu0 %v15461_v8 }
0x137b   : > { %13501 = vmatprep.subr.bf16.mxu0 %v17122_v25 }
0x137d   : > { %12099 = vmatmul.mubr.f32.vlgmr.msra.gmra.mrb[8].mxu0 %v16458_v61 }
0x137e   : > { %13503 = vmatpush3.bf16.msra.mxu0 %v15504_v37  ;;  %12121 = vmatprep.mubr.msk.f32.mxu0 %vm14486_vm4, %v17054_v18 }
0x137f   : > { %13504 = vmatprep.subr.bf16.mxu0 %v17122_v25 }
0x1382   : > { %13506 = vmatpush3.bf16.msra.mxu0 %v15463_v9 }
0x1383   : > { %13507 = vmatprep.subr.bf16.mxu0 %v17122_v25 }
0x1386   : > { %13509 = vmatpush3.bf16.msra.mxu0 %v15465_v11 }
0x1387   : > { %13510 = vmatprep.subr.bf16.mxu0 %v17122_v25 }
0x138a   : > { %13512 = vmatpush3.bf16.msra.mxu0 %v15467_v12 }
0x138b   : > { %13513 = vmatprep.subr.bf16.mxu0 %v17122_v25 }
0x138e   : > { %13515 = vmatpush3.bf16.msra.mxu0 %v15469_v13 }
0x138f   : > { %13516 = vmatprep.subr.bf16.mxu0 %v17122_v25 }
0x1391   : > { %12122 = vmatmul.mubr.f32.vlgmr.msra.gmra.mrb[8].mxu0 %v7325_v35 }
0x1392   : > { %13518 = vmatpush3.bf16.msra.mxu0 %v15431_v10  ;;  %12144 = vmatprep.mubr.msk.f32.mxu0 %vm14486_vm4, %v17054_v18 }
0x1393   : > { %13519 = vmatprep.subr.bf16.mxu0 %v17122_v25 }
0x1396   : > { %13521 = vmatpush3.bf16.msra.mxu0 %v15439_v19 }
0x1397   : > { %13522 = vmatprep.subr.bf16.mxu0 %v17122_v25 }
0x139a   : > { %13524 = vmatpush3.bf16.msra.mxu0 %v15443_v46 }
0x139b   : > { %13525 = vmatprep.subr.bf16.mxu0 %v17122_v25 }
0x139e   : > { %13527 = vmatpush3.bf16.msra.mxu0 %v15447_v39 }
0x139f   : > { %13528 = vmatprep.subr.bf16.mxu0 %v17122_v25 }
0x13a2   : > { %13530 = vmatpush3.bf16.msra.mxu0 %v15451_v53 }
0x13a3   : > { %13531 = vmatprep.subr.bf16.mxu0 %v17122_v25 }
0x13a5   : > { %12145 = vmatmul.mubr.f32.vlgmr.msra.gmra.mrb[8].mxu0 %v7326_v5 }
0x13a6   : > { %13533 = vmatpush3.bf16.msra.mxu0 %v15477_v45  ;;  %12167 = vmatprep.mubr.msk.f32.mxu0 %vm14486_vm4, %v17054_v18 }
0x13a7   : > { %13534 = vmatprep.subr.bf16.mxu0 %v17122_v25 }
0x13aa   : > { %13536 = vmatpush3.bf16.msra.mxu0 %v15479_v62 }
0x13ab   : > { %13537 = vmatprep.subr.bf16.mxu0 %v17122_v25 }
0x13ae   : > { %13539 = vmatpush3.bf16.msra.mxu0 %v15481_v6 }
0x13af   : > { %13540 = vmatprep.subr.bf16.mxu0 %v17122_v25 }
0x13b2   : > { %13542 = vmatpush3.bf16.msra.mxu0 %v15483_v21 }
0x13b3   : > { %13543 = vmatprep.subr.bf16.mxu0 %v17122_v25 }
0x13b6   : > { %13545 = vmatpush3.bf16.msra.mxu0 %v15485_v26 }
0x13b7   : > { %13546 = vmatprep.subr.bf16.mxu0 %v17122_v25 }
0x13b9   : > { %12168 = vmatmul.mubr.f32.vlgmr.msra.gmra.mrb[8].mxu0 %v16458_v61 }
0x13ba   : > { %13548 = vmatpush3.bf16.msra.mxu0 %v15431_v10  ;;  %12190 = vmatprep.mubr.msk.f32.mxu0 %vm14486_vm4, %v17054_v18 }
0x13bb   : > { %13549 = vmatprep.subr.bf16.mxu0 %v17122_v25 }
0x13be   : > { %13551 = vmatpush3.bf16.msra.mxu0 %v15439_v19 }
0x13bf   : > { %13552 = vmatprep.subr.bf16.mxu0 %v17122_v25 }
0x13c2   : > { %13554 = vmatpush3.bf16.msra.mxu0 %v15443_v46 }
0x13c3   : > { %13555 = vmatprep.subr.bf16.mxu0 %v17122_v25 }
0x13c6   : > { %13557 = vmatpush3.bf16.msra.mxu0 %v15447_v39 }
0x13c7   : > { %13558 = vmatprep.subr.bf16.mxu0 %v17122_v25 }
0x13ca   : > { %13560 = vmatpush3.bf16.msra.mxu0 %v15451_v53 }
0x13cb   : > { %13687 = vmatprep.subr.bf16.mxu0 %v17122_v25 }
0x13cd   : > { %12191 = vmatmul.mubr.f32.vlgmr.msra.gmra.mrb[8].mxu0 %v16458_v61 }
0x13ce   : > { %13689 = vmatpush3.bf16.msra.mxu0 %v15431_v10  ;;  %12399 = vmatprep.mubr.msk.f32.mxu0 %vm14486_vm4, %v17054_v18 }
0x13cf   : > { %13690 = vmatprep.subr.bf16.mxu0 %v17122_v25 }
0x13d2   : > { %13692 = vmatpush3.bf16.msra.mxu0 %v15439_v19 }
0x13d3   : > { %13693 = vmatprep.subr.bf16.mxu0 %v17122_v25 }
0x13d6   : > { %13695 = vmatpush3.bf16.msra.mxu0 %v15443_v46 }
0x13d7   : > { %13696 = vmatprep.subr.bf16.mxu0 %v17122_v25 }
0x13da   : > { %13698 = vmatpush3.bf16.msra.mxu0 %v15447_v39  ;;  %v17183_v39 = vmov 0.0  }
0x13db   : > { %13699 = vmatprep.subr.bf16.mxu0 %v17122_v25 }
0x13de   : > { %13701 = vmatpush3.bf16.msra.mxu0 %v15451_v53 }
0x13df   : > { %13702 = vmatprep.subr.bf16.mxu0 %v17122_v25 }
0x14a0   : > { %v7808_v4 = vpop.f32.mrb[8].mxu0 }
0x14a1   : > { %v7813_v27 = vrot.slane %v7808_v4, 4  ;;  %v12192_v32 = vpop.f32.mrb[9].mxu0  ;;  %v16597_v4 = vand.u32 4294901760, %v7880_v20 }
0x14a3   : > { %7828 = vrot.lane.b32.xlu1 %v7813_v27, %s14481_s5  ;;  %v16539_v41 = vsel %vm1755_vm9, %v15766_v59, %v7813_v27  ;;  %v7818_v33 = vrot.slane %v7813_v27, 4  ;;  %v7872_v59 = vld [vmem:[%s17179_s29] sm:$0xf] }
0x14a4   : > { %7826 = vrot.lane.b32.xlu0 %v16539_v41, %s14481_s5  ;;  %v7817_v50 = vrot.slane %v16539_v41, 4  ;;  %v7885_v3 = vand.u32 4294901760, %v16539_v41 }
0x14a6   : > { %v7819_v55 = vsel %vm1755_vm9, %v7817_v50, %v7818_v33 }
0x14a7   : > { %7844 = vrot.lane.b32.xlu1 %v7817_v50, %s14483_s0 }
0x14a8   : > { %7820 = vrot.lane.b32.xlu0 %v7817_v50, %s14479_s17 }
0x14ab   : > { %7822 = vrot.lane.b32.xlu1 %v7819_v55, %s14479_s17 }
0x14ac   : > { %7840 = vrot.lane.b32.xlu0 %v7813_v27, %s14484_s3 }
0x14af   : > { %7834 = vrot.lane.b32.xlu1 %v7819_v55, %s14482_s6 }
0x14b0   : > { %7832 = vrot.lane.b32.xlu0 %v7817_v50, %s14482_s6 }
0x14b3   : > { %7852 = vrot.lane.b32.xlu1 %v7813_v27, %s14488_s26 }
0x14b4   : > { %7838 = vrot.lane.b32.xlu0 %v16539_v41, %s14484_s3 }
0x14b7   : > { %7846 = vrot.lane.b32.xlu1 %v7819_v55, %s14483_s0 }
0x14b8   : > { %7850 = vrot.lane.b32.xlu0 %v16539_v41, %s14488_s26 }
0x14bb   : > { %7858 = vrot.lane.b32.xlu1 %v7819_v55, %s17178_s23 }
0x14bc   : > { %7856 = vrot.lane.b32.xlu0 %v7817_v50, %s17178_s23 }
0x14bf   : > { %7862 = vrot.lane.b32.xlu1 %v16539_v41, %s17177_s1 }
0x14c0   : > { %7864 = vrot.lane.b32.xlu0 %v7813_v27, %s17177_s1 }
0x14c4   : > { %7875 = vperm.xlu0 %14119, %v7872_v59  }
0x1515   : > { %v7829_v30 = vpop.permute.xlu1 %7828 }
0x1516   : > { %v7827_v58 = vpop.permute.xlu0 %7826 }
0x1517   : > { %v7894_v7 = vand.u32 4294901760, %v7827_v58 }
0x1519   : > { %v7845_v0 = vpop.permute.xlu1 %7844  ;;  %v16569_v38 = vsub.f32 %v7827_v58, %v7894_v7 }
0x151a   : > { %v7821_v29 = vpop.permute.xlu0 %7820 }
0x151b   : > { %v7867_v42 = vsel %vm1755_vm9, %v7813_v27, %v7821_v29  ;;  %v17060_v28 = vand.u32 4294901760, %v16569_v38 }
0x151c   : > { %v7888_v43 = vand.u32 4294901760, %v7867_v42 }
0x151d   : > { %v7823_v15 = vpop.permute.xlu1 %7822 }
0x151e   : > { %v16567_v17 = vpack.c.bf16 %v7888_v43, %v7885_v3  ;;  %v7891_v22 = vand.u32 4294901760, %v7823_v15  ;;  %v7841_v52 = vpop.permute.xlu0 %7840  ;;  %v16607_v59 = vsub.f32 %v7867_v42, %v7888_v43 }
0x151f   : > { %v7869_v57 = vsel %vm1755_vm9, %v7841_v52, %v7845_v0  ;;  %v16621_v52 = vsub.f32 %v16539_v41, %v7885_v3 }
0x1520   : > { %v16571_v44 = vsub.f32 %v7823_v15, %v7891_v22  ;;  %13563 = vmatpush3.bf16.msra.mxu1 %v16567_v17  ;;  %v16576_v48 = vpack.c.bf16 %v7894_v7, %v7891_v22  ;;  %v7906_v1 = vand.u32 4294901760, %v7869_v57  ;;  %v16618_v22 = vsub.f32 %v7880_v20, %v16597_v4 }
0x1521   : > { %v7835_v14 = vpop.permute.xlu1 %7834  ;;  %13564 = vmatprep.subr.bf16.mxu1 %v17122_v25 }
0x1522   : > { %v7990_v31 = vand.u32 4294901760, %v16571_v44  ;;  %v7900_v63 = vand.u32 4294901760, %v7835_v14  ;;  %v7833_v54 = vpop.permute.xlu0 %7832  ;;  %v16595_v16 = vsub.f32 %v7869_v57, %v7906_v1 }
0x1523   : > { %v7868_v24 = vsel %vm1755_vm9, %v7829_v30, %v7833_v54 }
0x1524   : > { %v16581_v49 = vsub.f32 %v7835_v14, %v7900_v63  ;;  %v7897_v56 = vand.u32 4294901760, %v7868_v24  ;;  %13566 = vmatpush3.bf16.msra.mxu1 %v16576_v48  ;;  %v16589_v34 = vpack.c.bf16 %v17060_v28, %v7990_v31  ;;  %v17053_v29 = vand.u32 4294901760, %v16595_v16 }
0x1525   : > { %v7853_v60 = vpop.permute.xlu1 %7852  ;;  %13567 = vmatprep.subr.bf16.mxu1 %v17122_v25 }
0x1526   : > { %v16591_v61 = vpack.c.bf16 %v7900_v63, %v7897_v56  ;;  %v16593_v35 = vsub.f32 %v7868_v24, %v7897_v56  ;;  %v7839_v5 = vpop.permute.xlu0 %7838  ;;  %v17056_v27 = vand.u32 4294901760, %v16581_v49  ;;  %v17059_v63 = vand.u32 4294901760, %v16607_v59 }
0x1527   : > { %v7903_v40 = vand.u32 4294901760, %v7839_v5  ;;  %v17058_v56 = vand.u32 4294901760, %v16618_v22 }
0x1528   : > { %v17057_v32 = vand.u32 4294901760, %v16593_v35  ;;  %13569 = vmatpush3.bf16.msra.mxu1 %v16591_v61 }
0x1529   : > { %v16602_v50 = vpack.c.bf16 %v7906_v1, %v7903_v40  ;;  %v16604_v33 = vsub.f32 %v7839_v5, %v7903_v40  ;;  %v7847_v55 = vpop.permute.xlu1 %7846  ;;  %13570 = vmatprep.subr.bf16.mxu1 %v17122_v25  ;;  %v17063_v5 = vand.u32 4294901760, %v16621_v52 }
0x152a   : > { %v7909_v30 = vand.u32 4294901760, %v7847_v55  ;;  %v7851_v58 = vpop.permute.xlu0 %7850  ;;  %v16613_v0 = vpack.c.bf16 %v17056_v27, %v17057_v32 }
0x152b   : > { %v8018_v7 = vand.u32 4294901760, %v16604_v33  ;;  %v7912_v15 = vand.u32 4294901760, %v7851_v58 }
0x152c   : > { %v16623_v42 = vsub.f32 %v7847_v55, %v7909_v30  ;;  %13572 = vmatpush3.bf16.msra.mxu1 %v16602_v50 }
0x152d   : > { %v16626_v43 = vpack.c.bf16 %v7912_v15, %v7909_v30  ;;  %v16628_v57 = vsub.f32 %v7851_v58, %v7912_v15  ;;  %v7859_v14 = vpop.permute.xlu1 %7858  ;;  %13573 = vmatprep.subr.bf16.mxu1 %v17122_v25  ;;  %v16633_v23 = vpack.c.bf16 %v17053_v29, %v8018_v7  ;;  %v7984_v58 = vsub.f32 %v16607_v59, %v17059_v63 }
0x152e   : > { %v8032_v41 = vand.u32 4294901760, %v16623_v42  ;;  %v7918_v3 = vand.u32 4294901760, %v7859_v14  ;;  %v7857_v54 = vpop.permute.xlu0 %7856 }
0x152f   : > { %v8039_v1 = vand.u32 4294901760, %v16628_v57  ;;  %v7870_v24 = vsel %vm1755_vm9, %v7853_v60, %v7857_v54 }
0x1530   : > { %v7915_v20 = vand.u32 4294901760, %v7870_v24  ;;  %13575 = vmatpush3.bf16.msra.mxu1 %v16626_v43  ;;  %v16642_v40 = vsub.f32 %v7859_v14, %v7918_v3  ;;  %v7966_v14 = vsub.f32 %v16618_v22, %v17058_v56  ;;  %v7991_v56 = vsub.f32 %v16571_v44, %v7990_v31 }
0x1531   : > { %v7863_v55 = vpop.permute.xlu1 %7862  ;;  %13576 = vmatprep.subr.bf16.mxu1 %v17122_v25  ;;  %v16645_v30 = vpack.c.bf16 %v8039_v1, %v8032_v41 }
0x1532   : > { %v16650_v15 = vpack.c.bf16 %v7918_v3, %v7915_v20  ;;  %v16652_v60 = vsub.f32 %v7870_v24, %v7915_v20  ;;  %v7865_v54 = vpop.permute.xlu0 %7864  ;;  %v7921_v29 = vand.u32 4294901760, %v7863_v55  ;;  %v7977_v3 = vsub.f32 %v16621_v52, %v17063_v5 }
0x1533   : > { %v7882_v18 = vsel %vm1755_vm9, %v7865_v54, 0  ;;  %v8053_v24 = vand.u32 4294901760, %v16642_v40  ;;  %v7985_v54 = vand.u32 4294901760, %v7984_v58  ;;  %v7967_v26 = vand.u32 4294901760, %v7966_v14 }
0x1534   : > { %v8046_v27 = vand.u32 4294901760, %v16652_v60  ;;  %v7924_v32 = vand.u32 4294901760, %v7882_v18  ;;  %13578 = vmatpush3.bf16.msra.mxu1 %v16650_v15  ;;  %v16664_v20 = vsub.f32 %v7863_v55, %v7921_v29  ;;  %v17180_v5 = vand.u32 4294901760, %v16569_v38 }
0x1535   : > { %13579 = vmatprep.subr.bf16.mxu1 %v17122_v25  ;;  %v7978_v58 = vand.u32 4294901760, %v7977_v3  ;;  %v7992_v31 = vand.u32 4294901760, %v7991_v56  ;;  %v8019_v3 = vsub.f32 %v16604_v33, %v8018_v7 }
0x1536   : > { %v16670_v63 = vpack.c.bf16 %v7924_v32, %v7921_v29  ;;  %v16672_v28 = vsub.f32 %v7882_v18, %v7924_v32  ;;  %v16674_v21 = vpack.c.bf16 %v8053_v24, %v8046_v27  ;;  %v7998_v6 = vsub.f32 %v16569_v38, %v17180_v5 }
0x1537   : > { %v8060_v55 = vand.u32 4294901760, %v16664_v20  ;;  %v17181_v18 = vand.u32 4294901760, %v16593_v35  ;;  %v13583_v29 = vpack.c.bf16 %v7985_v54, %v7978_v58  ;;  %v17182_v5 = vand.u32 4294901760, %v16581_v49 }
0x1538   : > { %v8067_v62 = vand.u32 4294901760, %v16672_v28  ;;  %13581 = vmatpush3.bf16.msra.mxu1 %v16670_v63  ;;  %v7999_v45 = vand.u32 4294901760, %v7998_v6  ;;  %v17184_v54 = vand.u32 4294901760, %v16595_v16  ;;  %v8020_v6 = vand.u32 4294901760, %v8019_v3 }
0x1539   : > { %13582 = vmatprep.subr.bf16.mxu1 %v17122_v25  ;;  %v8005_v32 = vsub.f32 %v16593_v35, %v17181_v18  ;;  %v8012_v53 = vsub.f32 %v16581_v49, %v17182_v5  ;;  %v8033_v18 = vsub.f32 %v16623_v42, %v8032_v41 }
0x153a   : > { %v16686_v14 = vpack.c.bf16 %v8067_v62, %v8060_v55  ;;  %v13586_v46 = vpack.c.bf16 %v7999_v45, %v7992_v31  ;;  %v8026_v58 = vsub.f32 %v16595_v16, %v17184_v54  ;;  %v8047_v31 = vsub.f32 %v16652_v60, %v8046_v27 }
0x153b   : > { %12222 = vmatmul.mubr.f32.vlgmr.msra.gmra.mrb[16].mxu1 %v7967_v26  ;;  %v8006_v56 = vand.u32 4294901760, %v8005_v32  ;;  %v8013_v26 = vand.u32 4294901760, %v8012_v53  ;;  %v8034_v7 = vand.u32 4294901760, %v8033_v18  ;;  %v8054_v53 = vsub.f32 %v16642_v40, %v8053_v24 }
0x153c   : > { %13584 = vmatpush3.bf16.msra.mxu1 %v13583_v29  ;;  %12252 = vmatprep.mubr.msk.f32.mxu1 %vm14486_vm4, %v17183_v39  ;;  %v8040_v29 = vsub.f32 %v16628_v57, %v8039_v1  ;;  %v8027_v19 = vand.u32 4294901760, %v8026_v58  ;;  %v8068_v41 = vsub.f32 %v16672_v28, %v8067_v62  ;;  %v13604_v62 = vpack.c.bf16 %v16607_v59, %v16621_v52 }
0x153d   : > { %13585 = vmatprep.subr.bf16.mxu1 %v17122_v25  ;;  %v13589_v5 = vpack.c.bf16 %v8013_v26, %v8006_v56  ;;  %v8055_v1 = vand.u32 4294901760, %v8054_v53  ;;  %v8061_v56 = vsub.f32 %v16664_v20, %v8060_v55  ;;  %v13607_v27 = vpack.c.bf16 %v16569_v38, %v16571_v44 }
0x153e   : > { %v8041_v45 = vand.u32 4294901760, %v8040_v29  ;;  %v13592_v32 = vpack.c.bf16 %v8027_v19, %v8020_v6  ;;  %v8069_v54 = vand.u32 4294901760, %v8068_v41  ;;  %v13610_v24 = vpack.c.bf16 %v16581_v49, %v16593_v35 }
0x153f   : > { %v8062_v26 = vand.u32 4294901760, %v8061_v56  ;;  %v13613_v55 = vpack.c.bf16 %v16595_v16, %v16604_v33  ;;  %v13616_v6 = vpack.c.bf16 %v16628_v57, %v16623_v42  ;;  %v13619_v38 = vpack.c.bf16 %v16642_v40, %v16652_v60  ;;  %v9607_v42 = vld [vmem:[%s17197_s4] sm:$0x7] }
0x1540   : > { %13587 = vmatpush3.bf16.msra.mxu1 %v13586_v46  ;;  %v8048_v46 = vand.u32 4294901760, %v8047_v31  ;;  %v13595_v3 = vpack.c.bf16 %v8041_v45, %v8034_v7  ;;  %v13622_v44 = vpack.c.bf16 %v16672_v28, %v16664_v20  ;;  %v17185_v28 = vand.u32 4294901760, %v16621_v52 }
0x1541   : > { %13588 = vmatprep.subr.bf16.mxu1 %v17122_v25  ;;  %v13601_v19 = vpack.c.bf16 %v8069_v54, %v8062_v26  ;;  %v17186_v49 = vand.u32 4294901760, %v16607_v59  ;;  %v17187_v16 = vand.u32 4294901760, %v16618_v22 }
0x1542   : > { %v13598_v58 = vpack.c.bf16 %v8055_v1, %v8048_v46 }
0x1543   : > { %v13646_v35 = vpack.c.bf16 %v17186_v49, %v17185_v28 }
0x1544   : > { %13590 = vmatpush3.bf16.msra.mxu1 %v13589_v5 }
0x1545   : > { %13591 = vmatprep.subr.bf16.mxu1 %v17122_v25 }
0x1548   : > { %13593 = vmatpush3.bf16.msra.mxu1 %v13592_v32 }
0x1549   : > { %13594 = vmatprep.subr.bf16.mxu1 %v17122_v25 }
0x154c   : > { %13596 = vmatpush3.bf16.msra.mxu1 %v13595_v3 }
0x154d   : > { %13597 = vmatprep.subr.bf16.mxu1 %v17122_v25 }
0x1550   : > { %13599 = vmatpush3.bf16.msra.mxu1 %v13598_v58 }
0x1551   : > { %13600 = vmatprep.subr.bf16.mxu1 %v17122_v25 }
0x1554   : > { %13602 = vmatpush3.bf16.msra.mxu1 %v13601_v19 }
0x1555   : > { %13603 = vmatprep.subr.bf16.mxu1 %v17122_v25 }
0x1557   : > { %12253 = vmatmul.mubr.f32.vlgmr.msra.gmra.mrb[16].mxu1 %v16597_v4 }
0x1558   : > { %13605 = vmatpush3.bf16.msra.mxu1 %v13604_v62  ;;  %12283 = vmatprep.mubr.msk.f32.mxu1 %vm14486_vm4, %v17183_v39 }
0x1559   : > { %13606 = vmatprep.subr.bf16.mxu1 %v17122_v25 }
0x155c   : > { %13608 = vmatpush3.bf16.msra.mxu1 %v13607_v27 }
0x155d   : > { %13609 = vmatprep.subr.bf16.mxu1 %v17122_v25 }
0x1560   : > { %13611 = vmatpush3.bf16.msra.mxu1 %v13610_v24 }
0x1561   : > { %13612 = vmatprep.subr.bf16.mxu1 %v17122_v25 }
0x1564   : > { %13614 = vmatpush3.bf16.msra.mxu1 %v13613_v55 }
0x1565   : > { %13615 = vmatprep.subr.bf16.mxu1 %v17122_v25 }
0x1568   : > { %13617 = vmatpush3.bf16.msra.mxu1 %v13616_v6 }
0x1569   : > { %13618 = vmatprep.subr.bf16.mxu1 %v17122_v25 }
0x156c   : > { %13620 = vmatpush3.bf16.msra.mxu1 %v13619_v38 }
0x156d   : > { %13621 = vmatprep.subr.bf16.mxu1 %v17122_v25 }
0x1570   : > { %13623 = vmatpush3.bf16.msra.mxu1 %v13622_v44 }
0x1571   : > { %13624 = vmatprep.subr.bf16.mxu1 %v17122_v25 }
0x1573   : > { %12284 = vmatmul.mubr.f32.vlgmr.msra.gmra.mrb[16].mxu1 %v16618_v22 }
0x1574   : > { %13626 = vmatpush3.bf16.msra.mxu1 %v16567_v17  ;;  %12314 = vmatprep.mubr.msk.f32.mxu1 %vm14486_vm4, %v17183_v39 }
0x1575   : > { %13627 = vmatprep.subr.bf16.mxu1 %v17122_v25 }
0x1578   : > { %13629 = vmatpush3.bf16.msra.mxu1 %v16576_v48 }
0x1579   : > { %13630 = vmatprep.subr.bf16.mxu1 %v17122_v25 }
0x157c   : > { %13632 = vmatpush3.bf16.msra.mxu1 %v16591_v61 }
0x157d   : > { %13633 = vmatprep.subr.bf16.mxu1 %v17122_v25 }
0x1580   : > { %13635 = vmatpush3.bf16.msra.mxu1 %v16602_v50 }
0x1581   : > { %13636 = vmatprep.subr.bf16.mxu1 %v17122_v25 }
0x1584   : > { %13638 = vmatpush3.bf16.msra.mxu1 %v16626_v43 }
0x1585   : > { %13639 = vmatprep.subr.bf16.mxu1 %v17122_v25 }
0x1588   : > { %13641 = vmatpush3.bf16.msra.mxu1 %v16650_v15 }
0x1589   : > { %13642 = vmatprep.subr.bf16.mxu1 %v17122_v25 }
0x158c   : > { %13644 = vmatpush3.bf16.msra.mxu1 %v16670_v63 }
0x158d   : > { %13645 = vmatprep.subr.bf16.mxu1 %v17122_v25 }
0x158f   : > { %12315 = vmatmul.mubr.f32.vlgmr.msra.gmra.mrb[16].mxu1 %v17187_v16 }
0x1590   : > { %13647 = vmatpush3.bf16.msra.mxu1 %v13646_v35  ;;  %12345 = vmatprep.mubr.msk.f32.mxu1 %vm14486_vm4, %v17183_v39 }
0x1591   : > { %13648 = vmatprep.subr.bf16.mxu1 %v17122_v25 }
0x1594   : > { %13650 = vmatpush3.bf16.msra.mxu1 %v16589_v34 }
0x1595   : > { %13651 = vmatprep.subr.bf16.mxu1 %v17122_v25 }
0x1598   : > { %13653 = vmatpush3.bf16.msra.mxu1 %v16613_v0 }
0x1599   : > { %13654 = vmatprep.subr.bf16.mxu1 %v17122_v25 }
0x159c   : > { %13656 = vmatpush3.bf16.msra.mxu1 %v16633_v23 }
0x159d   : > { %13657 = vmatprep.subr.bf16.mxu1 %v17122_v25 }
0x15a0   : > { %13659 = vmatpush3.bf16.msra.mxu1 %v16645_v30 }
0x15a1   : > { %13660 = vmatprep.subr.bf16.mxu1 %v17122_v25 }
0x15a4   : > { %13662 = vmatpush3.bf16.msra.mxu1 %v16674_v21  ;;  %v7876_v21 = vpop.permute.xlu0 %7875 }
0x15a5   : > { %13663 = vmatprep.subr.bf16.mxu1 %v17122_v25 }
0x15a8   : > { %13665 = vmatpush3.bf16.msra.mxu1 %v16686_v14 }
0x15a9   : > { %13666 = vmatprep.subr.bf16.mxu1 %v17122_v25 }
0x15ab   : > { %12346 = vmatmul.mubr.f32.vlgmr.msra.gmra.mrb[16].mxu1 %v16597_v4 }
0x15ac   : > { %13668 = vmatpush3.bf16.msra.mxu1 %v16567_v17  ;;  %12376 = vmatprep.mubr.msk.f32.mxu1 %vm14486_vm4, %v17183_v39 }
0x15ad   : > { %13669 = vmatprep.subr.bf16.mxu1 %v17122_v25 }
0x15b0   : > { %13671 = vmatpush3.bf16.msra.mxu1 %v16576_v48 }
0x15b1   : > { %13672 = vmatprep.subr.bf16.mxu1 %v17122_v25 }
0x15b4   : > { %13674 = vmatpush3.bf16.msra.mxu1 %v16591_v61 }
0x15b5   : > { %13675 = vmatprep.subr.bf16.mxu1 %v17122_v25 }
0x15b8   : > { %13677 = vmatpush3.bf16.msra.mxu1 %v16602_v50 }
0x15b9   : > { %13678 = vmatprep.subr.bf16.mxu1 %v17122_v25 }
0x15bc   : > { %13680 = vmatpush3.bf16.msra.mxu1 %v16626_v43  ;;  %v9096_v43 = vld [vmem:[%s17198_s18] sm:$0xf] }
0x15bd   : > { %13681 = vmatprep.subr.bf16.mxu1 %v17122_v25 }
0x15c0   : > { %13683 = vmatpush3.bf16.msra.mxu1 %v16650_v15 }
0x15c1   : > { %13684 = vmatprep.subr.bf16.mxu1 %v17122_v25 }
0x15c4   : > { %13686 = vmatpush3.bf16.msra.mxu1 %v16670_v63 }
0x15c5   : > { %12595 = vmatprep.subr.mxu1 %v17183_v39 }
0x15c7   : > { %12377 = vmatmul.mubr.f32.vlgmr.msra.gmra.mrb[16].mxu1 %v16597_v4 }
0x15c8   : > { %12597 = vmatprep.mubr.msk.f32.mxu1 %vm14486_vm4, %v17183_v39 }
0x169a   : > { %v8495_v17 = vpop.f32.mrb[16].mxu1 }
0x169b   : > { %v13819_v48 = vadd.f32 %v8495_v17, %v7876_v21  ;;  %v12378_v34 = vpop.f32.mrb[17].mxu1 }
0x169d   : > { %v8499_v61 = vmax.f32 %v13819_v48, 0.0 }
0x169f   : > { %v8501_v50 = vsel %vm2271_vm12, %v8499_v61, 0 }
0x16a0   : > { %v16793_v33 = vand.u32 4294901760, %v8501_v50 }
0x16a2   : > { %v8579_v59 = vsub.f32 %v8501_v50, %v16793_v33 }
0x16a4   : > { %v8580_v0 = vand.u32 4294901760, %v8579_v59 }
0x16a6   : > { %v8581_v22 = vsub.f32 %v8579_v59, %v8580_v0 }
0x16a8   : > { %v8582_v52 = vand.u32 4294901760, %v8581_v22 }
0x16aa   : > { %12400 = vmatmul.mubr.f32.vlgmr.msra.gmra.mrb[10].mxu0 %v8582_v52 }
0x16ab   : > { %13704 = vmatpush3.bf16.msra.mxu0 %v15491_v51  ;;  %12422 = vmatprep.mubr.msk.f32.mxu0 %vm14486_vm4, %v17183_v39  ;;  %v17196_v51 = vld [vmem:[#allocation34_spill] sm:$0xff] }
0x16ac   : > { %13705 = vmatprep.subr.bf16.mxu0 %v17122_v25 }
0x16af   : > { %13707 = vmatpush3.bf16.msra.mxu0 %v15455_v36  ;;  %v17188_v36 = vld [vmem:[#allocation26_spill] sm:$0xff] }
0x16b0   : > { %13708 = vmatprep.subr.bf16.mxu0 %v17122_v25 }
0x16b3   : > { %13710 = vmatpush3.bf16.msra.mxu0 %v15457_v47  ;;  %v17189_v47 = vld [vmem:[#allocation27_spill] sm:$0xff] }
0x16b4   : > { %13711 = vmatprep.subr.bf16.mxu0 %v17122_v25 }
0x16b7   : > { %13713 = vmatpush3.bf16.msra.mxu0 %v15459_v2  ;;  %v17190_v2 = vld [vmem:[#allocation28_spill] sm:$0xff] }
0x16b8   : > { %13714 = vmatprep.subr.bf16.mxu0 %v17122_v25 }
0x16bb   : > { %13716 = vmatpush3.bf16.msra.mxu0 %v15461_v8  ;;  %v17191_v8 = vld [vmem:[#allocation29_spill] sm:$0xff] }
0x16bc   : > { %13717 = vmatprep.subr.bf16.mxu0 %v17122_v25 }
0x16be   : > { %12423 = vmatmul.mubr.f32.vlgmr.msra.gmra.mrb[10].mxu0 %v16793_v33 }
0x16bf   : > { %13719 = vmatpush3.bf16.msra.mxu0 %v15504_v37  ;;  %12445 = vmatprep.mubr.msk.f32.mxu0 %vm14486_vm4, %v17183_v39 }
0x16c0   : > { %13720 = vmatprep.subr.bf16.mxu0 %v17122_v25 }
0x16c3   : > { %13722 = vmatpush3.bf16.msra.mxu0 %v15463_v9  ;;  %v17192_v9 = vld [vmem:[#allocation30_spill] sm:$0xff] }
0x16c4   : > { %13723 = vmatprep.subr.bf16.mxu0 %v17122_v25 }
0x16c7   : > { %13725 = vmatpush3.bf16.msra.mxu0 %v15465_v11  ;;  %v17193_v11 = vld [vmem:[#allocation31_spill] sm:$0xff] }
0x16c8   : > { %13726 = vmatprep.subr.bf16.mxu0 %v17122_v25 }
0x16cb   : > { %13728 = vmatpush3.bf16.msra.mxu0 %v15467_v12  ;;  %v17194_v12 = vld [vmem:[#allocation32_spill] sm:$0xff] }
0x16cc   : > { %13729 = vmatprep.subr.bf16.mxu0 %v17122_v25 }
0x16cf   : > { %13731 = vmatpush3.bf16.msra.mxu0 %v15469_v13  ;;  %v17195_v13 = vld [vmem:[#allocation33_spill] sm:$0xff] }
0x16d0   : > { %13732 = vmatprep.subr.bf16.mxu0 %v17122_v25 }
0x16d2   : > { %12446 = vmatmul.mubr.f32.vlgmr.msra.gmra.mrb[10].mxu0 %v8579_v59 }
0x16d3   : > { %13734 = vmatpush3.bf16.msra.mxu0 %v15431_v10  ;;  %12468 = vmatprep.mubr.msk.f32.mxu0 %vm14486_vm4, %v17183_v39 }
0x16d4   : > { %13735 = vmatprep.subr.bf16.mxu0 %v17122_v25 }
0x16d7   : > { %13737 = vmatpush3.bf16.msra.mxu0 %v17188_v36 }
0x16d8   : > { %13738 = vmatprep.subr.bf16.mxu0 %v17122_v25 }
0x16db   : > { %13740 = vmatpush3.bf16.msra.mxu0 %v17189_v47 }
0x16dc   : > { %13741 = vmatprep.subr.bf16.mxu0 %v17122_v25 }
0x16df   : > { %13743 = vmatpush3.bf16.msra.mxu0 %v17190_v2 }
0x16e0   : > { %13744 = vmatprep.subr.bf16.mxu0 %v17122_v25 }
0x16e3   : > { %13746 = vmatpush3.bf16.msra.mxu0 %v17191_v8 }
0x16e4   : > { %13747 = vmatprep.subr.bf16.mxu0 %v17122_v25 }
0x16e6   : > { %12469 = vmatmul.mubr.f32.vlgmr.msra.gmra.mrb[10].mxu0 %v8580_v0 }
0x16e7   : > { %13749 = vmatpush3.bf16.msra.mxu0 %v17192_v9  ;;  %12491 = vmatprep.mubr.msk.f32.mxu0 %vm14486_vm4, %v17183_v39 }
0x16e8   : > { %13750 = vmatprep.subr.bf16.mxu0 %v17122_v25 }
0x16eb   : > { %13752 = vmatpush3.bf16.msra.mxu0 %v17193_v11 }
0x16ec   : > { %13753 = vmatprep.subr.bf16.mxu0 %v17122_v25 }
0x16ef   : > { %13755 = vmatpush3.bf16.msra.mxu0 %v17194_v12 }
0x16f0   : > { %13756 = vmatprep.subr.bf16.mxu0 %v17122_v25 }
0x16f3   : > { %13758 = vmatpush3.bf16.msra.mxu0 %v17195_v13 }
0x16f4   : > { %13759 = vmatprep.subr.bf16.mxu0 %v17122_v25 }
0x16f7   : > { %13761 = vmatpush3.bf16.msra.mxu0 %v17196_v51 }
0x16f8   : > { %13762 = vmatprep.subr.bf16.mxu0 %v17122_v25 }
0x16fa   : > { %12492 = vmatmul.mubr.f32.vlgmr.msra.gmra.mrb[10].mxu0 %v16793_v33 }
0x16fb   : > { %13764 = vmatpush3.bf16.msra.mxu0 %v15431_v10  ;;  %12514 = vmatprep.mubr.msk.f32.mxu0 %vm14486_vm4, %v17183_v39 }
0x16fc   : > { %13765 = vmatprep.subr.bf16.mxu0 %v17122_v25 }
0x16ff   : > { %13767 = vmatpush3.bf16.msra.mxu0 %v17188_v36 }
0x1700   : > { %13768 = vmatprep.subr.bf16.mxu0 %v17122_v25 }
0x1703   : > { %13770 = vmatpush3.bf16.msra.mxu0 %v17189_v47 }
0x1704   : > { %13771 = vmatprep.subr.bf16.mxu0 %v17122_v25 }
0x1707   : > { %13773 = vmatpush3.bf16.msra.mxu0 %v17190_v2 }
0x1708   : > { %13774 = vmatprep.subr.bf16.mxu0 %v17122_v25 }
0x170b   : > { %13776 = vmatpush3.bf16.msra.mxu0 %v17191_v8 }
0x170c   : > { %13777 = vmatprep.subr.bf16.mxu0 %v17122_v25 }
0x170e   : > { %12515 = vmatmul.mubr.f32.vlgmr.msra.gmra.mrb[10].mxu0 %v16793_v33 }
0x170f   : > { %12527 = vmatprep.mubr.msk.f32.mxu0 %vm14486_vm4, %v17183_v39 }
0x17e1   : > { %v9062_v10 = vpop.f32.mrb[10].mxu0 }
0x17e2   : > { %9071 = vrot.lane.b32.xlu0 %v9062_v10, %s14481_s5  ;;  %v12516_v37 = vpop.f32.mrb[11].mxu0  ;;  %v9067_v4 = vrot.slane %v9062_v10, 4 }
0x17e4   : > { %9068 = vrot.lane.b32.xlu1 %v9067_v4, %s14479_s17 }
0x17e6   : > { %9077 = vrot.lane.b32.xlu0 %v9062_v10, %s14484_s3  ;;  %s17199_s3 = sld [smem:[#allocation46_spill]] }
0x17e8   : > { %9074 = vrot.lane.b32.xlu1 %v9067_v4, %s14482_s6 }
0x17ea   : > { %9083 = vrot.lane.b32.xlu0 %v9062_v10, %s14488_s26 }
0x17ec   : > { %9080 = vrot.lane.b32.xlu1 %v9067_v4, %s14483_s0  ;;  %v9095_v57 = vld [vmem:[%s17199_s3] sm:$0xf] }
0x17ed   : > { %v9103_v40 = vsel %vm2874_vm13, %v9095_v57, 0 }
0x17ee   : > { %9089 = vrot.lane.b32.xlu0 %v9062_v10, %s17177_s1  ;;  %v16880_v60 = vand.u32 4294901760, %v9103_v40  ;;  %s17200_s1 = sld [smem:[#allocation48_spill]] }
0x17f0   : > { %9086 = vrot.lane.b32.xlu1 %v9067_v4, %s17178_s23  ;;  %v16884_v7 = vsub.f32 %v9103_v40, %v16880_v60  ;;  %s10263_s23 = sshll.u32 %s17204_s28, 2 }
0x17f1   : > { %s825_s29 = scalar_lea.vmem %s17201_s22, %s10263_s23 }
0x17f2   : > { %9610 = vperm.xlu0 %14119, %v9607_v42   ;;  %v9179_v54 = vand.u32 4294901760, %v16884_v7 }
0x17f4   : > { %9099 = vperm.xlu1 %14120, %v9096_v43   ;;  %v9180_v6 = vsub.f32 %v16884_v7, %v9179_v54  ;;  %v9606_v11 = vld [vmem:[%s17200_s1] sm:$0x7] }
0x17f5   : > { %v9615_v12 = vsel %vm9613_vm2, %v9606_v11, 0 }
0x17f6   : > { %v9181_v17 = vand.u32 4294901760, %v9180_v6  ;;  %v9686_v13 = vand.u32 4294901760, %v9615_v12 }
0x17f8   : > { %v9687_v51 = vsub.f32 %v9615_v12, %v9686_v13 }
0x1854   : > { %v9072_v23 = vpop.permute.xlu0 %9071 }
0x1856   : > { %v9069_v63 = vpop.permute.xlu1 %9068 }
0x1857   : > { %v9091_v30 = vsel %vm1755_vm9, %v9062_v10, %v9069_v63  ;;  %v9688_v10 = vand.u32 4294901760, %v9687_v51 }
0x1858   : > { %v9078_v15 = vpop.permute.xlu0 %9077  ;;  %v9108_v20 = vand.u32 4294901760, %v9091_v30 }
0x1859   : > { %v9689_v43 = vsub.f32 %v9687_v51, %v9688_v10 }
0x185a   : > { %v9075_v14 = vpop.permute.xlu1 %9074  ;;  %v16886_v45 = vsub.f32 %v9091_v30, %v9108_v20 }
0x185b   : > { %v9092_v18 = vsel %vm1755_vm9, %v9072_v23, %v9075_v14  ;;  %v9690_v63 = vand.u32 4294901760, %v9689_v43 }
0x185c   : > { %v9111_v29 = vand.u32 4294901760, %v9092_v18  ;;  %v9084_v5 = vpop.permute.xlu0 %9083  ;;  %v9190_v58 = vand.u32 4294901760, %v16886_v45 }
0x185e   : > { %v16888_v31 = vpack.c.bf16 %v9111_v29, %v9108_v20  ;;  %v16890_v32 = vsub.f32 %v9092_v18, %v9111_v29  ;;  %v9081_v53 = vpop.permute.xlu1 %9080  ;;  %v9191_v38 = vsub.f32 %v16886_v45, %v9190_v58 }
0x185f   : > { %v9093_v46 = vsel %vm1755_vm9, %v9078_v15, %v9081_v53 }
0x1860   : > { %v9197_v41 = vand.u32 4294901760, %v16890_v32  ;;  %v9114_v3 = vand.u32 4294901760, %v9093_v46  ;;  %v9090_v1 = vpop.permute.xlu0 %9089  ;;  %13779 = vmatpush3.bf16.msra.mxu0 %v16888_v31  ;;  %v9192_v48 = vand.u32 4294901760, %v9191_v38  ;;  %v13790_v47 = vpack.c.bf16 %v16890_v32, %v16886_v45 }
0x1861   : > { %v9105_v56 = vsel %vm1755_vm9, %v9090_v1, 0  ;;  %13780 = vmatprep.subr.bf16.mxu0 %v17122_v25 }
0x1862   : > { %v9203_v26 = vsub.f32 %v9093_v46, %v9114_v3  ;;  %v9087_v19 = vpop.permute.xlu1 %9086  ;;  %v9198_v27 = vsub.f32 %v16890_v32, %v9197_v41  ;;  %v16901_v24 = vand.u32 4294901760, %v9105_v56  ;;  %v13802_v8 = vpack.c.bf16 %v9197_v41, %v9190_v58 }
0x1863   : > { %v9094_v62 = vsel %vm1755_vm9, %v9084_v5, %v9087_v19 }
0x1864   : > { %v9117_v55 = vand.u32 4294901760, %v9094_v62  ;;  %v9204_v44 = vand.u32 4294901760, %v9203_v26  ;;  %v9199_v35 = vand.u32 4294901760, %v9198_v27  ;;  %v9217_v16 = vsub.f32 %v9105_v56, %v16901_v24 }
0x1866   : > { %v13781_v28 = vpack.c.bf16 %v9117_v55, %v9114_v3  ;;  %v9210_v49 = vsub.f32 %v9094_v62, %v9117_v55  ;;  %v9205_v34 = vsub.f32 %v9203_v26, %v9204_v44  ;;  %v9218_v50 = vand.u32 4294901760, %v9217_v16 }
0x1867   : > { %v13784_v59 = vpack.c.bf16 %v9199_v35, %v9192_v48 }
0x1868   : > { %v9211_v21 = vand.u32 4294901760, %v9210_v49  ;;  %13782 = vmatpush3.bf16.msra.mxu0 %v13781_v28  ;;  %v9206_v0 = vand.u32 4294901760, %v9205_v34  ;;  %v9219_v22 = vsub.f32 %v9217_v16, %v9218_v50  ;;  %v13793_v2 = vpack.c.bf16 %v9210_v49, %v9203_v26 }
0x1869   : > { %12525 = vmatprep.subr.mxu0 %v17183_v39 }
0x186a   : > { %v9212_v61 = vsub.f32 %v9210_v49, %v9211_v21  ;;  %v9220_v36 = vand.u32 4294901760, %v9219_v22  ;;  %v13805_v9 = vpack.c.bf16 %v9211_v21, %v9204_v44 }
0x186c   : > { %v9213_v33 = vand.u32 4294901760, %v9212_v61  ;;  %12526 = vmatpush3.msra.mxu0 %v16901_v24 }
0x186d   : > { %13783 = vmatprep.subr.bf16.mxu0 %v17122_v25  ;;  %12528 = vmatmul.mubr.f32.vlgmr.msra.gmra.mrb[12].mxu0 %v9181_v17 }
0x186e   : > { %13785 = vmatpush3.bf16.msra.mxu0 %v13784_v59  ;;  %12540 = vmatprep.mubr.msk.f32.mxu0 %vm14486_vm4, %v17183_v39  ;;  %v13787_v52 = vpack.c.bf16 %v9213_v33, %v9206_v0 }
0x186f   : > { %13786 = vmatprep.subr.bf16.mxu0 %v17122_v25 }
0x1871   : > { %v9611_v14 = vpop.permute.xlu0 %9610 }
0x1872   : > { %13788 = vmatpush3.bf16.msra.mxu0 %v13787_v52 }
0x1873   : > { %12538 = vmatprep.subr.mxu0 %v17183_v39  ;;  %v9100_v37 = vpop.permute.xlu1 %9099 }
0x1876   : > { %12539 = vmatpush3.msra.mxu0 %v9220_v36 }
0x1877   : > { %13789 = vmatprep.subr.bf16.mxu0 %v17122_v25  ;;  %12541 = vmatmul.mubr.f32.vlgmr.msra.gmra.mrb[12].mxu0 %v16880_v60 }
0x1878   : > { %13791 = vmatpush3.bf16.msra.mxu0 %v13790_v47  ;;  %12553 = vmatprep.mubr.msk.f32.mxu0 %vm14486_vm4, %v17183_v39 }
0x1879   : > { %13792 = vmatprep.subr.bf16.mxu0 %v17122_v25 }
0x187c   : > { %13794 = vmatpush3.bf16.msra.mxu0 %v13793_v2 }
0x187d   : > { %12551 = vmatprep.subr.mxu0 %v17183_v39 }
0x1880   : > { %12552 = vmatpush3.msra.mxu0 %v9217_v16 }
0x1881   : > { %13795 = vmatprep.subr.bf16.mxu0 %v17122_v25  ;;  %12554 = vmatmul.mubr.f32.vlgmr.msra.gmra.mrb[12].mxu0 %v16884_v7 }
0x1882   : > { %13797 = vmatpush3.bf16.msra.mxu0 %v16888_v31  ;;  %12566 = vmatprep.mubr.msk.f32.mxu0 %vm14486_vm4, %v17183_v39 }
0x1883   : > { %13798 = vmatprep.subr.bf16.mxu0 %v17122_v25 }
0x1886   : > { %13800 = vmatpush3.bf16.msra.mxu0 %v13781_v28 }
0x1887   : > { %12564 = vmatprep.subr.mxu0 %v17183_v39 }
0x188a   : > { %12565 = vmatpush3.msra.mxu0 %v16901_v24 }
0x188b   : > { %13801 = vmatprep.subr.bf16.mxu0 %v17122_v25  ;;  %12567 = vmatmul.mubr.f32.vlgmr.msra.gmra.mrb[12].mxu0 %v9179_v54 }
0x188c   : > { %13803 = vmatpush3.bf16.msra.mxu0 %v13802_v8  ;;  %12579 = vmatprep.mubr.msk.f32.mxu0 %vm14486_vm4, %v17183_v39 }
0x188d   : > { %13804 = vmatprep.subr.bf16.mxu0 %v17122_v25 }
0x1890   : > { %13806 = vmatpush3.bf16.msra.mxu0 %v13805_v9 }
0x1891   : > { %12577 = vmatprep.subr.mxu0 %v17183_v39 }
0x1894   : > { %12578 = vmatpush3.msra.mxu0 %v9218_v50 }
0x1895   : > { %13807 = vmatprep.subr.bf16.mxu0 %v17122_v25  ;;  %12580 = vmatmul.mubr.f32.vlgmr.msra.gmra.mrb[12].mxu0 %v16880_v60 }
0x1896   : > { %13809 = vmatpush3.bf16.msra.mxu0 %v16888_v31  ;;  %12592 = vmatprep.mubr.msk.f32.mxu0 %vm14486_vm4, %v17183_v39 }
0x1897   : > { %13810 = vmatprep.subr.bf16.mxu0 %v17122_v25 }
0x189a   : > { %13812 = vmatpush3.bf16.msra.mxu0 %v13781_v28 }
0x189b   : > { %12590 = vmatprep.subr.mxu0 %v17183_v39 }
0x189e   : > { %12591 = vmatpush3.msra.mxu0 %v16901_v24 }
0x189f   : > { %12593 = vmatmul.mubr.f32.vlgmr.msra.gmra.mrb[12].mxu0 %v16880_v60 }
0x1972   : > { %v9601_v4 = vpop.f32.mrb[12].mxu0 }
0x1973   : > { %v13820_v42 = vadd.f32 %v9601_v4, %v9100_v37  ;;  %v12594_v25 = vpop.f32.mrb[13].mxu0 }
0x1975   : > { %v9605_v57 = vmax.f32 %v13820_v42, 0.0 }
0x1977   : > { %v9618_v23 = vsel %vm1755_vm9, %v9605_v57, 0 }
0x1978   : > { %v9621_v40 = vand.u32 4294901760, %v9618_v23 }
0x197a   : > { %v9698_v30 = vsub.f32 %v9618_v23, %v9621_v40  ;;  %12596 = vmatpush3.msra.mxu1 %v9621_v40 }
0x197b   : > { %12598 = vmatmul.mubr.f32.vlgmr.msra.gmra.mrb[18].mxu1 %v9690_v63  ;;  %12600 = vmatprep.subr.mxu1 %v17183_v39 }
0x197c   : > { %v9699_v15 = vand.u32 4294901760, %v9698_v30  ;;  %12602 = vmatprep.mubr.msk.f32.mxu1 %vm14486_vm4, %v17183_v39 }
0x197e   : > { %v9700_v60 = vsub.f32 %v9698_v30, %v9699_v15 }
0x1980   : > { %v9701_v20 = vand.u32 4294901760, %v9700_v60 }
0x1982   : > { %12601 = vmatpush3.msra.mxu1 %v9701_v20 }
0x1983   : > { %12603 = vmatmul.mubr.f32.vlgmr.msra.gmra.mrb[18].mxu1 %v9686_v13  ;;  %12605 = vmatprep.subr.mxu1 %v17183_v39 }
0x1984   : > { %12606 = vmatpush3.msra.mxu1 %v9698_v30  ;;  %12607 = vmatprep.mubr.msk.f32.mxu1 %vm14486_vm4, %v17183_v39 }
0x1985   : > { %12610 = vmatprep.subr.mxu1 %v17183_v39 }
0x198b   : > { %12608 = vmatmul.mubr.f32.vlgmr.msra.gmra.mrb[18].mxu1 %v9687_v51 }
0x198c   : > { %12611 = vmatpush3.msra.mxu1 %v9621_v40  ;;  %12612 = vmatprep.mubr.msk.f32.mxu1 %vm14486_vm4, %v17183_v39 }
0x198d   : > { %12615 = vmatprep.subr.mxu1 %v17183_v39 }
0x1993   : > { %12613 = vmatmul.mubr.f32.vlgmr.msra.gmra.mrb[18].mxu1 %v9688_v10 }
0x1994   : > { %12616 = vmatpush3.msra.mxu1 %v9699_v15  ;;  %12617 = vmatprep.mubr.msk.f32.mxu1 %vm14486_vm4, %v17183_v39 }
0x1995   : > { %12620 = vmatprep.subr.mxu1 %v17183_v39 }
0x199b   : > { %12618 = vmatmul.mubr.f32.vlgmr.msra.gmra.mrb[18].mxu1 %v9686_v13 }
0x199c   : > { %12621 = vmatpush3.msra.mxu1 %v9621_v40  ;;  %12622 = vmatprep.mubr.msk.f32.mxu1 %vm14486_vm4, %v17183_v39 }
0x19a3   : > { %12623 = vmatmul.mubr.f32.vlgmr.msra.gmra.mrb[18].mxu1 %v9686_v13 }
0x1a76   : > { %v10062_v18 = vpop.f32.mrb[18].mxu1 }
0x1a77   : > { %v13821_v29 = vadd.f32 %v10062_v18, %v9611_v14  ;;  %v12624_v5 = vpop.f32.mrb[19].mxu1 }
0x1a79   : > { %v10066_v7 = vsub.f32 0.0, %v13821_v29 }
0x1a7b   : > { %v10067_v45 = vmul.f32 1.442695, %v10066_v7 }
0x1a7d   : > { %14121 = vpow2.f32 %v10067_v45 }
0x1a87   : > { %v14122_v31 = vpop.eup %14121 }
0x1a88   : > { %v10069_v32 = vadd.f32 1.0, %v14122_v31 }
0x1a8a   : > { %14123 = vrcp.f32 %v10069_v32 }
0x1a94   : > { %v14124_v53 = vpop.eup %14123 }
0x1a95   : > { %10073 = vst.msk [vmem:[%s825_s29] sm:$0x7] %vm10072_vm3, %v14124_v53 }
0x1a96 PF: > { %s17202_s25 = sld [smem:[#allocation25_spill]] }
0x1a9c   : > { %s38_s3 = sadd.s32 1, %s17202_s25  }
0x1a9d   : > { %p35_p2 = scmp.ge.s32.totalorder %s38_s3, 4  }
0x1a9f   :  { %37 = sbr.rel (!%p35_p2) target bundleno = 23 (0x17), region = 183 }
0x1aa6   :  { %10093 = vsyncpa [#allocation3], 1 }
0x1aa7   :  { %10095 = vsyncpa [#allocation3 + $0x1], 1 }
0x1aa8   :  { %10096 = vsyncpa [#allocation5], 1 }
0x1aa9   :  { %10097 = vsyncpa [#allocation8], 1 }
0x1aaa   :  { %10098 = vsyncpa [#allocation11], 1 }
0x1aab   :  { %10099 = vsyncpa [#allocation14], 1 }
0x1aac   :  { %10100 = vsyncpa [#allocation17], 1 }

</bundles_post_ra>
